<compile_context>
chip_gen: v7x
topology: tpu7x:2x2x1
jax: 0.10.0
libtpu: 0.0.40
codegen_flags: <defaults>
</compile_context>

<pallas_src>
import jax
import jax.numpy as jnp
from jax import lax
from jax.experimental import pallas as pl
from jax.experimental.pallas import tpu as pltpu


def speed_lut_kernel(bounds_ref, speeds_ref, lut_ref, out_ref):
    # bounds_ref : (K-1,) f32 in SMEM (scalar-prefetched midpoint boundaries)
    # speeds_ref : (TM, 1) f32        (streamed per grid step)
    # lut_ref    : (K, E)  f32        (resident precomputed MLP output table)
    # out_ref    : (TM, E) f32
    speeds = speeds_ref[...]                               # (TM, 1)
    tm = speeds.shape[0]
    k_buckets = lut_ref.shape[0]
    e = lut_ref.shape[-1]

    # Bucket 0 is the default; each subsequent boundary promotes rows whose
    # speed lies strictly above it.  Later iterations overwrite with higher
    # buckets, so the final value equals lut[argmin_k |speed - center_k|]
    # (first-occurrence tie-break preserved by the strict '>').
    out = jnp.broadcast_to(lut_ref[0:1, :], (tm, e))       # (TM, E)
    for k in range(1, k_buckets):
        out = jnp.where(speeds > bounds_ref[k - 1], lut_ref[k:k + 1, :], out)
    out_ref[...] = out.astype(out_ref.dtype)


def _precompute_output_lut(params):
    """Collapse Embedding -> Linear -> ReLU -> Linear into a (K, E) f32 table.

    K = 9, so this is essentially free; done in full f32 (HIGHEST precision)
    so the kernel matches the f32 PyTorch module.
    """
    table, w1, b1, w2, b2 = (params["table"], params["w1"], params["b1"],
                             params["w2"], params["b2"])
    h = jnp.dot(table.astype(jnp.float32), w1.astype(jnp.float32),
                precision=lax.Precision.HIGHEST,
                preferred_element_type=jnp.float32) + b1
    h = jnp.maximum(h, 0.0)
    out = jnp.dot(h, w2.astype(jnp.float32),
                  precision=lax.Precision.HIGHEST,
                  preferred_element_type=jnp.float32) + b2
    return out.astype(jnp.float32)                         # (K, E)


def speed_controller_forward(speeds, params, *, tm=1024):
    """speeds: (B, S) f32 -> (B, S, E) f32 (matches SpeedController.forward)."""
    centers = params["centers"].astype(jnp.float32)        # (K,), sorted (linspace)
    lut = _precompute_output_lut(params)                    # (K, E) f32
    K, E = lut.shape
    B, S = speeds.shape
    N = B * S

    # Midpoint boundaries of the sorted centers; with strict '>' in the kernel
    # this reproduces torch.argmin(|speed - centers|) incl. its tie-break.
    bounds = (centers[:-1] + centers[1:]) * 0.5             # (K-1,)

    # Pick TM: large enough to amortize per-step pipeline overhead, small
    # enough that the grid has >= 2 steps (dual-TC on v7x) and padding stays
    # minimal (no padding for the demo shape -> no post-kernel slice copy).
    half = pl.cdiv(N, 2)
    tm_eff = max(8, min(tm, pl.cdiv(half, 8) * 8))
    n_pad = pl.cdiv(N, tm_eff) * tm_eff

    speeds_flat = speeds.reshape(N, 1).astype(jnp.float32)
    if n_pad != N:
        # Padded rows (speed 0.0) produce valid bucket-0..K outputs, sliced off below.
        speeds_flat = jnp.pad(speeds_flat, ((0, n_pad - N), (0, 0)))

    grid_spec = pltpu.PrefetchScalarGridSpec(
        num_scalar_prefetch=1,                               # bounds -> SMEM
        grid=(n_pad // tm_eff,),
        in_specs=[
            pl.BlockSpec((tm_eff, 1), lambda i, bounds: (i, 0)),   # speeds (streamed)
            pl.BlockSpec((K, E), lambda i, bounds: (0, 0)),        # lut (resident)
        ],
        out_specs=pl.BlockSpec((tm_eff, E), lambda i, bounds: (i, 0)),
    )

    out = pl.pallas_call(
        speed_lut_kernel,
        out_shape=jax.ShapeDtypeStruct((n_pad, E), jnp.float32),
        grid_spec=grid_spec,
        compiler_params=pltpu.CompilerParams(
            dimension_semantics=("parallel",),               # row tiles are independent
            vmem_limit_bytes=32 * 1024 * 1024,               # safe on v5e/v6e/v7x
        ),
    )(bounds, speeds_flat, lut)

    if n_pad != N:
        out = out[:N]
    return out.reshape(B, S, E)


def init_params(key, num_buckets=9, embed_dim=256):
    """Deterministic synthetic parameters mirroring the PyTorch module's shapes.

    nn.Linear(in, out) stores weight (out, in); we pre-transpose so the math is
    y = x @ W + b with W of shape (in, out).  All f32.
    """
    k_emb, k_w1, k_b1, k_w2, k_b2 = jax.random.split(key, 5)
    centers = jnp.linspace(-1.0, 1.0, num_buckets, dtype=jnp.float32)
    # 'radii' buffer exists in the PyTorch module but is unused in forward().
    table = jax.random.normal(k_emb, (num_buckets, embed_dim), jnp.float32)
    bound = 1.0 / jnp.sqrt(embed_dim)
    w1 = jax.random.uniform(k_w1, (embed_dim, embed_dim), jnp.float32, -bound, bound)
    b1 = jax.random.uniform(k_b1, (embed_dim,), jnp.float32, -bound, bound)
    w2 = jax.random.uniform(k_w2, (embed_dim, embed_dim), jnp.float32, -bound, bound)
    b2 = jax.random.uniform(k_b2, (embed_dim,), jnp.float32, -bound, bound)
    return {"centers": centers, "table": table,
            "w1": w1, "b1": b1, "w2": w2, "b2": b2}


def reference_forward(speeds, params):
    """Pure-JAX f32 reference matching the PyTorch forward."""
    centers, table = params["centers"], params["table"]
    d = jnp.abs(speeds[..., None] - centers)                 # (B, S, K)
    idx = jnp.argmin(d, axis=-1)                             # (B, S)
    emb = table[idx]                                         # (B, S, E)
    h = jnp.dot(emb, params["w1"], precision=lax.Precision.HIGHEST,
                preferred_element_type=jnp.float32) + params["b1"]
    h = jnp.maximum(h, 0.0)
    return jnp.dot(h, params["w2"], precision=lax.Precision.HIGHEST,
                   preferred_element_type=jnp.float32) + params["b2"]


if __name__ == "__main__":
    key = jax.random.PRNGKey(0)
    k_params, k_speeds = jax.random.split(key)

    NUM_BUCKETS = 9
    EMBED_DIM = 256          # small embed_dim for the demo (module default is 1024)
    B, S = 2, 200            # 400 rows -> TM clamps to 200 -> 2 grid steps, no padding

    params = init_params(k_params, NUM_BUCKETS, EMBED_DIM)
    speeds = jax.random.uniform(k_speeds, (B, S), jnp.float32, -1.2, 1.2)

    out = speed_controller_forward(speeds, params, tm=1024)
    out = jax.block_until_ready(out)
    assert out.shape == (B, S, EMBED_DIM)

    # Exact check: kernel output must equal a direct gather from the same LUT.
    lut = _precompute_output_lut(params)
    idx_ref = jnp.argmin(jnp.abs(speeds[..., None] - params["centers"]), axis=-1)
    assert jnp.array_equal(out, lut[idx_ref]), "mismatch vs exact LUT gather"

    # Semantic check vs the full f32 PyTorch-equivalent reference.
    ref_f32 = reference_forward(speeds, params)
    assert jnp.allclose(out, ref_f32, atol=1e-3, rtol=1e-3), "mismatch vs f32 reference"

    print("KERNEL_OK")
</pallas_src>

<mosaic_0001>
module attributes {stable_mosaic.version = 11 : i64} {
  func.func @speed_lut_kernel(%arg0: i32, %arg1: memref<8xf32, #tpu.memory_space<smem>>, %arg2: memref<200x1xf32, #tpu.memory_space<vmem>>, %arg3: memref<9x256xf32, #tpu.memory_space<vmem>>, %arg4: memref<200x256xf32, #tpu.memory_space<vmem>>) attributes {dimension_semantics = [#tpu.dimension_semantics<parallel>], iteration_bounds = array<i64: 2>, scalar_prefetch = 1 : i64, scratch_operands = 0 : i64, tpu.core_type = #tpu.core_type<tc>, window_params = [{transform_indices = @transform_0, window_bounds = array<i64: 200, 1>}, {pipeline_mode = #tpu.pipeline_mode<synchronous>, transform_indices = @transform_1, window_bounds = array<i64: 9, 256>}, {transform_indices = @transform_2, window_bounds = array<i64: 200, 256>}]} {
    %c0 = arith.constant 0 : index
    %c0_0 = arith.constant 0 : index
    %0 = vector.load %arg2[%c0, %c0_0] : memref<200x1xf32, #tpu.memory_space<vmem>>, vector<200x1xf32>
    %c0_1 = arith.constant 0 : index
    %c0_2 = arith.constant 0 : index
    %1 = vector.load %arg3[%c0_1, %c0_2] : memref<9x256xf32, #tpu.memory_space<vmem>>, vector<1x256xf32>
    %2 = vector.shape_cast %1 : vector<1x256xf32> to vector<1x256xf32>
    %3 = vector.broadcast %2 : vector<1x256xf32> to vector<200x256xf32>
    %c0_3 = arith.constant 0 : index
    %4 = memref.load %arg1[%c0_3] : memref<8xf32, #tpu.memory_space<smem>>
    %5 = vector.broadcast %4 : f32 to vector<200x1xf32>
    %6 = arith.cmpf ogt, %0, %5 : vector<200x1xf32>
    %c1 = arith.constant 1 : index
    %c0_4 = arith.constant 0 : index
    %7 = vector.load %arg3[%c1, %c0_4] : memref<9x256xf32, #tpu.memory_space<vmem>>, vector<1x256xf32>
    %8 = vector.shape_cast %6 : vector<200x1xi1> to vector<200x1xi1>
    %9 = vector.broadcast %8 : vector<200x1xi1> to vector<200x256xi1>
    %10 = vector.shape_cast %7 : vector<1x256xf32> to vector<1x256xf32>
    %11 = vector.broadcast %10 : vector<1x256xf32> to vector<200x256xf32>
    %12 = arith.select %9, %11, %3 : vector<200x256xi1>, vector<200x256xf32>
    %c1_5 = arith.constant 1 : index
    %13 = memref.load %arg1[%c1_5] : memref<8xf32, #tpu.memory_space<smem>>
    %14 = vector.broadcast %13 : f32 to vector<200x1xf32>
    %15 = arith.cmpf ogt, %0, %14 : vector<200x1xf32>
    %c2 = arith.constant 2 : index
    %c0_6 = arith.constant 0 : index
    %16 = vector.load %arg3[%c2, %c0_6] : memref<9x256xf32, #tpu.memory_space<vmem>>, vector<1x256xf32>
    %17 = vector.shape_cast %15 : vector<200x1xi1> to vector<200x1xi1>
    %18 = vector.broadcast %17 : vector<200x1xi1> to vector<200x256xi1>
    %19 = vector.shape_cast %16 : vector<1x256xf32> to vector<1x256xf32>
    %20 = vector.broadcast %19 : vector<1x256xf32> to vector<200x256xf32>
    %21 = arith.select %18, %20, %12 : vector<200x256xi1>, vector<200x256xf32>
    %c2_7 = arith.constant 2 : index
    %22 = memref.load %arg1[%c2_7] : memref<8xf32, #tpu.memory_space<smem>>
    %23 = vector.broadcast %22 : f32 to vector<200x1xf32>
    %24 = arith.cmpf ogt, %0, %23 : vector<200x1xf32>
    %c3 = arith.constant 3 : index
    %c0_8 = arith.constant 0 : index
    %25 = vector.load %arg3[%c3, %c0_8] : memref<9x256xf32, #tpu.memory_space<vmem>>, vector<1x256xf32>
    %26 = vector.shape_cast %24 : vector<200x1xi1> to vector<200x1xi1>
    %27 = vector.broadcast %26 : vector<200x1xi1> to vector<200x256xi1>
    %28 = vector.shape_cast %25 : vector<1x256xf32> to vector<1x256xf32>
    %29 = vector.broadcast %28 : vector<1x256xf32> to vector<200x256xf32>
    %30 = arith.select %27, %29, %21 : vector<200x256xi1>, vector<200x256xf32>
    %c3_9 = arith.constant 3 : index
    %31 = memref.load %arg1[%c3_9] : memref<8xf32, #tpu.memory_space<smem>>
    %32 = vector.broadcast %31 : f32 to vector<200x1xf32>
    %33 = arith.cmpf ogt, %0, %32 : vector<200x1xf32>
    %c4 = arith.constant 4 : index
    %c0_10 = arith.constant 0 : index
    %34 = vector.load %arg3[%c4, %c0_10] : memref<9x256xf32, #tpu.memory_space<vmem>>, vector<1x256xf32>
    %35 = vector.shape_cast %33 : vector<200x1xi1> to vector<200x1xi1>
    %36 = vector.broadcast %35 : vector<200x1xi1> to vector<200x256xi1>
    %37 = vector.shape_cast %34 : vector<1x256xf32> to vector<1x256xf32>
    %38 = vector.broadcast %37 : vector<1x256xf32> to vector<200x256xf32>
    %39 = arith.select %36, %38, %30 : vector<200x256xi1>, vector<200x256xf32>
    %c4_11 = arith.constant 4 : index
    %40 = memref.load %arg1[%c4_11] : memref<8xf32, #tpu.memory_space<smem>>
    %41 = vector.broadcast %40 : f32 to vector<200x1xf32>
    %42 = arith.cmpf ogt, %0, %41 : vector<200x1xf32>
    %c5 = arith.constant 5 : index
    %c0_12 = arith.constant 0 : index
    %43 = vector.load %arg3[%c5, %c0_12] : memref<9x256xf32, #tpu.memory_space<vmem>>, vector<1x256xf32>
    %44 = vector.shape_cast %42 : vector<200x1xi1> to vector<200x1xi1>
    %45 = vector.broadcast %44 : vector<200x1xi1> to vector<200x256xi1>
    %46 = vector.shape_cast %43 : vector<1x256xf32> to vector<1x256xf32>
    %47 = vector.broadcast %46 : vector<1x256xf32> to vector<200x256xf32>
    %48 = arith.select %45, %47, %39 : vector<200x256xi1>, vector<200x256xf32>
    %c5_13 = arith.constant 5 : index
    %49 = memref.load %arg1[%c5_13] : memref<8xf32, #tpu.memory_space<smem>>
    %50 = vector.broadcast %49 : f32 to vector<200x1xf32>
    %51 = arith.cmpf ogt, %0, %50 : vector<200x1xf32>
    %c6 = arith.constant 6 : index
    %c0_14 = arith.constant 0 : index
    %52 = vector.load %arg3[%c6, %c0_14] : memref<9x256xf32, #tpu.memory_space<vmem>>, vector<1x256xf32>
    %53 = vector.shape_cast %51 : vector<200x1xi1> to vector<200x1xi1>
    %54 = vector.broadcast %53 : vector<200x1xi1> to vector<200x256xi1>
    %55 = vector.shape_cast %52 : vector<1x256xf32> to vector<1x256xf32>
    %56 = vector.broadcast %55 : vector<1x256xf32> to vector<200x256xf32>
    %57 = arith.select %54, %56, %48 : vector<200x256xi1>, vector<200x256xf32>
    %c6_15 = arith.constant 6 : index
    %58 = memref.load %arg1[%c6_15] : memref<8xf32, #tpu.memory_space<smem>>
    %59 = vector.broadcast %58 : f32 to vector<200x1xf32>
    %60 = arith.cmpf ogt, %0, %59 : vector<200x1xf32>
    %c7 = arith.constant 7 : index
    %c0_16 = arith.constant 0 : index
    %61 = vector.load %arg3[%c7, %c0_16] : memref<9x256xf32, #tpu.memory_space<vmem>>, vector<1x256xf32>
    %62 = vector.shape_cast %60 : vector<200x1xi1> to vector<200x1xi1>
    %63 = vector.broadcast %62 : vector<200x1xi1> to vector<200x256xi1>
    %64 = vector.shape_cast %61 : vector<1x256xf32> to vector<1x256xf32>
    %65 = vector.broadcast %64 : vector<1x256xf32> to vector<200x256xf32>
    %66 = arith.select %63, %65, %57 : vector<200x256xi1>, vector<200x256xf32>
    %c7_17 = arith.constant 7 : index
    %67 = memref.load %arg1[%c7_17] : memref<8xf32, #tpu.memory_space<smem>>
    %68 = vector.broadcast %67 : f32 to vector<200x1xf32>
    %69 = arith.cmpf ogt, %0, %68 : vector<200x1xf32>
    %c8 = arith.constant 8 : index
    %c0_18 = arith.constant 0 : index
    %70 = vector.load %arg3[%c8, %c0_18] : memref<9x256xf32, #tpu.memory_space<vmem>>, vector<1x256xf32>
    %71 = vector.shape_cast %69 : vector<200x1xi1> to vector<200x1xi1>
    %72 = vector.broadcast %71 : vector<200x1xi1> to vector<200x256xi1>
    %73 = vector.shape_cast %70 : vector<1x256xf32> to vector<1x256xf32>
    %74 = vector.broadcast %73 : vector<1x256xf32> to vector<200x256xf32>
    %75 = arith.select %72, %74, %66 : vector<200x256xi1>, vector<200x256xf32>
    %c0_19 = arith.constant 0 : index
    %c0_20 = arith.constant 0 : index
    %76 = vector.load %arg4[%c0_19, %c0_20] : memref<200x256xf32, #tpu.memory_space<vmem>>, vector<200x256xf32>
    tpu.vector_store %arg4[%c0_19, %c0_20], %75 {strides = array<i32>} : memref<200x256xf32, #tpu.memory_space<vmem>>, vector<200x256xf32>,
    return
  }
  func.func @transform_0(%arg0: i32, %arg1: memref<8xf32, #tpu.memory_space<smem>>) -> (i32, i32) {
    %c0_i32 = arith.constant 0 : i32
    %c0_i32_0 = arith.constant 0 : i32
    return %arg0, %c0_i32 : i32, i32
  }
  func.func @transform_1(%arg0: i32, %arg1: memref<8xf32, #tpu.memory_space<smem>>) -> (i32, i32) {
    %c0_i32 = arith.constant 0 : i32
    %c0_i32_0 = arith.constant 0 : i32
    %c0_i32_1 = arith.constant 0 : i32
    return %c0_i32, %c0_i32_0 : i32, i32
  }
  func.func @transform_2(%arg0: i32, %arg1: memref<8xf32, #tpu.memory_space<smem>>) -> (i32, i32) {
    %c0_i32 = arith.constant 0 : i32
    %c0_i32_0 = arith.constant 0 : i32
    return %arg0, %c0_i32 : i32, i32
  }
}

</mosaic_0001>

<bundles_post_ra>
// kernel: tpu_custom_call.1
= control target key start
LH: loop header
LB: loop body
LE: loop exit
PB: predicated region body
PF: predicated region fallthrough
CT: control target
= control target key end

     0   :  { %s5325_s0 = inlined_call_operand.vmem [shape: f32[8], index: 0, kind: input, shape index: {}]   ;;  %s5326_s1 = inlined_call_operand.vmem [shape: f32[400,1], index: 1, kind: input, shape index: {}]   ;;  %s5327_s2 = inlined_call_operand.vmem [shape: f32[9,256], index: 2, kind: input, shape index: {}]   ;;  %s5328_s3 = inlined_call_operand.hbm [shape: f32[400,256], index: 3, kind: output, shape index: {}]  }
   0x1   :  { %s8_s14 = sshll.u32 %s5325_s0, 4  ;;  %s9_s14 = int_to_ptr.vmem [resolvable:$true] %s8_s14 }
   0x2   :  { %s2134_s15 = scalar_lea.vmem %s9_s14, 16  ;;  %p2139_p1 = scmp.lt.s32.totalorder %s9_s14, %s9_s14 }
   0x3   :  { %p2135_p0 = scmp.ne.s32.totalorder %s9_s14, %s2134_s15  ;;  %p2140_p2 = scmp.lt.s32.totalorder %s2134_s15, %s2134_s15 }
   0x5   :  { %p2141_p3 = por %p2140_p2, %p2139_p1 }
   0x7   :  { %p2142_p4 = pnand %p2141_p3, %p2135_p0 }
   0x9   :  { %2145 = shalt.err (!%p2142_p4)  }
   0xa   :  { %s2212_s16 = smov [#allocation3]  }
   0xb   :  { %11 = dma.vmem_to_smem %s9_s14, 16, %s2212_s16, [#allocation2] }
   0xc   :  { %2190 = dma.done.wait [#allocation2], 16 }
   0xd   :  { %2191 = vsyncadd [#allocation2], 4294967280 }
   0xe   :  { %13 = sfence }
   0xf   :  { %14 = vsyncpa [#allocation5], 0 }
  0x10   :  { %16 = vsyncpa [#allocation5 + $0x1], 0  ;;  %s2240_s17 = smov 0   ;;  %s2242_s18 = smov 0  }
  0x11   :  { %s2244_s0 = smov 0   ;;  %s2246_s19 = smov 0  }
  0x12 LB: > { %s2261_s20 = sadd.s32 4294967295, %s2210_s19   ;;  %s2036_s21 = sadd.s32 4294967294, %s2210_s19   ;;  %s2210_s19 = sphi %s2246_s19, %s5821_s19   ;;  %s2206_s0 = sphi %s2244_s0, %s5820_s0   ;;  %s2202_s18 = sphi %s2242_s18, %s5819_s18   ;;  %s2198_s17 = sphi %s2240_s17, %s5818_s17  }
  0x13   : > { %s2265_s22 = sadd.s32 1, %s2210_s19   ;;  %s76_s23 = sadd.s32 1, %s2206_s0 }
  0x14   : > { %s73_s24 = ssub.s32 %s2210_s19, %s2265_s22  ;;  %p86_p5 = scmp.ne.s32.totalorder %s2206_s0, %s2202_s18 }
  0x15   : > { %p74_p6 = scmp.eq.s32.totalorder %s73_s24, 0  ;;  %p87_p7 = scmp.eq.s32.totalorder %s2261_s20, 1 }
  0x16   : > { %p92_p8 = scmp.ne.s32.totalorder %s2202_s18, %s2198_s17  ;;  %p93_p9 = scmp.eq.s32.totalorder %s2036_s21, 1 }
  0x17   : > { %s2276_s25 = scalar_select %p74_p6, %s2206_s0, %s76_s23  }
  0x18   : > { %p2278_p10 = por %p87_p7, %p86_p5  ;;  %p2282_p11 = por %p93_p9, %p92_p8 }
  0x19   : > { %p2039_p12 = scmp.ge.s32.totalorder %s2210_s19, 1  ;;  %p123_p13 = scmp.lt.s32.totalorder %s2210_s19, 3 }
  0x1b   : > { %p124_p0 = pnand %p2039_p12, %p123_p13 }
  0x1d   : > { %127 = sbr.rel (%p124_p0) target bundleno = 589 (0x24d), region = 28 }
  0x24   : > { %s145_s28 = smul.u32 25, %s2261_s20  ;;  %s189_s29 = sld [smem:[#allocation3]]  ;;  %v5351_v0 = vmov 0  }
  0x25   : > { %2108 = vset.pattern.permute.xlu1 %v5351_v0  ;;  %2107 = vset.pattern.permute.xlu0 %v5351_v0  ;;  %s2042_s7 = sld [smem:[#allocation3 + $0x1]]  ;;  %s2044_s8 = sld [smem:[#allocation3 + $0x2]] }
  0x26   : > { %p146_p1 = scmp.lt.s32.totalorder %s145_s28, 49  ;;  %s2046_s9 = sld [smem:[#allocation3 + $0x3]] }
  0x27   : > { %s2048_s10 = sld [smem:[#allocation3 + $0x4]]  ;;  %s2050_s11 = sld [smem:[#allocation3 + $0x5]] }
  0x28   : > { %s5823_s28 = smov (!%p146_p1, %s145_s28), 49  ;;  %s2052_s12 = sld [smem:[#allocation3 + $0x6]] }
  0x29   : > { %s2040_s30 = sshll.u32 %s5823_s28, 3  ;;  %s2062_s16 = smul.u32 6400, %s2261_s20 }
  0x2a   : > { %v2291_v1 = vstv %s189_s29  ;;  %s2296_s6 = scalar_lea.vmem %s5326_s1, %s2040_s30  ;;  %s2214_s30 = smov [#allocation4]  }
  0x2b   : > { %v2299_v2 = vld [vmem:[%s2296_s6 + $0x10] sm:$0xff]  ;;  %v2302_v3 = vld [vmem:[%s2296_s6] sm:$0xff]  ;;  %v2305_v4 = vld [vmem:[%s2296_s6 + $0x18] sm:$0xff]  ;;  %v2440_v48 = vstv %s2042_s7  ;;  %s3614_s7 = sld [smem:[#allocation3 + $0x7]]  ;;  %s5262_s24 = scalar_lea.hbm %s5328_s3, %s2062_s16 }
  0x2c   : > { %vm193_vm0 = vcmp.gt.f32.partialorder %v2299_v2, %v2291_v1  ;;  %vm191_vm1 = vcmp.gt.f32.partialorder %v2302_v3, %v2291_v1  ;;  %vm194_vm2 = vcmp.gt.f32.partialorder %v2305_v4, %v2291_v1  ;;  %v2314_v5 = vld [vmem:[%s2296_s6 + $0x8] sm:$0xff]  ;;  %v2324_v9 = vld [vmem:[%s2296_s6 + $0x20] sm:$0xff]  ;;  %v2333_v12 = vld [vmem:[%s2296_s6 + $0x38] sm:$0xff]  ;;  %s2150_s4 = sshll.u32 %s2214_s30, 4  ;;  %s2151_s4 = int_to_ptr.vmem [resolvable:$false] %s2150_s4 }
  0x2d   : > { %v220_v6 = vsel %vm193_vm0, 1, %v5351_v0  ;;  %v218_v7 = vsel %vm191_vm1, 1, %v5351_v0  ;;  %vm192_vm3 = vcmp.gt.f32.partialorder %v2314_v5, %v2291_v1  ;;  %v2321_v8 = vld [vmem:[%s2296_s6 + $0x28] sm:$0xff]  ;;  %v221_v10 = vsel %vm194_vm2, 1, %v5351_v0  ;;  %v2336_v13 = vld [vmem:[%s2296_s6 + $0x30] sm:$0xff]  ;;  %v2348_v17 = vld [vmem:[%s2296_s6 + $0x40] sm:$0xff] }
  0x2e   : > { %250 = vperm.xlu1 %2108, %v220_v6   ;;  %244 = vperm.xlu0 %2107, %v218_v7   ;;  %v219_v11 = vsel %vm192_vm3, 1, %v5351_v0  ;;  %vm196_vm4 = vcmp.gt.f32.partialorder %v2321_v8, %v2291_v1  ;;  %vm195_vm5 = vcmp.gt.f32.partialorder %v2324_v9, %v2291_v1  ;;  %vm198_vm6 = vcmp.gt.f32.partialorder %v2333_v12, %v2291_v1  ;;  %v2345_v16 = vld [vmem:[%s2296_s6 + $0x48] sm:$0xff]  ;;  %v2357_v20 = vld [vmem:[%s2296_s6 + $0x58] sm:$0xff]  ;;  %v2360_v21 = vld [vmem:[%s2296_s6 + $0x50] sm:$0xff]  ;;  %s2152_s5 = scalar_lea.vmem %s2151_s4, 12800 }
  0x2f   : > { %v223_v14 = vsel %vm196_vm4, 1, %v5351_v0  ;;  %v222_v15 = vsel %vm195_vm5, 1, %v5351_v0  ;;  %vm197_vm7 = vcmp.gt.f32.partialorder %v2336_v13, %v2291_v1  ;;  %v225_v18 = vsel %vm198_vm6, 1, %v5351_v0  ;;  %v2369_v24 = vld [vmem:[%s2296_s6 + $0x68] sm:$0xff]  ;;  %v2372_v25 = vld [vmem:[%s2296_s6 + $0x60] sm:$0xff]  ;;  %v2381_v28 = vld [vmem:[%s2296_s6 + $0x78] sm:$0xff] }
  0x30   : > { %v224_v19 = vsel %vm197_vm7, 1, %v5351_v0  ;;  %vm200_vm8 = vcmp.gt.f32.partialorder %v2345_v16, %v2291_v1  ;;  %vm199_vm9 = vcmp.gt.f32.partialorder %v2348_v17, %v2291_v1  ;;  %vm202_vm10 = vcmp.gt.f32.partialorder %v2357_v20, %v2291_v1  ;;  %v2384_v29 = vld [vmem:[%s2296_s6 + $0x70] sm:$0xff]  ;;  %v2393_v32 = vld [vmem:[%s2296_s6 + $0x88] sm:$0xff]  ;;  %v2396_v33 = vld [vmem:[%s2296_s6 + $0x80] sm:$0xff] }
  0x31   : > { %v227_v22 = vsel %vm200_vm8, 1, %v5351_v0  ;;  %v226_v23 = vsel %vm199_vm9, 1, %v5351_v0  ;;  %vm201_vm11 = vcmp.gt.f32.partialorder %v2360_v21, %v2291_v1  ;;  %v229_v26 = vsel %vm202_vm10, 1, %v5351_v0  ;;  %v2405_v36 = vld [vmem:[%s2296_s6 + $0x98] sm:$0xff]  ;;  %v2408_v37 = vld [vmem:[%s2296_s6 + $0x90] sm:$0xff]  ;;  %v2417_v40 = vld [vmem:[%s2296_s6 + $0xa8] sm:$0xff] }
  0x32   : > { %253 = vperm.xlu1 %2108, %v221_v10   ;;  %247 = vperm.xlu0 %2107, %v219_v11   ;;  %v228_v27 = vsel %vm201_vm11, 1, %v5351_v0  ;;  %vm204_vm12 = vcmp.gt.f32.partialorder %v2369_v24, %v2291_v1  ;;  %vm203_vm13 = vcmp.gt.f32.partialorder %v2372_v25, %v2291_v1  ;;  %vm206_vm14 = vcmp.gt.f32.partialorder %v2381_v28, %v2291_v1  ;;  %v2420_v41 = vld [vmem:[%s2296_s6 + $0xa0] sm:$0xff]  ;;  %v2429_v44 = vld [vmem:[%s2296_s6 + $0xb8] sm:$0xff]  ;;  %v2432_v45 = vld [vmem:[%s2296_s6 + $0xb0] sm:$0xff] }
  0x33   : > { %v231_v30 = vsel %vm204_vm12, 1, %v5351_v0  ;;  %v230_v31 = vsel %vm203_vm13, 1, %v5351_v0  ;;  %vm205_vm15 = vcmp.gt.f32.partialorder %v2384_v29, %v2291_v1  ;;  %v233_v34 = vsel %vm206_vm14, 1, %v5351_v0  ;;  %v2443_v49 = vld [vmem:[%s2296_s6 + $0xc0] sm:$0xff] }
  0x34   : > { %v232_v35 = vsel %vm205_vm15, 1, %v5351_v0  ;;  %vm208_vm0 = vcmp.gt.f32.partialorder %v2393_v32, %v2291_v1  ;;  %vm207_vm1 = vcmp.gt.f32.partialorder %v2396_v33, %v2291_v1  ;;  %vm210_vm2 = vcmp.gt.f32.partialorder %v2405_v36, %v2291_v1 }
  0x35   : > { %v235_v38 = vsel %vm208_vm0, 1, %v5351_v0  ;;  %v234_v39 = vsel %vm207_vm1, 1, %v5351_v0  ;;  %vm209_vm3 = vcmp.gt.f32.partialorder %v2408_v37, %v2291_v1  ;;  %v237_v42 = vsel %vm210_vm2, 1, %v5351_v0 }
  0x36   : > { %259 = vperm.xlu1 %2108, %v223_v14   ;;  %256 = vperm.xlu0 %2107, %v222_v15   ;;  %v236_v43 = vsel %vm209_vm3, 1, %v5351_v0  ;;  %vm212_vm4 = vcmp.gt.f32.partialorder %v2417_v40, %v2291_v1  ;;  %vm211_vm5 = vcmp.gt.f32.partialorder %v2420_v41, %v2291_v1  ;;  %vm214_vm6 = vcmp.gt.f32.partialorder %v2429_v44, %v2291_v1 }
  0x37   : > { %v239_v46 = vsel %vm212_vm4, 1, %v5351_v0  ;;  %v238_v47 = vsel %vm211_vm5, 1, %v5351_v0  ;;  %vm213_vm7 = vcmp.gt.f32.partialorder %v2432_v45, %v2291_v1  ;;  %v241_v50 = vsel %vm214_vm6, 1, %v5351_v0 }
  0x38   : > { %v240_v51 = vsel %vm213_vm7, 1, %v5351_v0  ;;  %vm406_vm8 = vcmp.gt.f32.partialorder %v2302_v3, %v2440_v48  ;;  %vm215_vm9 = vcmp.gt.f32.partialorder %v2443_v49, %v2291_v1  ;;  %vm408_vm10 = vcmp.gt.f32.partialorder %v2299_v2, %v2440_v48 }
  0x39   : > { %v433_v52 = vsel %vm406_vm8, 1, %v5351_v0  ;;  %v242_v53 = vsel %vm215_vm9, 1, %v5351_v0  ;;  %vm407_vm11 = vcmp.gt.f32.partialorder %v2314_v5, %v2440_v48  ;;  %v435_v54 = vsel %vm408_vm10, 1, %v5351_v0 }
  0x3a   : > { %265 = vperm.xlu1 %2108, %v225_v18   ;;  %262 = vperm.xlu0 %2107, %v224_v19   ;;  %v434_v55 = vsel %vm407_vm11, 1, %v5351_v0  ;;  %vm410_vm12 = vcmp.gt.f32.partialorder %v2324_v9, %v2440_v48  ;;  %vm409_vm13 = vcmp.gt.f32.partialorder %v2305_v4, %v2440_v48  ;;  %vm412_vm14 = vcmp.gt.f32.partialorder %v2336_v13, %v2440_v48 }
  0x3b   : > { %v437_v56 = vsel %vm410_vm12, 1, %v5351_v0  ;;  %v436_v57 = vsel %vm409_vm13, 1, %v5351_v0  ;;  %vm411_vm15 = vcmp.gt.f32.partialorder %v2321_v8, %v2440_v48  ;;  %v439_v58 = vsel %vm412_vm14, 1, %v5351_v0 }
  0x3c   : > { %v438_v59 = vsel %vm411_vm15, 1, %v5351_v0  ;;  %vm414_vm0 = vcmp.gt.f32.partialorder %v2348_v17, %v2440_v48  ;;  %vm413_vm1 = vcmp.gt.f32.partialorder %v2333_v12, %v2440_v48  ;;  %vm416_vm2 = vcmp.gt.f32.partialorder %v2360_v21, %v2440_v48 }
  0x3d   : > { %v441_v60 = vsel %vm414_vm0, 1, %v5351_v0  ;;  %v440_v61 = vsel %vm413_vm1, 1, %v5351_v0  ;;  %vm415_vm3 = vcmp.gt.f32.partialorder %v2345_v16, %v2440_v48  ;;  %v443_v62 = vsel %vm416_vm2, 1, %v5351_v0 }
  0x3e   : > { %271 = vperm.xlu1 %2108, %v227_v22   ;;  %268 = vperm.xlu0 %2107, %v226_v23   ;;  %v442_v63 = vsel %vm415_vm3, 1, %v5351_v0  ;;  %vm418_vm4 = vcmp.gt.f32.partialorder %v2372_v25, %v2440_v48  ;;  %vm417_vm5 = vcmp.gt.f32.partialorder %v2357_v20, %v2440_v48  ;;  %vm420_vm6 = vcmp.gt.f32.partialorder %v2384_v29, %v2440_v48 }
  0x3f   : > { %v445_v1 = vsel %vm418_vm4, 1, %v5351_v0  ;;  %v444_v6 = vsel %vm417_vm5, 1, %v5351_v0  ;;  %vm419_vm7 = vcmp.gt.f32.partialorder %v2369_v24, %v2440_v48  ;;  %v447_v7 = vsel %vm420_vm6, 1, %v5351_v0 }
  0x40   : > { %v446_v10 = vsel %vm419_vm7, 1, %v5351_v0  ;;  %vm422_vm8 = vcmp.gt.f32.partialorder %v2396_v33, %v2440_v48  ;;  %vm421_vm9 = vcmp.gt.f32.partialorder %v2381_v28, %v2440_v48  ;;  %vm424_vm10 = vcmp.gt.f32.partialorder %v2408_v37, %v2440_v48 }
  0x41   : > { %v449_v11 = vsel %vm422_vm8, 1, %v5351_v0  ;;  %v448_v14 = vsel %vm421_vm9, 1, %v5351_v0  ;;  %vm423_vm11 = vcmp.gt.f32.partialorder %v2393_v32, %v2440_v48  ;;  %v451_v15 = vsel %vm424_vm10, 1, %v5351_v0 }
  0x42   : > { %277 = vperm.xlu1 %2108, %v229_v26   ;;  %274 = vperm.xlu0 %2107, %v228_v27   ;;  %v450_v18 = vsel %vm423_vm11, 1, %v5351_v0  ;;  %vm426_vm12 = vcmp.gt.f32.partialorder %v2420_v41, %v2440_v48  ;;  %vm425_vm13 = vcmp.gt.f32.partialorder %v2405_v36, %v2440_v48  ;;  %vm428_vm14 = vcmp.gt.f32.partialorder %v2432_v45, %v2440_v48 }
  0x43   : > { %v453_v19 = vsel %vm426_vm12, 1, %v5351_v0  ;;  %v452_v22 = vsel %vm425_vm13, 1, %v5351_v0  ;;  %vm427_vm15 = vcmp.gt.f32.partialorder %v2417_v40, %v2440_v48  ;;  %v455_v23 = vsel %vm428_vm14, 1, %v5351_v0 }
  0x44   : > { %v454_v26 = vsel %vm427_vm15, 1, %v5351_v0  ;;  %vm430_vm0 = vcmp.gt.f32.partialorder %v2443_v49, %v2440_v48  ;;  %vm429_vm1 = vcmp.gt.f32.partialorder %v2429_v44, %v2440_v48  ;;  %v2523_v27 = vstv %s2044_s8 }
  0x45   : > { %vm622_vm2 = vcmp.gt.f32.partialorder %v2314_v5, %v2523_v27  ;;  %vm621_vm3 = vcmp.gt.f32.partialorder %v2302_v3, %v2523_v27  ;;  %vm624_vm4 = vcmp.gt.f32.partialorder %v2305_v4, %v2523_v27  ;;  %vm623_vm5 = vcmp.gt.f32.partialorder %v2299_v2, %v2523_v27 }
  0x46   : > { %283 = vperm.xlu1 %2108, %v231_v30   ;;  %280 = vperm.xlu0 %2107, %v230_v31   ;;  %v457_v30 = vsel %vm430_vm0, 1, %v5351_v0  ;;  %v456_v31 = vsel %vm429_vm1, 1, %v5351_v0  ;;  %vm626_vm6 = vcmp.gt.f32.partialorder %v2321_v8, %v2523_v27  ;;  %vm625_vm7 = vcmp.gt.f32.partialorder %v2324_v9, %v2523_v27 }
  0x47   : > { %vm628_vm8 = vcmp.gt.f32.partialorder %v2333_v12, %v2523_v27  ;;  %vm627_vm9 = vcmp.gt.f32.partialorder %v2336_v13, %v2523_v27  ;;  %vm630_vm10 = vcmp.gt.f32.partialorder %v2345_v16, %v2523_v27  ;;  %vm629_vm11 = vcmp.gt.f32.partialorder %v2348_v17, %v2523_v27 }
  0x48   : > { %v657_v48 = vsel %vm630_vm10, 1, %v5351_v0  ;;  %vm632_vm12 = vcmp.gt.f32.partialorder %v2357_v20, %v2523_v27  ;;  %vm631_vm13 = vcmp.gt.f32.partialorder %v2360_v21, %v2523_v27  ;;  %vm634_vm14 = vcmp.gt.f32.partialorder %v2369_v24, %v2523_v27 }
  0x49   : > { %vm633_vm15 = vcmp.gt.f32.partialorder %v2372_v25, %v2523_v27  ;;  %vm636_vm0 = vcmp.gt.f32.partialorder %v2381_v28, %v2523_v27  ;;  %vm635_vm1 = vcmp.gt.f32.partialorder %v2384_v29, %v2523_v27 }
  0x4a   : > { %289 = vperm.xlu1 %2108, %v233_v34   ;;  %286 = vperm.xlu0 %2107, %v232_v35   ;;  %v649_v34 = vsel %vm622_vm2, 1, %v5351_v0  ;;  %v648_v35 = vsel %vm621_vm3, 1, %v5351_v0  ;;  %vm638_vm2 = vcmp.gt.f32.partialorder %v2393_v32, %v2523_v27  ;;  %vm637_vm3 = vcmp.gt.f32.partialorder %v2396_v33, %v2523_v27 }
  0x4e   : > { %295 = vperm.xlu1 %2108, %v235_v38   ;;  %292 = vperm.xlu0 %2107, %v234_v39   ;;  %v651_v38 = vsel %vm624_vm4, 1, %v5351_v0  ;;  %v650_v39 = vsel %vm623_vm5, 1, %v5351_v0  ;;  %vm640_vm4 = vcmp.gt.f32.partialorder %v2405_v36, %v2523_v27  ;;  %vm639_vm5 = vcmp.gt.f32.partialorder %v2408_v37, %v2523_v27 }
  0x52   : > { %301 = vperm.xlu1 %2108, %v237_v42   ;;  %298 = vperm.xlu0 %2107, %v236_v43   ;;  %v653_v42 = vsel %vm626_vm6, 1, %v5351_v0  ;;  %v652_v43 = vsel %vm625_vm7, 1, %v5351_v0  ;;  %vm642_vm6 = vcmp.gt.f32.partialorder %v2417_v40, %v2523_v27  ;;  %vm641_vm7 = vcmp.gt.f32.partialorder %v2420_v41, %v2523_v27 }
  0x56   : > { %307 = vperm.xlu1 %2108, %v239_v46   ;;  %304 = vperm.xlu0 %2107, %v238_v47   ;;  %v655_v46 = vsel %vm628_vm8, 1, %v5351_v0  ;;  %v654_v47 = vsel %vm627_vm9, 1, %v5351_v0  ;;  %vm644_vm8 = vcmp.gt.f32.partialorder %v2429_v44, %v2523_v27  ;;  %vm643_vm9 = vcmp.gt.f32.partialorder %v2432_v45, %v2523_v27 }
  0x5a   : > { %313 = vperm.xlu1 %2108, %v241_v50   ;;  %310 = vperm.xlu0 %2107, %v240_v51   ;;  %v656_v50 = vsel %vm629_vm11, 1, %v5351_v0  ;;  %v659_v51 = vsel %vm632_vm12, 1, %v5351_v0  ;;  %vm645_vm11 = vcmp.gt.f32.partialorder %v2443_v49, %v2523_v27 }
  0x5e   : > { %459 = vperm.xlu1 %2108, %v433_v52   ;;  %316 = vperm.xlu0 %2107, %v242_v53   ;;  %v658_v52 = vsel %vm631_vm13, 1, %v5351_v0  ;;  %v661_v53 = vsel %vm634_vm14, 1, %v5351_v0 }
  0x62   : > { %465 = vperm.xlu1 %2108, %v435_v54   ;;  %462 = vperm.xlu0 %2107, %v434_v55   ;;  %v660_v54 = vsel %vm633_vm15, 1, %v5351_v0  ;;  %v663_v55 = vsel %vm636_vm0, 1, %v5351_v0 }
  0x66   : > { %471 = vperm.xlu1 %2108, %v437_v56   ;;  %468 = vperm.xlu0 %2107, %v436_v57   ;;  %v662_v56 = vsel %vm635_vm1, 1, %v5351_v0 }
  0x6a   : > { %477 = vperm.xlu1 %2108, %v439_v58   ;;  %474 = vperm.xlu0 %2107, %v438_v59   ;;  %v665_v59 = vsel %vm638_vm2, 1, %v5351_v0 }
  0x6e   : > { %483 = vperm.xlu1 %2108, %v441_v60   ;;  %480 = vperm.xlu0 %2107, %v440_v61   ;;  %v664_v60 = vsel %vm637_vm3, 1, %v5351_v0 }
  0x72   : > { %489 = vperm.xlu1 %2108, %v443_v62   ;;  %486 = vperm.xlu0 %2107, %v442_v63   ;;  %v667_v63 = vsel %vm640_vm4, 1, %v5351_v0 }
  0x76   : > { %495 = vperm.xlu1 %2108, %v445_v1   ;;  %492 = vperm.xlu0 %2107, %v444_v6   ;;  %v666_v1 = vsel %vm639_vm5, 1, %v5351_v0 }
  0x7a   : > { %501 = vperm.xlu1 %2108, %v447_v7   ;;  %498 = vperm.xlu0 %2107, %v446_v10   ;;  %v669_v10 = vsel %vm642_vm6, 1, %v5351_v0 }
  0x7e   : > { %507 = vperm.xlu1 %2108, %v449_v11   ;;  %504 = vperm.xlu0 %2107, %v448_v14   ;;  %v668_v11 = vsel %vm641_vm7, 1, %v5351_v0 }
  0x82   : > { %513 = vperm.xlu1 %2108, %v451_v15   ;;  %510 = vperm.xlu0 %2107, %v450_v18   ;;  %v2613_v18 = vstv %s2046_s9  ;;  %s142_s9 = sand.u32 1, %s2202_s18  }
  0x83   : > { %vm836_vm10 = vcmp.gt.f32.partialorder %v2302_v3, %v2613_v18  ;;  %vm838_vm12 = vcmp.gt.f32.partialorder %v2299_v2, %v2613_v18  ;;  %vm837_vm13 = vcmp.gt.f32.partialorder %v2314_v5, %v2613_v18  ;;  %vm840_vm14 = vcmp.gt.f32.partialorder %v2324_v9, %v2613_v18  ;;  %s2063_s14 = smul.u32 400, %s142_s9  ;;  %s5284_s28 = scalar_lea.sflag [#allocation5], %s142_s9 }
  0x84   : > { %v865_v27 = vsel %vm838_vm12, 1, %v5351_v0  ;;  %vm839_vm15 = vcmp.gt.f32.partialorder %v2305_v4, %v2613_v18  ;;  %vm842_vm0 = vcmp.gt.f32.partialorder %v2336_v13, %v2613_v18  ;;  %vm841_vm1 = vcmp.gt.f32.partialorder %v2321_v8, %v2613_v18 }
  0x85   : > { %vm844_vm2 = vcmp.gt.f32.partialorder %v2348_v17, %v2613_v18  ;;  %vm843_vm3 = vcmp.gt.f32.partialorder %v2333_v12, %v2613_v18  ;;  %vm846_vm4 = vcmp.gt.f32.partialorder %v2360_v21, %v2613_v18  ;;  %vm845_vm5 = vcmp.gt.f32.partialorder %v2345_v16, %v2613_v18  ;;  %s4961_s15 = scalar_lea.vmem [#allocation4], %s2063_s14 }
  0x86   : > { %519 = vperm.xlu1 %2108, %v453_v19   ;;  %516 = vperm.xlu0 %2107, %v452_v22   ;;  %v671_v19 = vsel %vm644_vm8, 1, %v5351_v0  ;;  %v670_v22 = vsel %vm643_vm9, 1, %v5351_v0  ;;  %vm848_vm6 = vcmp.gt.f32.partialorder %v2372_v25, %v2613_v18  ;;  %vm847_vm7 = vcmp.gt.f32.partialorder %v2357_v20, %v2613_v18  ;;  %s1974_s21 = sshll.u32 %s4961_s15, 4  ;;  %s5264_s21 = int_to_ptr.vmem [resolvable:$true] %s1974_s21 }
  0x87   : > { %vm850_vm8 = vcmp.gt.f32.partialorder %v2384_v29, %v2613_v18  ;;  %vm849_vm9 = vcmp.gt.f32.partialorder %v2369_v24, %v2613_v18  ;;  %vm854_vm12 = vcmp.gt.f32.partialorder %v2408_v37, %v2613_v18  ;;  %s2146_s29 = scalar_lea.vmem %s5264_s21, 6400  ;;  %p2153_p5 = scmp.lt.s32.totalorder %s5264_s21, %s2151_s4 }
  0x88   : > { %p2147_p2 = scmp.ne.s32.totalorder %s5264_s21, %s2146_s29  ;;  %p2154_p6 = scmp.lt.s32.totalorder %s2152_s5, %s2146_s29 }
  0x8a   : > { %525 = vperm.xlu1 %2108, %v455_v23   ;;  %522 = vperm.xlu0 %2107, %v454_v26   ;;  %p2148_p3 = pnand %p2147_p2, %p2278_p10  ;;  %p2155_p7 = por %p2154_p6, %p2153_p5 }
  0x8c   : > { %p2149_p4 = pneg %p2148_p3 }
  0x8e   : > { %531 = vperm.xlu1 %2108, %v457_v30   ;;  %528 = vperm.xlu0 %2107, %v456_v31   ;;  %v863_v30 = vsel %vm836_vm10, 1, %v5351_v0  ;;  %v672_v31 = vsel %vm645_vm11, 1, %v5351_v0  ;;  %vm852_vm10 = vcmp.gt.f32.partialorder %v2396_v33, %v2613_v18  ;;  %vm851_vm11 = vcmp.gt.f32.partialorder %v2381_v28, %v2613_v18  ;;  %p2156_p8 = pnand %p2155_p7, %p2149_p4 }
  0x92   : > { %677 = vperm.xlu1 %2108, %v649_v34   ;;  %674 = vperm.xlu0 %2107, %v648_v35  }
  0x96   : > { %683 = vperm.xlu1 %2108, %v651_v38   ;;  %680 = vperm.xlu0 %2107, %v650_v39   ;;  %v864_v38 = vsel %vm837_vm13, 1, %v5351_v0  ;;  %vm853_vm13 = vcmp.gt.f32.partialorder %v2393_v32, %v2613_v18 }
  0x9a   : > { %689 = vperm.xlu1 %2108, %v653_v42   ;;  %686 = vperm.xlu0 %2107, %v652_v43   ;;  %v867_v43 = vsel %vm840_vm14, 1, %v5351_v0  ;;  %vm856_vm14 = vcmp.gt.f32.partialorder %v2420_v41, %v2613_v18 }
  0x9e   : > { %695 = vperm.xlu1 %2108, %v655_v46   ;;  %692 = vperm.xlu0 %2107, %v654_v47   ;;  %v866_v46 = vsel %vm839_vm15, 1, %v5351_v0  ;;  %vm855_vm15 = vcmp.gt.f32.partialorder %v2405_v36, %v2613_v18 }
  0xa2   : > { %701 = vperm.xlu1 %2108, %v657_v48   ;;  %698 = vperm.xlu0 %2107, %v656_v50   ;;  %v869_v50 = vsel %vm842_vm0, 1, %v5351_v0  ;;  %vm858_vm0 = vcmp.gt.f32.partialorder %v2432_v45, %v2613_v18 }
  0xa6   : > { %707 = vperm.xlu1 %2108, %v659_v51   ;;  %704 = vperm.xlu0 %2107, %v658_v52   ;;  %v868_v51 = vsel %vm841_vm1, 1, %v5351_v0  ;;  %vm857_vm1 = vcmp.gt.f32.partialorder %v2417_v40, %v2613_v18 }
  0xaa   : > { %713 = vperm.xlu1 %2108, %v661_v53   ;;  %710 = vperm.xlu0 %2107, %v660_v54   ;;  %v871_v54 = vsel %vm844_vm2, 1, %v5351_v0  ;;  %vm860_vm2 = vcmp.gt.f32.partialorder %v2443_v49, %v2613_v18 }
  0xad   : > { %v2579_v57 = vpop.permute.xlu1 %250  ;;  %v2581_v58 = vpop.permute.xlu0 %244 }
  0xae   : > { %5449 = vst [vmem:[#allocation8_spill] sm:$0xff] %v2581_v58  ;;  %719 = vperm.xlu1 %2108, %v663_v55   ;;  %716 = vperm.xlu0 %2107, %v662_v56   ;;  %v870_v55 = vsel %vm843_vm3, 1, %v5351_v0  ;;  %vm859_vm3 = vcmp.gt.f32.partialorder %v2429_v44, %v2613_v18 }
  0xb1   : > { %v2589_v61 = vpop.permute.xlu1 %253  ;;  %v2591_v62 = vpop.permute.xlu0 %247 }
  0xb2   : > { %5450 = vst [vmem:[#allocation9_spill] sm:$0xff] %v2591_v62  ;;  %725 = vperm.xlu1 %2108, %v665_v59   ;;  %722 = vperm.xlu0 %2107, %v664_v60   ;;  %v873_v60 = vsel %vm846_vm4, 1, %v5351_v0 }
  0xb5   : > { %v2599_v6 = vpop.permute.xlu1 %259  ;;  %v2601_v7 = vpop.permute.xlu0 %256 }
  0xb6   : > { %731 = vperm.xlu1 %2108, %v667_v63   ;;  %728 = vperm.xlu0 %2107, %v666_v1   ;;  %v872_v63 = vsel %vm845_vm5, 1, %v5351_v0 }
  0xb9   : > { %v2609_v14 = vpop.permute.xlu1 %265  ;;  %v2611_v15 = vpop.permute.xlu0 %262 }
  0xba   : > { %737 = vperm.xlu1 %2108, %v669_v10   ;;  %734 = vperm.xlu0 %2107, %v668_v11   ;;  %v875_v11 = vsel %vm848_vm6, 1, %v5351_v0 }
  0xbd   : > { %v2621_v23 = vpop.permute.xlu1 %271  ;;  %v2623_v26 = vpop.permute.xlu0 %268 }
  0xbe   : > { %743 = vperm.xlu1 %2108, %v671_v19   ;;  %740 = vperm.xlu0 %2107, %v670_v22   ;;  %v874_v19 = vsel %vm847_vm7, 1, %v5351_v0 }
  0xc1   : > { %v2631_v34 = vpop.permute.xlu1 %277  ;;  %v2633_v35 = vpop.permute.xlu0 %274 }
  0xc2   : > { %889 = vperm.xlu1 %2108, %v863_v30   ;;  %746 = vperm.xlu0 %2107, %v672_v31   ;;  %v877_v31 = vsel %vm850_vm8, 1, %v5351_v0 }
  0xc5   : > { %v2641_v39 = vpop.permute.xlu1 %283  ;;  %v2643_v42 = vpop.permute.xlu0 %280 }
  0xc6   : > { %895 = vperm.xlu1 %2108, %v865_v27   ;;  %892 = vperm.xlu0 %2107, %v864_v38   ;;  %v876_v27 = vsel %vm849_vm9, 1, %v5351_v0 }
  0xc9   : > { %v2651_v47 = vpop.permute.xlu1 %289  ;;  %v2653_v48 = vpop.permute.xlu0 %286 }
  0xca   : > { %901 = vperm.xlu1 %2108, %v867_v43   ;;  %898 = vperm.xlu0 %2107, %v866_v46   ;;  %v879_v46 = vsel %vm852_vm10, 1, %v5351_v0 }
  0xcd   : > { %v2661_v52 = vpop.permute.xlu1 %295  ;;  %v2663_v53 = vpop.permute.xlu0 %292 }
  0xce   : > { %907 = vperm.xlu1 %2108, %v869_v50   ;;  %904 = vperm.xlu0 %2107, %v868_v51   ;;  %v878_v50 = vsel %vm851_vm11, 1, %v5351_v0 }
  0xd1   : > { %v2671_v56 = vpop.permute.xlu1 %301  ;;  %v2673_v59 = vpop.permute.xlu0 %298 }
  0xd2   : > { %913 = vperm.xlu1 %2108, %v871_v54   ;;  %910 = vperm.xlu0 %2107, %v870_v55   ;;  %v881_v55 = vsel %vm854_vm12, 1, %v5351_v0 }
  0xd5   : > { %v2681_v1 = vpop.permute.xlu1 %307  ;;  %v2683_v10 = vpop.permute.xlu0 %304 }
  0xd6   : > { %919 = vperm.xlu1 %2108, %v873_v60   ;;  %916 = vperm.xlu0 %2107, %v872_v63   ;;  %v880_v60 = vsel %vm853_vm13, 1, %v5351_v0 }
  0xd9   : > { %v2691_v22 = vpop.permute.xlu1 %313  ;;  %v2693_v30 = vpop.permute.xlu0 %310 }
  0xda   : > { %925 = vperm.xlu1 %2108, %v875_v11   ;;  %922 = vperm.xlu0 %2107, %v874_v19   ;;  %v883_v19 = vsel %vm856_vm14, 1, %v5351_v0 }
  0xdd   : > { %v2701_v38 = vpop.permute.xlu1 %459  ;;  %v2703_v43 = vpop.permute.xlu0 %316 }
  0xde   : > { %5451 = vst [vmem:[#allocation10_spill] sm:$0xff] %v2701_v38  ;;  %931 = vperm.xlu1 %2108, %v877_v31   ;;  %928 = vperm.xlu0 %2107, %v876_v27   ;;  %v882_v31 = vsel %vm855_vm15, 1, %v5351_v0  ;;  %v2745_v38 = vstv %s2048_s10 }
  0xdf   : > { %vm1052_vm4 = vcmp.gt.f32.partialorder %v2314_v5, %v2745_v38  ;;  %vm1051_vm5 = vcmp.gt.f32.partialorder %v2302_v3, %v2745_v38  ;;  %vm1054_vm6 = vcmp.gt.f32.partialorder %v2305_v4, %v2745_v38  ;;  %vm1053_vm7 = vcmp.gt.f32.partialorder %v2299_v2, %v2745_v38 }
  0xe0   : > { %v1079_v58 = vsel %vm1052_vm4, 1, %v5351_v0  ;;  %vm1056_vm8 = vcmp.gt.f32.partialorder %v2321_v8, %v2745_v38  ;;  %vm1055_vm9 = vcmp.gt.f32.partialorder %v2324_v9, %v2745_v38  ;;  %vm1058_vm10 = vcmp.gt.f32.partialorder %v2333_v12, %v2745_v38 }
  0xe1   : > { %v2711_v51 = vpop.permute.xlu1 %465  ;;  %v2713_v54 = vpop.permute.xlu0 %462  ;;  %vm1057_vm11 = vcmp.gt.f32.partialorder %v2336_v13, %v2745_v38  ;;  %vm1060_vm12 = vcmp.gt.f32.partialorder %v2345_v16, %v2745_v38  ;;  %vm1059_vm13 = vcmp.gt.f32.partialorder %v2348_v17, %v2745_v38  ;;  %vm1062_vm14 = vcmp.gt.f32.partialorder %v2357_v20, %v2745_v38 }
  0xe2   : > { %5452 = vst [vmem:[#allocation11_spill] sm:$0xff] %v2713_v54  ;;  %937 = vperm.xlu1 %2108, %v879_v46   ;;  %934 = vperm.xlu0 %2107, %v878_v50   ;;  %v885_v50 = vsel %vm858_vm0, 1, %v5351_v0  ;;  %vm1061_vm15 = vcmp.gt.f32.partialorder %v2360_v21, %v2745_v38  ;;  %vm1064_vm0 = vcmp.gt.f32.partialorder %v2369_v24, %v2745_v38 }
  0xe3   : > { %vm1068_vm4 = vcmp.gt.f32.partialorder %v2393_v32, %v2745_v38 }
  0xe5   : > { %v2721_v63 = vpop.permute.xlu1 %471  ;;  %v2723_v11 = vpop.permute.xlu0 %468 }
  0xe6   : > { %943 = vperm.xlu1 %2108, %v881_v55   ;;  %940 = vperm.xlu0 %2107, %v880_v60   ;;  %v884_v55 = vsel %vm857_vm1, 1, %v5351_v0  ;;  %vm1063_vm1 = vcmp.gt.f32.partialorder %v2372_v25, %v2745_v38 }
  0xe9   : > { %v2731_v27 = vpop.permute.xlu1 %477  ;;  %v2733_v46 = vpop.permute.xlu0 %474 }
  0xea   : > { %949 = vperm.xlu1 %2108, %v883_v19   ;;  %946 = vperm.xlu0 %2107, %v882_v31   ;;  %v887_v19 = vsel %vm860_vm2, 1, %v5351_v0  ;;  %v886_v31 = vsel %vm859_vm3, 1, %v5351_v0  ;;  %vm1066_vm2 = vcmp.gt.f32.partialorder %v2381_v28, %v2745_v38  ;;  %vm1065_vm3 = vcmp.gt.f32.partialorder %v2384_v29, %v2745_v38 }
  0xed   : > { %v2741_v60 = vpop.permute.xlu1 %483  ;;  %v2743_v54 = vpop.permute.xlu0 %480 }
  0xee   : > { %5453 = vst [vmem:[#allocation12_spill] sm:$0xff] %v2741_v60  ;;  %5454 = vst [vmem:[#allocation13_spill] sm:$0xff] %v2743_v54  ;;  %955 = vperm.xlu1 %2108, %v885_v50   ;;  %952 = vperm.xlu0 %2107, %v884_v55   ;;  %v1078_v50 = vsel %vm1051_vm5, 1, %v5351_v0  ;;  %vm1067_vm5 = vcmp.gt.f32.partialorder %v2396_v33, %v2745_v38  ;;  %v2867_v60 = vstv %s2050_s11 }
  0xf1   : > { %v2753_v62 = vpop.permute.xlu1 %489  ;;  %v2755_v18 = vpop.permute.xlu0 %486 }
  0xf2   : > { %5455 = vst [vmem:[#allocation14_spill] sm:$0xff] %v2753_v62  ;;  %5456 = vst [vmem:[#allocation15_spill] sm:$0xff] %v2755_v18  ;;  %961 = vperm.xlu1 %2108, %v887_v19   ;;  %958 = vperm.xlu0 %2107, %v886_v31   ;;  %v1081_v18 = vsel %vm1054_vm6, 1, %v5351_v0  ;;  %v1080_v19 = vsel %vm1053_vm7, 1, %v5351_v0  ;;  %vm1070_vm6 = vcmp.gt.f32.partialorder %v2405_v36, %v2745_v38 }
  0xf3   : > { %vm1069_vm7 = vcmp.gt.f32.partialorder %v2408_v37, %v2745_v38 }
  0xf5   : > { %v2763_v55 = vpop.permute.xlu1 %495  ;;  %v2765_v54 = vpop.permute.xlu0 %492 }
  0xf6   : > { %5457 = vst [vmem:[#allocation16_spill] sm:$0xff] %v2763_v55  ;;  %5458 = vst [vmem:[#allocation17_spill] sm:$0xff] %v2765_v54  ;;  %1107 = vperm.xlu1 %2108, %v1079_v58   ;;  %1104 = vperm.xlu0 %2107, %v1078_v50   ;;  %v1083_v54 = vsel %vm1056_vm8, 1, %v5351_v0  ;;  %v1082_v58 = vsel %vm1055_vm9, 1, %v5351_v0  ;;  %vm1072_vm8 = vcmp.gt.f32.partialorder %v2417_v40, %v2745_v38 }
  0xf7   : > { %vm1071_vm9 = vcmp.gt.f32.partialorder %v2420_v41, %v2745_v38 }
  0xf9   : > { %v2773_v31 = vpop.permute.xlu1 %501  ;;  %v2775_v62 = vpop.permute.xlu0 %498 }
  0xfa   : > { %5459 = vst [vmem:[#allocation18_spill] sm:$0xff] %v2773_v31  ;;  %5460 = vst [vmem:[#allocation19_spill] sm:$0xff] %v2775_v62  ;;  %1113 = vperm.xlu1 %2108, %v1081_v18   ;;  %1110 = vperm.xlu0 %2107, %v1080_v19   ;;  %v1085_v62 = vsel %vm1058_vm10, 1, %v5351_v0  ;;  %v1084_v18 = vsel %vm1057_vm11, 1, %v5351_v0  ;;  %vm1074_vm10 = vcmp.gt.f32.partialorder %v2429_v44, %v2745_v38 }
  0xfb   : > { %vm1073_vm11 = vcmp.gt.f32.partialorder %v2432_v45, %v2745_v38 }
  0xfd   : > { %v2783_v50 = vpop.permute.xlu1 %507  ;;  %v2785_v55 = vpop.permute.xlu0 %504 }
  0xfe   : > { %5461 = vst [vmem:[#allocation20_spill] sm:$0xff] %v2783_v50  ;;  %5462 = vst [vmem:[#allocation21_spill] sm:$0xff] %v2785_v55  ;;  %1119 = vperm.xlu1 %2108, %v1083_v54   ;;  %1116 = vperm.xlu0 %2107, %v1082_v58   ;;  %v1087_v55 = vsel %vm1060_vm12, 1, %v5351_v0  ;;  %v1086_v54 = vsel %vm1059_vm13, 1, %v5351_v0  ;;  %vm1266_vm12 = vcmp.gt.f32.partialorder %v2302_v3, %v2867_v60 }
  0xff   : > { %vm1075_vm13 = vcmp.gt.f32.partialorder %v2443_v49, %v2745_v38 }
 0x101   : > { %v2793_v19 = vpop.permute.xlu1 %513  ;;  %v2795_v31 = vpop.permute.xlu0 %510 }
 0x102   : > { %5463 = vst [vmem:[#allocation22_spill] sm:$0xff] %v2793_v19  ;;  %5464 = vst [vmem:[#allocation23_spill] sm:$0xff] %v2795_v31  ;;  %1125 = vperm.xlu1 %2108, %v1085_v62   ;;  %1122 = vperm.xlu0 %2107, %v1084_v18   ;;  %v1089_v31 = vsel %vm1062_vm14, 1, %v5351_v0  ;;  %v1088_v62 = vsel %vm1061_vm15, 1, %v5351_v0  ;;  %vm1268_vm14 = vcmp.gt.f32.partialorder %v2299_v2, %v2867_v60 }
 0x103   : > { %vm1267_vm15 = vcmp.gt.f32.partialorder %v2314_v5, %v2867_v60  ;;  %v1295_v38 = vsel %vm1268_vm14, 1, %v5351_v0  ;;  %vm1284_vm14 = vcmp.gt.f32.partialorder %v2408_v37, %v2867_v60 }
 0x105   : > { %v2803_v58 = vpop.permute.xlu1 %519  ;;  %v2805_v50 = vpop.permute.xlu0 %516 }
 0x106   : > { %5465 = vst [vmem:[#allocation24_spill] sm:$0xff] %v2803_v58  ;;  %5466 = vst [vmem:[#allocation25_spill] sm:$0xff] %v2805_v50  ;;  %1131 = vperm.xlu1 %2108, %v1087_v55   ;;  %1128 = vperm.xlu0 %2107, %v1086_v54   ;;  %v1091_v50 = vsel %vm1064_vm0, 1, %v5351_v0  ;;  %v1090_v55 = vsel %vm1063_vm1, 1, %v5351_v0  ;;  %vm1270_vm0 = vcmp.gt.f32.partialorder %v2324_v9, %v2867_v60 }
 0x107   : > { %vm1269_vm1 = vcmp.gt.f32.partialorder %v2305_v4, %v2867_v60  ;;  %v1297_v5 = vsel %vm1270_vm0, 1, %v5351_v0  ;;  %vm1286_vm0 = vcmp.gt.f32.partialorder %v2420_v41, %v2867_v60 }
 0x109   : > { %v2813_v18 = vpop.permute.xlu1 %525  ;;  %v2815_v19 = vpop.permute.xlu0 %522 }
 0x10a   : > { %5467 = vst [vmem:[#allocation26_spill] sm:$0xff] %v2813_v18  ;;  %5468 = vst [vmem:[#allocation27_spill] sm:$0xff] %v2815_v19  ;;  %1137 = vperm.xlu1 %2108, %v1089_v31   ;;  %1134 = vperm.xlu0 %2107, %v1088_v62   ;;  %v1093_v19 = vsel %vm1066_vm2, 1, %v5351_v0  ;;  %v1092_v31 = vsel %vm1065_vm3, 1, %v5351_v0  ;;  %vm1272_vm2 = vcmp.gt.f32.partialorder %v2336_v13, %v2867_v60 }
 0x10b   : > { %vm1271_vm3 = vcmp.gt.f32.partialorder %v2321_v8, %v2867_v60  ;;  %v1299_v4 = vsel %vm1272_vm2, 1, %v5351_v0  ;;  %vm1288_vm2 = vcmp.gt.f32.partialorder %v2432_v45, %v2867_v60  ;;  %v177_v45 = vld [vmem:[%s5327_s2] ss:$8 sm:$0x3] }
 0x10d   : > { %v2823_v54 = vpop.permute.xlu1 %531  ;;  %v2825_v58 = vpop.permute.xlu0 %528 }
 0x10e   : > { %5469 = vst [vmem:[#allocation28_spill] sm:$0xff] %v2823_v54  ;;  %5470 = vst [vmem:[#allocation29_spill] sm:$0xff] %v2825_v58  ;;  %1143 = vperm.xlu1 %2108, %v1091_v50   ;;  %1140 = vperm.xlu0 %2107, %v1090_v55   ;;  %v1095_v58 = vsel %vm1068_vm4, 1, %v5351_v0  ;;  %v1094_v50 = vsel %vm1067_vm5, 1, %v5351_v0  ;;  %vm1274_vm4 = vcmp.gt.f32.partialorder %v2348_v17, %v2867_v60 }
 0x10f   : > { %vm1273_vm5 = vcmp.gt.f32.partialorder %v2333_v12, %v2867_v60  ;;  %v1301_v8 = vsel %vm1274_vm4, 1, %v5351_v0  ;;  %vm1290_vm4 = vcmp.gt.f32.partialorder %v2443_v49, %v2867_v60 }
 0x111   : > { %v2833_v62 = vpop.permute.xlu1 %677  ;;  %v2835_v18 = vpop.permute.xlu0 %674 }
 0x112   : > { %5471 = vst [vmem:[#allocation30_spill] sm:$0xff] %v2833_v62  ;;  %5472 = vst [vmem:[#allocation31_spill] sm:$0xff] %v2835_v18  ;;  %1149 = vperm.xlu1 %2108, %v1093_v19   ;;  %1146 = vperm.xlu0 %2107, %v1092_v31   ;;  %v1097_v19 = vsel %vm1070_vm6, 1, %v5351_v0  ;;  %v1096_v31 = vsel %vm1069_vm7, 1, %v5351_v0  ;;  %vm1276_vm6 = vcmp.gt.f32.partialorder %v2360_v21, %v2867_v60 }
 0x113   : > { %vm1275_vm7 = vcmp.gt.f32.partialorder %v2345_v16, %v2867_v60  ;;  %v1303_v12 = vsel %vm1276_vm6, 1, %v5351_v0 }
 0x115   : > { %v2843_v55 = vpop.permute.xlu1 %683  ;;  %v2845_v54 = vpop.permute.xlu0 %680 }
 0x116   : > { %5473 = vst [vmem:[#allocation32_spill] sm:$0xff] %v2843_v55  ;;  %5474 = vst [vmem:[#allocation33_spill] sm:$0xff] %v2845_v54  ;;  %1155 = vperm.xlu1 %2108, %v1095_v58   ;;  %1152 = vperm.xlu0 %2107, %v1094_v50   ;;  %v1099_v54 = vsel %vm1072_vm8, 1, %v5351_v0  ;;  %v1098_v58 = vsel %vm1071_vm9, 1, %v5351_v0  ;;  %vm1278_vm8 = vcmp.gt.f32.partialorder %v2372_v25, %v2867_v60 }
 0x117   : > { %vm1277_vm9 = vcmp.gt.f32.partialorder %v2357_v20, %v2867_v60  ;;  %v1305_v16 = vsel %vm1278_vm8, 1, %v5351_v0  ;;  %vm320_vm8 = vcmp.eq.s32.totalorder %v2579_v57, 1 }
 0x119   : > { %v2853_v18 = vpop.permute.xlu1 %689  ;;  %v2855_v62 = vpop.permute.xlu0 %686 }
 0x11a   : > { %5475 = vst [vmem:[#allocation34_spill] sm:$0xff] %v2853_v18  ;;  %5476 = vst [vmem:[#allocation35_spill] sm:$0xff] %v2855_v62  ;;  %1161 = vperm.xlu1 %2108, %v1097_v19   ;;  %1158 = vperm.xlu0 %2107, %v1096_v31   ;;  %v1101_v19 = vsel %vm1074_vm10, 1, %v5351_v0  ;;  %v1100_v31 = vsel %vm1073_vm11, 1, %v5351_v0  ;;  %vm1280_vm10 = vcmp.gt.f32.partialorder %v2384_v29, %v2867_v60 }
 0x11b   : > { %vm1279_vm11 = vcmp.gt.f32.partialorder %v2369_v24, %v2867_v60  ;;  %v1307_v20 = vsel %vm1280_vm10, 1, %v5351_v0  ;;  %vm323_vm10 = vcmp.eq.s32.totalorder %v2599_v6, 1 }
 0x11d   : > { %v2863_v50 = vpop.permute.xlu1 %695  ;;  %v2865_v55 = vpop.permute.xlu0 %692 }
 0x11e   : > { %5477 = vst [vmem:[#allocation36_spill] sm:$0xff] %v2863_v50  ;;  %5478 = vst [vmem:[#allocation37_spill] sm:$0xff] %v2865_v55  ;;  %1167 = vperm.xlu1 %2108, %v1099_v54   ;;  %1164 = vperm.xlu0 %2107, %v1098_v58   ;;  %v1293_v55 = vsel %vm1266_vm12, 1, %v5351_v0  ;;  %v1102_v54 = vsel %vm1075_vm13, 1, %v5351_v0  ;;  %vm1282_vm12 = vcmp.gt.f32.partialorder %v2396_v33, %v2867_v60 }
 0x11f   : > { %vm1281_vm13 = vcmp.gt.f32.partialorder %v2381_v28, %v2867_v60  ;;  %v1309_v24 = vsel %vm1282_vm12, 1, %v5351_v0  ;;  %v179_v28 = vlaneseq }
 0x121   : > { %v2875_v62 = vpop.permute.xlu1 %701  ;;  %v2877_v18 = vpop.permute.xlu0 %698 }
 0x122   : > { %5479 = vst [vmem:[#allocation38_spill] sm:$0xff] %v2875_v62  ;;  %5480 = vst [vmem:[#allocation39_spill] sm:$0xff] %v2877_v18  ;;  %1173 = vperm.xlu1 %2108, %v1101_v19   ;;  %1170 = vperm.xlu0 %2107, %v1100_v31   ;;  %v1294_v19 = vsel %vm1267_vm15, 1, %v5351_v0  ;;  %vm1283_vm15 = vcmp.gt.f32.partialorder %v2393_v32, %v2867_v60 }
 0x125   : > { %v2885_v3 = vpop.permute.xlu1 %707  ;;  %v2887_v58 = vpop.permute.xlu0 %704 }
 0x126   : > { %5481 = vst [vmem:[#allocation40_spill] sm:$0xff] %v2885_v3  ;;  %5482 = vst [vmem:[#allocation41_spill] sm:$0xff] %v2887_v58  ;;  %1319 = vperm.xlu1 %2108, %v1293_v55   ;;  %1176 = vperm.xlu0 %2107, %v1102_v54   ;;  %v1296_v55 = vsel %vm1269_vm1, 1, %v5351_v0  ;;  %vm1285_vm1 = vcmp.gt.f32.partialorder %v2405_v36, %v2867_v60 }
 0x129   : > { %v2895_v2 = vpop.permute.xlu1 %713  ;;  %v2897_v31 = vpop.permute.xlu0 %710 }
 0x12a   : > { %5483 = vst [vmem:[#allocation42_spill] sm:$0xff] %v2895_v2  ;;  %5484 = vst [vmem:[#allocation43_spill] sm:$0xff] %v2897_v31  ;;  %1325 = vperm.xlu1 %2108, %v1295_v38   ;;  %1322 = vperm.xlu0 %2107, %v1294_v19   ;;  %v1298_v38 = vsel %vm1271_vm3, 1, %v5351_v0  ;;  %vm1287_vm3 = vcmp.gt.f32.partialorder %v2417_v40, %v2867_v60  ;;  %v2041_v40 = vld [vmem:[%s5327_s2 + $0x1] ss:$8 sm:$0x3] }
 0x12d   : > { %v2905_v9 = vpop.permute.xlu1 %719  ;;  %v2907_v54 = vpop.permute.xlu0 %716 }
 0x12e   : > { %5485 = vst [vmem:[#allocation44_spill] sm:$0xff] %v2905_v9  ;;  %5486 = vst [vmem:[#allocation45_spill] sm:$0xff] %v2907_v54  ;;  %1331 = vperm.xlu1 %2108, %v1297_v5   ;;  %1328 = vperm.xlu0 %2107, %v1296_v55   ;;  %v1300_v5 = vsel %vm1273_vm5, 1, %v5351_v0  ;;  %vm1289_vm5 = vcmp.gt.f32.partialorder %v2429_v44, %v2867_v60  ;;  %v2045_v60 = vld [vmem:[%s5327_s2 + $0x3] ss:$8 sm:$0x3] }
 0x131   : > { %v2915_v13 = vpop.permute.xlu1 %725  ;;  %v2917_v19 = vpop.permute.xlu0 %722 }
 0x132   : > { %5487 = vst [vmem:[#allocation46_spill] sm:$0xff] %v2915_v13  ;;  %5488 = vst [vmem:[#allocation47_spill] sm:$0xff] %v2917_v19  ;;  %1337 = vperm.xlu1 %2108, %v1299_v4   ;;  %1334 = vperm.xlu0 %2107, %v1298_v38   ;;  %v1302_v4 = vsel %vm1275_vm7, 1, %v5351_v0  ;;  %v3150_v19 = vld [vmem:[%s2296_s6 + $0x20] sm:$0xff] }
 0x133   : > { %5524 = vst [vmem:[#allocation82_spill] sm:$0xff] %v3150_v19 }
 0x135   : > { %v2925_v17 = vpop.permute.xlu1 %731  ;;  %v2927_v55 = vpop.permute.xlu0 %728 }
 0x136   : > { %5489 = vst [vmem:[#allocation48_spill] sm:$0xff] %v2925_v17  ;;  %5490 = vst [vmem:[#allocation49_spill] sm:$0xff] %v2927_v55  ;;  %1343 = vperm.xlu1 %2108, %v1301_v8   ;;  %1340 = vperm.xlu0 %2107, %v1300_v5   ;;  %v1304_v8 = vsel %vm1277_vm9, 1, %v5351_v0  ;;  %vm321_vm9 = vcmp.eq.s32.totalorder %v2589_v61, 1 }
 0x139   : > { %v2935_v21 = vpop.permute.xlu1 %737  ;;  %v2937_v38 = vpop.permute.xlu0 %734 }
 0x13a   : > { %5491 = vst [vmem:[#allocation50_spill] sm:$0xff] %v2935_v21  ;;  %5492 = vst [vmem:[#allocation51_spill] sm:$0xff] %v2937_v38  ;;  %1349 = vperm.xlu1 %2108, %v1303_v12   ;;  %1346 = vperm.xlu0 %2107, %v1302_v4   ;;  %v1306_v12 = vsel %vm1279_vm11, 1, %v5351_v0  ;;  %vm322_vm11 = vcmp.eq.s32.totalorder %v2601_v7, 1 }
 0x13d   : > { %v2945_v25 = vpop.permute.xlu1 %743  ;;  %v2947_v5 = vpop.permute.xlu0 %740 }
 0x13e   : > { %5493 = vst [vmem:[#allocation52_spill] sm:$0xff] %v2945_v25  ;;  %5494 = vst [vmem:[#allocation53_spill] sm:$0xff] %v2947_v5  ;;  %1355 = vperm.xlu1 %2108, %v1305_v16   ;;  %1352 = vperm.xlu0 %2107, %v1304_v8   ;;  %v1308_v16 = vsel %vm1281_vm13, 1, %v5351_v0  ;;  %v3072_v25 = vld [vmem:[%s2296_s6 + $0x18] sm:$0xff] }
 0x13f   : > { %5519 = vst [vmem:[#allocation77_spill] sm:$0xff] %v3072_v25 }
 0x141   : > { %v2955_v29 = vpop.permute.xlu1 %889  ;;  %v2957_v4 = vpop.permute.xlu0 %746 }
 0x142   : > { %5495 = vst [vmem:[#allocation54_spill] sm:$0xff] %v2955_v29  ;;  %5496 = vst [vmem:[#allocation55_spill] sm:$0xff] %v2957_v4  ;;  %1361 = vperm.xlu1 %2108, %v1307_v20   ;;  %1358 = vperm.xlu0 %2107, %v1306_v12   ;;  %v1311_v20 = vsel %vm1284_vm14, 1, %v5351_v0  ;;  %v1310_v12 = vsel %vm1283_vm15, 1, %v5351_v0  ;;  %v5509_v4 = vmov 0   ;;  %vm325_vm14 = vcmp.eq.s32.totalorder %v2609_v14, 1 }
 0x143   : > { %vm324_vm15 = vcmp.eq.s32.totalorder %v2611_v15, 1 }
 0x145   : > { %v2965_v33 = vpop.permute.xlu1 %895  ;;  %v2967_v8 = vpop.permute.xlu0 %892 }
 0x146   : > { %5497 = vst [vmem:[#allocation56_spill] sm:$0xff] %v2965_v33  ;;  %5498 = vst [vmem:[#allocation57_spill] sm:$0xff] %v2967_v8  ;;  %1367 = vperm.xlu1 %2108, %v1309_v24   ;;  %1364 = vperm.xlu0 %2107, %v1308_v16   ;;  %v180_v24 = vshrl.u32 %v179_v28, 7  ;;  %v1313_v16 = vsel %vm1286_vm0, 1, %v5351_v0  ;;  %v1312_v8 = vsel %vm1285_vm1, 1, %v5351_v0  ;;  %v1315_v28 = vsel %vm1288_vm2, 1, %v5351_v0 }
 0x147   : > { %vm327_vm0 = vcmp.eq.s32.totalorder %v2621_v23, 1  ;;  %vm326_vm1 = vcmp.eq.s32.totalorder %v2623_v26, 1 }
 0x148   : > { %v2989_v29 = vsub.s32 0, %v180_v24 }
 0x149   : > { %v2975_v37 = vpop.permute.xlu1 %901  ;;  %v2977_v32 = vpop.permute.xlu0 %898 }
 0x14a   : > { %5499 = vst [vmem:[#allocation58_spill] sm:$0xff] %v2975_v37  ;;  %5500 = vst [vmem:[#allocation59_spill] sm:$0xff] %v2977_v32  ;;  %1373 = vperm.xlu1 %2108, %v1311_v20   ;;  %1370 = vperm.xlu0 %2107, %v1310_v12   ;;  %v2991_v20 = vsub.s32 1, %v180_v24  ;;  %v1314_v12 = vsel %vm1287_vm3, 1, %v5351_v0  ;;  %v3015_v49 = vrot.slane %v177_v45, %v2989_v29 }
 0x14b   : > { %5503 = vst [vmem:[#allocation62_spill] sm:$0xff] %v2989_v29  ;;  %v2043_v0 = vld [vmem:[%s5327_s2 + $0x2] ss:$8 sm:$0x3]  ;;  %v3055_v33 = vrot.slane %v2045_v60, %v2989_v29 }
 0x14c   : > { %5504 = vst [vmem:[#allocation63_spill] sm:$0xff] %v2991_v20  ;;  %5507 = vst [vmem:[#allocation66_spill] sm:$0xff] %v3015_v49  ;;  %v3018_v44 = vrot.slane %v177_v45, %v2991_v20  ;;  %v3037_v45 = vld [vmem:[%s2296_s6] sm:$0xff]  ;;  %v3052_v37 = vrot.slane %v2043_v0, %v2991_v20  ;;  %v3059_v57 = vrot.slane %v2045_v60, %v2991_v20 }
 0x14d   : > { %v2985_v41 = vpop.permute.xlu1 %907  ;;  %v2987_v36 = vpop.permute.xlu0 %904  ;;  %5517 = vst [vmem:[#allocation75_spill] sm:$0xff] %v3055_v33 }
 0x14e   : > { %5501 = vst [vmem:[#allocation60_spill] sm:$0xff] %v2985_v41  ;;  %5502 = vst [vmem:[#allocation61_spill] sm:$0xff] %v2987_v36  ;;  %1379 = vperm.xlu1 %2108, %v1313_v16   ;;  %1376 = vperm.xlu0 %2107, %v1312_v8   ;;  %v3009_v16 = vstv %s2052_s12  ;;  %v3026_v36 = vrot.slane %v2041_v40, %v2989_v29  ;;  %v3043_v41 = vrot.slane %v2043_v0, %v2989_v29 }
 0x14f   : > { %5508 = vst [vmem:[#allocation67_spill] sm:$0xff] %v3018_v44  ;;  %vm1481_vm7 = vcmp.gt.f32.partialorder %v3037_v45, %v3009_v16  ;;  %5516 = vst [vmem:[#allocation74_spill] sm:$0xff] %v3052_v37  ;;  %vm1484_vm12 = vcmp.gt.f32.partialorder %v3072_v25, %v3009_v16  ;;  %vm1485_vm3 = vcmp.gt.f32.partialorder %v3150_v19, %v3009_v16 }
 0x150   : > { %5510 = vst [vmem:[#allocation68_spill] sm:$0xff] %v3026_v36  ;;  %5513 = vst [vmem:[#allocation71_spill] sm:$0xff] %v3043_v41  ;;  %v3065_v5 = vsel %vm320_vm8, %v3026_v36, %v3015_v49  ;;  %v3097_v38 = vsel %vm323_vm10, %v3026_v36, %v3015_v49  ;;  %v3114_v17 = vsel %vm322_vm11, %v3026_v36, %v3015_v49  ;;  %v1511_v14 = vsel %vm1484_vm12, 1, %v5509_v4 }
 0x151   : > { %v3005_v8 = vpop.permute.xlu1 %913  ;;  %v3007_v24 = vpop.permute.xlu0 %910  ;;  %5518 = vst [vmem:[#allocation76_spill] sm:$0xff] %v3059_v57  ;;  %v3158_v13 = vsel %vm324_vm15, %v3026_v36, %v3015_v49  ;;  %v3170_v9 = vsel %vm327_vm0, %v3026_v36, %v3015_v49  ;;  %v3186_v15 = vsel %vm326_vm1, %v3026_v36, %v3015_v49  ;;  %v1512_v26 = vsel %vm1485_vm3, 1, %v5509_v4 }
 0x152   : > { %5505 = vst [vmem:[#allocation64_spill] sm:$0xff] %v3005_v8  ;;  %5506 = vst [vmem:[#allocation65_spill] sm:$0xff] %v3007_v24  ;;  %1385 = vperm.xlu1 %2108, %v1315_v28   ;;  %1382 = vperm.xlu0 %2107, %v1314_v12   ;;  %v1317_v24 = vsel %vm1290_vm4, 1, %v5509_v4  ;;  %v1316_v8 = vsel %vm1289_vm5, 1, %v5509_v4  ;;  %v3029_v28 = vrot.slane %v2041_v40, %v2991_v20  ;;  %v3032_v12 = vld [vmem:[%s2296_s6 + $0x8] sm:$0xff]  ;;  %vm329_vm4 = vcmp.eq.s32.totalorder %v2631_v34, 1 }
 0x153   : > { %5512 = vst [vmem:[#allocation70_spill] sm:$0xff] %v3032_v12  ;;  %vm1482_vm6 = vcmp.gt.f32.partialorder %v3032_v12, %v3009_v16  ;;  %vm328_vm5 = vcmp.eq.s32.totalorder %v2633_v35, 1  ;;  %vm335_vm12 = vcmp.eq.s32.totalorder %v2661_v52, 1  ;;  %vm338_vm3 = vcmp.eq.s32.totalorder %v2683_v10, 1 }
 0x154   : > { %5511 = vst [vmem:[#allocation69_spill] sm:$0xff] %v3029_v28  ;;  %v3069_v0 = vsel %vm320_vm8, %v3029_v28, %v3018_v44  ;;  %v3091_v60 = vsel %vm321_vm9, %v3029_v28, %v3018_v44  ;;  %v3108_v61 = vsel %vm323_vm10, %v3029_v28, %v3018_v44  ;;  %v3122_v6 = vsel %vm322_vm11, %v3029_v28, %v3018_v44 }
 0x155   : > { %v3045_v32 = vpop.permute.xlu1 %919  ;;  %v3047_v40 = vpop.permute.xlu0 %916  ;;  %v3139_v7 = vsel %vm325_vm14, %v3029_v28, %v3018_v44  ;;  %v3164_v54 = vsel %vm324_vm15, %v3029_v28, %v3018_v44  ;;  %v3176_v31 = vsel %vm327_vm0, %v3029_v28, %v3018_v44  ;;  %v3192_v3 = vsel %vm326_vm1, %v3029_v28, %v3018_v44 }
 0x156   : > { %5514 = vst [vmem:[#allocation72_spill] sm:$0xff] %v3045_v32  ;;  %5515 = vst [vmem:[#allocation73_spill] sm:$0xff] %v3047_v40  ;;  %1391 = vperm.xlu1 %2108, %v1317_v24   ;;  %1388 = vperm.xlu0 %2107, %v1316_v8   ;;  %v1509_v32 = vsel %vm1482_vm6, 1, %v5509_v4  ;;  %v1508_v40 = vsel %vm1481_vm7, 1, %v5509_v4  ;;  %v3077_v8 = vld [vmem:[%s2296_s6 + $0x10] sm:$0xff]  ;;  %v3085_v24 = vsel %vm321_vm9, %v3026_v36, %v3015_v49  ;;  %vm331_vm6 = vcmp.eq.s32.totalorder %v2641_v39, 1 }
 0x157   : > { %5520 = vst [vmem:[#allocation78_spill] sm:$0xff] %v3077_v8  ;;  %vm1483_vm13 = vcmp.gt.f32.partialorder %v3077_v8, %v3009_v16  ;;  %vm330_vm7 = vcmp.eq.s32.totalorder %v2643_v42, 1  ;;  %v3250_v50 = vsel %vm331_vm6, %v3026_v36, %v3015_v49  ;;  %v3256_v57 = vsel %vm331_vm6, %v3029_v28, %v3018_v44 }
 0x158   : > { %vm333_vm10 = vcmp.eq.s32.totalorder %v2651_v47, 1  ;;  %vm332_vm11 = vcmp.eq.s32.totalorder %v2653_v48, 1  ;;  %v3264_v35 = vsel %vm330_vm7, %v3026_v36, %v3015_v49  ;;  %v3320_v25 = vsel %vm335_vm12, %v3026_v36, %v3015_v49 }
 0x159   : > { %v3100_v21 = vpop.permute.xlu1 %925  ;;  %v3102_v55 = vpop.permute.xlu0 %922  ;;  %v3298_v42 = vsel %vm333_vm10, %v3029_v28, %v3018_v44  ;;  %v3310_v33 = vsel %vm332_vm11, %v3029_v28, %v3018_v44  ;;  %v3326_v19 = vsel %vm335_vm12, %v3029_v28, %v3018_v44  ;;  %vm337_vm0 = vcmp.eq.s32.totalorder %v2671_v56, 1 }
 0x15a   : > { %5521 = vst [vmem:[#allocation79_spill] sm:$0xff] %v3100_v21  ;;  %5522 = vst [vmem:[#allocation80_spill] sm:$0xff] %v3102_v55  ;;  %1537 = vperm.xlu1 %2108, %v1509_v32   ;;  %1534 = vperm.xlu0 %2107, %v1508_v40   ;;  %v1510_v55 = vsel %vm1483_vm13, 1, %v5509_v4  ;;  %v3135_v32 = vsel %vm325_vm14, %v3026_v36, %v3015_v49  ;;  %v2047_v40 = vld [vmem:[%s5327_s2 + $0x4] ss:$8 sm:$0x3] }
 0x15b   : > { %v3145_v21 = vld [vmem:[%s2296_s6 + $0x28] sm:$0xff]  ;;  %v3198_v23 = vrot.slane %v2047_v40, %v2989_v29  ;;  %v3210_v34 = vrot.slane %v2047_v40, %v2991_v20  ;;  %v3234_v40 = vsel %vm328_vm5, %v3026_v36, %v3015_v49  ;;  %vm334_vm13 = vcmp.eq.s32.totalorder %v2663_v53, 1 }
 0x15c   : > { %5523 = vst [vmem:[#allocation81_spill] sm:$0xff] %v3145_v21  ;;  %vm1486_vm2 = vcmp.gt.f32.partialorder %v3145_v21, %v3009_v16  ;;  %vm336_vm1 = vcmp.eq.s32.totalorder %v2673_v59, 1  ;;  %v3334_v48 = vsel %vm334_vm13, %v3026_v36, %v3015_v49  ;;  %v3368_v53 = vsel %vm337_vm0, %v3029_v28, %v3018_v44 }
 0x15d   : > { %v3178_v2 = vpop.permute.xlu1 %931  ;;  %v3180_v58 = vpop.permute.xlu0 %928  ;;  %5527 = vst [vmem:[#allocation85_spill] sm:$0xff] %v3198_v23  ;;  %5528 = vst [vmem:[#allocation86_spill] sm:$0xff] %v3210_v34  ;;  %v3228_v23 = vsel %vm329_vm4, %v3029_v28, %v3018_v44  ;;  %v3240_v34 = vsel %vm328_vm5, %v3029_v28, %v3018_v44  ;;  %vm341_vm6 = vcmp.eq.s32.totalorder %v2691_v22, 1  ;;  %v3404_v59 = vsel %vm338_vm3, %v3026_v36, %v3015_v49 }
 0x15e   : > { %5525 = vst [vmem:[#allocation83_spill] sm:$0xff] %v3178_v2  ;;  %5526 = vst [vmem:[#allocation84_spill] sm:$0xff] %v3180_v58  ;;  %1543 = vperm.xlu1 %2108, %v1511_v14   ;;  %1540 = vperm.xlu0 %2107, %v1510_v55   ;;  %v1513_v58 = vsel %vm1486_vm2, 1, %v5509_v4  ;;  %v3213_v55 = vld [vmem:[%s2296_s6 + $0x38] sm:$0xff]  ;;  %v3218_v14 = vld [vmem:[%s2296_s6 + $0x30] sm:$0xff]  ;;  %v3224_v2 = vsel %vm329_vm4, %v3026_v36, %v3015_v49  ;;  %vm339_vm2 = vcmp.eq.s32.totalorder %v2681_v1, 1 }
 0x15f   : > { %5529 = vst [vmem:[#allocation87_spill] sm:$0xff] %v3213_v55  ;;  %vm1488_vm8 = vcmp.gt.f32.partialorder %v3213_v55, %v3009_v16  ;;  %5530 = vst [vmem:[#allocation88_spill] sm:$0xff] %v3218_v14  ;;  %vm1487_vm9 = vcmp.gt.f32.partialorder %v3218_v14, %v3009_v16  ;;  %v3304_v55 = vsel %vm332_vm11, %v3026_v36, %v3015_v49  ;;  %vm537_vm12 = vcmp.eq.s32.totalorder %v2721_v63, 1 }
 0x160   : > { %v1515_v39 = vsel %vm1488_vm8, 1, %v5509_v4  ;;  %v1514_v47 = vsel %vm1487_vm9, 1, %v5509_v4  ;;  %5540 = vst [vmem:[#allocation98_spill] sm:$0xff] %v3368_v53  ;;  %v3390_v53 = vsel %vm339_vm2, %v3026_v36, %v3015_v49  ;;  %vm342_vm8 = vcmp.eq.s32.totalorder %v2703_v43, 1 }
 0x161   : > { %v3242_v18 = vpop.permute.xlu1 %937  ;;  %v3244_v62 = vpop.permute.xlu0 %934  ;;  %vm535_vm9 = vcmp.eq.s32.totalorder %v2711_v51, 1  ;;  %v3438_v10 = vsel %vm341_vm6, %v3029_v28, %v3018_v44  ;;  %v3511_v51 = vsel %vm537_vm12, %v3052_v37, %v3122_v6  ;;  %v5552_v6 = vld [vmem:[#allocation14_spill] sm:$0xff] }
 0x162   : > { %5531 = vst [vmem:[#allocation89_spill] sm:$0xff] %v3242_v18  ;;  %5532 = vst [vmem:[#allocation90_spill] sm:$0xff] %v3244_v62  ;;  %1549 = vperm.xlu1 %2108, %v1513_v58   ;;  %1546 = vperm.xlu0 %2107, %v1512_v26   ;;  %v3279_v58 = vsel %vm330_vm7, %v3029_v28, %v3018_v44  ;;  %v3283_v26 = vld [vmem:[%s2296_s6 + $0x48] sm:$0xff]  ;;  %v3288_v62 = vld [vmem:[%s2296_s6 + $0x40] sm:$0xff]  ;;  %v3294_v18 = vsel %vm333_vm10, %v3026_v36, %v3015_v49  ;;  %vm340_vm7 = vcmp.eq.s32.totalorder %v2693_v30, 1 }
 0x163   : > { %5533 = vst [vmem:[#allocation91_spill] sm:$0xff] %v3283_v26  ;;  %vm1490_vm14 = vcmp.gt.f32.partialorder %v3283_v26, %v3009_v16  ;;  %5534 = vst [vmem:[#allocation92_spill] sm:$0xff] %v3288_v62  ;;  %vm1489_vm15 = vcmp.gt.f32.partialorder %v3288_v62, %v3009_v16  ;;  %v3374_v26 = vsel %vm336_vm1, %v3026_v36, %v3015_v49 }
 0x164   : > { %v1517_v52 = vsel %vm1490_vm14, 1, %v5509_v4  ;;  %v1516_v56 = vsel %vm1489_vm15, 1, %v5509_v4  ;;  %v3380_v62 = vsel %vm336_vm1, %v3029_v28, %v3018_v44  ;;  %5545 = vst [vmem:[#allocation103_spill] sm:$0xff] %v3438_v10  ;;  %v3461_v10 = vsel %vm342_vm8, %v3026_v36, %v3015_v49 }
 0x165   : > { %v3312_v21 = vpop.permute.xlu1 %943  ;;  %v3314_v14 = vpop.permute.xlu0 %940  ;;  %v3474_v30 = vsel %vm535_vm9, %v3043_v41, %v3065_v5  ;;  %vm539_vm14 = vcmp.eq.s32.totalorder %v2731_v27, 1  ;;  %v3495_v5 = vsel %vm537_vm12, %v3043_v41, %v3114_v17  ;;  %vm538_vm1 = vcmp.eq.s32.totalorder %v2733_v46, 1  ;;  %v5551_v46 = vld [vmem:[#allocation13_spill] sm:$0xff] }
 0x166   : > { %5535 = vst [vmem:[#allocation93_spill] sm:$0xff] %v3312_v21  ;;  %5536 = vst [vmem:[#allocation94_spill] sm:$0xff] %v3314_v14  ;;  %1555 = vperm.xlu1 %2108, %v1515_v39   ;;  %1552 = vperm.xlu0 %2107, %v1514_v47   ;;  %v3349_v39 = vsel %vm334_vm13, %v3029_v28, %v3018_v44  ;;  %v3353_v47 = vld [vmem:[%s2296_s6 + $0x58] sm:$0xff]  ;;  %v3358_v14 = vld [vmem:[%s2296_s6 + $0x50] sm:$0xff]  ;;  %v3364_v21 = vsel %vm337_vm0, %v3026_v36, %v3015_v49  ;;  %vm536_vm13 = vcmp.eq.s32.totalorder %v2723_v11, 1 }
 0x167   : > { %5537 = vst [vmem:[#allocation95_spill] sm:$0xff] %v3353_v47  ;;  %vm1492_vm4 = vcmp.gt.f32.partialorder %v3353_v47, %v3009_v16  ;;  %5538 = vst [vmem:[#allocation96_spill] sm:$0xff] %v3358_v14  ;;  %vm1491_vm5 = vcmp.gt.f32.partialorder %v3358_v14, %v3009_v16  ;;  %v3444_v47 = vsel %vm340_vm7, %v3026_v36, %v3015_v49 }
 0x168   : > { %5539 = vst [vmem:[#allocation97_spill] sm:$0xff] %v3364_v21  ;;  %v3396_v21 = vsel %vm339_vm2, %v3029_v28, %v3018_v44  ;;  %v1519_v1 = vsel %vm1492_vm4, 1, %v5509_v4  ;;  %v1518_v22 = vsel %vm1491_vm5, 1, %v5509_v4  ;;  %v3489_v11 = vsel %vm535_vm9, %v3052_v37, %v3069_v0 }
 0x169   : > { %v3382_v12 = vpop.permute.xlu1 %949  ;;  %v3384_v8 = vpop.permute.xlu0 %946  ;;  %5543 = vst [vmem:[#allocation101_spill] sm:$0xff] %v3396_v21  ;;  %v3515_v17 = vsel %vm536_vm13, %v3043_v41, %v3085_v24  ;;  %v3519_v0 = vsel %vm536_vm13, %v3052_v37, %v3091_v60  ;;  %v3530_v63 = vsel %vm539_vm14, %v3043_v41, %v3158_v13  ;;  %v3536_v24 = vsel %vm539_vm14, %v3052_v37, %v3164_v54  ;;  %v5550_v60 = vld [vmem:[#allocation12_spill] sm:$0xff] }
 0x16a   : > { %5541 = vst [vmem:[#allocation99_spill] sm:$0xff] %v3382_v12  ;;  %5542 = vst [vmem:[#allocation100_spill] sm:$0xff] %v3384_v8  ;;  %1561 = vperm.xlu1 %2108, %v1517_v52   ;;  %1558 = vperm.xlu0 %2107, %v1516_v56   ;;  %v3419_v52 = vsel %vm338_vm3, %v3029_v28, %v3018_v44  ;;  %v3423_v56 = vld [vmem:[%s2296_s6 + $0x68] sm:$0xff]  ;;  %v3428_v8 = vld [vmem:[%s2296_s6 + $0x60] sm:$0xff]  ;;  %v3434_v12 = vsel %vm341_vm6, %v3026_v36, %v3015_v49  ;;  %vm541_vm2 = vcmp.eq.s32.totalorder %v5550_v60, 1 }
 0x16b   : > { %vm1494_vm10 = vcmp.gt.f32.partialorder %v3423_v56, %v3009_v16  ;;  %vm1493_vm11 = vcmp.gt.f32.partialorder %v3428_v8, %v3009_v16  ;;  %5544 = vst [vmem:[#allocation102_spill] sm:$0xff] %v3434_v12  ;;  %v3455_v12 = vsel %vm340_vm7, %v3029_v28, %v3018_v44  ;;  %vm540_vm3 = vcmp.eq.s32.totalorder %v5551_v46, 1  ;;  %v5553_v49 = vld [vmem:[#allocation15_spill] sm:$0xff]  ;;  %v3564_v60 = vld [vmem:[%s2296_s6 + $0x80] sm:$0xff] }
 0x16c   : > { %v1521_v36 = vsel %vm1494_vm10, 1, %v5509_v4  ;;  %v1520_v43 = vsel %vm1493_vm11, 1, %v5509_v4  ;;  %vm543_vm4 = vcmp.eq.s32.totalorder %v5552_v6, 1  ;;  %vm542_vm5 = vcmp.eq.s32.totalorder %v5553_v49, 1  ;;  %v5563_v49 = vld [vmem:[#allocation19_spill] sm:$0xff] }
 0x16d   : > { %v3447_v14 = vpop.permute.xlu1 %955  ;;  %v3449_v21 = vpop.permute.xlu0 %952  ;;  %v3552_v54 = vsel %vm538_vm1, %v3043_v41, %v3097_v38  ;;  %vm1497_vm7 = vcmp.gt.f32.partialorder %v3564_v60, %v3009_v16  ;;  %v3574_v38 = vsel %vm541_vm2, %v3052_v37, %v3192_v3  ;;  %v3611_v46 = vsel %vm542_vm5, %v3043_v41, %v3170_v9 }
 0x16e   : > { %5546 = vst [vmem:[#allocation104_spill] sm:$0xff] %v3447_v14  ;;  %5547 = vst [vmem:[#allocation105_spill] sm:$0xff] %v3449_v21  ;;  %v3467_v14 = vsel %vm342_vm8, %v3029_v28, %v3018_v44  ;;  %1567 = vperm.xlu1 %2108, %v1519_v1   ;;  %1564 = vperm.xlu0 %2107, %v1518_v22   ;;  %v3498_v1 = vld [vmem:[%s2296_s6 + $0x78] sm:$0xff]  ;;  %v3503_v22 = vld [vmem:[%s2296_s6 + $0x70] sm:$0xff]  ;;  %v1524_v9 = vsel %vm1497_vm7, 1, %v5509_v4  ;;  %vm546_vm13 = vcmp.eq.s32.totalorder %v5563_v49, 1 }
 0x16f   : > { %vm1496_vm15 = vcmp.gt.f32.partialorder %v3498_v1, %v3009_v16  ;;  %vm1495_vm0 = vcmp.gt.f32.partialorder %v3503_v22, %v3009_v16  ;;  %v5574_v49 = vld [vmem:[#allocation23_spill] sm:$0xff] }
 0x170   : > { %v1523_v13 = vsel %vm1496_vm15, 1, %v5509_v4  ;;  %v1522_v27 = vsel %vm1495_vm0, 1, %v5509_v4 }
 0x171   : > { %v3522_v28 = vpop.permute.xlu1 %961  ;;  %v3524_v44 = vpop.permute.xlu0 %958 }
 0x172   : > { %5548 = vst [vmem:[#allocation106_spill] sm:$0xff] %v3522_v28  ;;  %5549 = vst [vmem:[#allocation107_spill] sm:$0xff] %v3524_v44  ;;  %1573 = vperm.xlu1 %2108, %v1521_v36   ;;  %1570 = vperm.xlu0 %2107, %v1520_v43   ;;  %v3556_v36 = vsel %vm538_vm1, %v3052_v37, %v3108_v61  ;;  %v3559_v43 = vld [vmem:[%s2296_s6 + $0x88] sm:$0xff]  ;;  %v3570_v44 = vsel %vm541_vm2, %v3043_v41, %v3186_v15 }
 0x173   : > { %5554 = vst [vmem:[#allocation12_spill] sm:$0xff] %v3559_v43  ;;  %vm1498_vm6 = vcmp.gt.f32.partialorder %v3559_v43, %v3009_v16  ;;  %v3580_v61 = vsel %vm540_vm3, %v3043_v41, %v3135_v32  ;;  %v3586_v28 = vsel %vm540_vm3, %v3052_v37, %v3139_v7  ;;  %v2049_v15 = vld [vmem:[%s5327_s2 + $0x5] ss:$8 sm:$0x3]  ;;  %v3599_v32 = vsel %vm543_vm4, %v3043_v41, %v3234_v40 }
 0x174   : > { %5557 = vst [vmem:[#allocation15_spill] sm:$0xff] %v3599_v32  ;;  %v3605_v7 = vsel %vm543_vm4, %v3052_v37, %v3240_v34  ;;  %v5560_v40 = vld [vmem:[#allocation17_spill] sm:$0xff]  ;;  %v1525_v34 = vsel %vm1498_vm6, 1, %v5509_v4  ;;  %v3633_v6 = vrot.slane %v2049_v15, %v2989_v29  ;;  %vm550_vm3 = vcmp.eq.s32.totalorder %v5574_v49, 1 }
 0x175   : > { %v3591_v21 = vpop.permute.xlu1 %1107  ;;  %v3593_v3 = vpop.permute.xlu0 %1104  ;;  %5558 = vst [vmem:[#allocation108_spill] sm:$0xff] %v3605_v7  ;;  %vm544_vm9 = vcmp.eq.s32.totalorder %v5560_v40, 1  ;;  %v3687_v40 = vld [vmem:[%s2296_s6 + $0xa8] sm:$0xff] }
 0x176   : > { %5555 = vst [vmem:[#allocation13_spill] sm:$0xff] %v3591_v21  ;;  %5556 = vst [vmem:[#allocation14_spill] sm:$0xff] %v3593_v3  ;;  %v5559_v21 = vld [vmem:[#allocation16_spill] sm:$0xff]  ;;  %1579 = vperm.xlu1 %2108, %v1523_v13   ;;  %1576 = vperm.xlu0 %2107, %v1522_v27   ;;  %v5561_v3 = vld [vmem:[#allocation18_spill] sm:$0xff]  ;;  %vm1502_vm0 = vcmp.gt.f32.partialorder %v3687_v40, %v3009_v16 }
 0x177   : > { %vm545_vm8 = vcmp.eq.s32.totalorder %v5559_v21, 1  ;;  %vm547_vm10 = vcmp.eq.s32.totalorder %v5561_v3, 1  ;;  %v3630_v21 = vsel %vm542_vm5, %v3052_v37, %v3176_v31  ;;  %5562 = vst [vmem:[#allocation16_spill] sm:$0xff] %v3633_v6  ;;  %v3636_v13 = vld [vmem:[%s2296_s6 + $0x98] sm:$0xff]  ;;  %v3641_v27 = vld [vmem:[%s2296_s6 + $0x90] sm:$0xff]  ;;  %v3655_v6 = vrot.slane %v2049_v15, %v2991_v20 }
 0x178   : > { %vm1500_vm11 = vcmp.gt.f32.partialorder %v3636_v13, %v3009_v16  ;;  %vm1499_vm12 = vcmp.gt.f32.partialorder %v3641_v27, %v3009_v16  ;;  %v3647_v43 = vsel %vm545_vm8, %v3043_v41, %v3264_v35  ;;  %v3651_v31 = vsel %vm545_vm8, %v3052_v37, %v3279_v58  ;;  %v5573_v3 = vld [vmem:[#allocation22_spill] sm:$0xff] }
 0x179   : > { %5564 = vst [vmem:[#allocation17_spill] sm:$0xff] %v3655_v6  ;;  %v3657_v7 = vpop.permute.xlu1 %1113  ;;  %v3659_v32 = vpop.permute.xlu0 %1110  ;;  %v3665_v35 = vsel %vm544_vm9, %v3043_v41, %v3224_v2  ;;  %v3671_v58 = vsel %vm544_vm9, %v3052_v37, %v3228_v23  ;;  %v3677_v15 = vsel %vm547_vm10, %v3043_v41, %v3304_v55  ;;  %v5567_v6 = vld [vmem:[#allocation20_spill] sm:$0xff]  ;;  %v1527_v2 = vsel %vm1500_vm11, 1, %v5509_v4 }
 0x17a   : > { %5565 = vst [vmem:[#allocation18_spill] sm:$0xff] %v3657_v7  ;;  %5566 = vst [vmem:[#allocation19_spill] sm:$0xff] %v3659_v32  ;;  %vm549_vm14 = vcmp.eq.s32.totalorder %v5567_v6, 1  ;;  %1585 = vperm.xlu1 %2108, %v1525_v34   ;;  %1582 = vperm.xlu0 %2107, %v1524_v9   ;;  %v5568_v7 = vld [vmem:[#allocation21_spill] sm:$0xff]  ;;  %v1526_v23 = vsel %vm1499_vm12, 1, %v5509_v4  ;;  %v3695_v55 = vsel %vm547_vm10, %v3052_v37, %v3310_v33  ;;  %v3710_v6 = vld [vmem:[%s2296_s6 + $0xa0] sm:$0xff] }
 0x17b   : > { %vm548_vm15 = vcmp.eq.s32.totalorder %v5568_v7, 1  ;;  %5569 = vst [vmem:[#allocation20_spill] sm:$0xff] %v3687_v40  ;;  %5570 = vst [vmem:[#allocation21_spill] sm:$0xff] %v3695_v55  ;;  %v3701_v34 = vsel %vm546_vm13, %v3043_v41, %v3250_v50  ;;  %v3707_v9 = vsel %vm546_vm13, %v3052_v37, %v3256_v57  ;;  %vm1501_vm1 = vcmp.gt.f32.partialorder %v3710_v6, %v3009_v16 }
 0x17c   : > { %v3716_v33 = vsel %vm549_vm14, %v3043_v41, %v3334_v48  ;;  %v3720_v50 = vsel %vm549_vm14, %v3052_v37, %v3349_v39  ;;  %vm551_vm2 = vcmp.eq.s32.totalorder %v5573_v3, 1  ;;  %v3732_v55 = vsel %vm548_vm15, %v3043_v41, %v3294_v18  ;;  %v3792_v3 = vld [vmem:[%s2296_s6 + $0xc0] sm:$0xff] }
 0x17d   : > { %5571 = vst [vmem:[#allocation109_spill] sm:$0xff] %v3716_v33  ;;  %5572 = vst [vmem:[#allocation110_spill] sm:$0xff] %v3720_v50  ;;  %v3724_v57 = vpop.permute.xlu1 %1119  ;;  %v3726_v32 = vpop.permute.xlu0 %1116  ;;  %v3738_v48 = vsel %vm548_vm15, %v3052_v37, %v3298_v42  ;;  %v1529_v39 = vsel %vm1502_vm0, 1, %v5509_v4  ;;  %v1528_v18 = vsel %vm1501_vm1, 1, %v5509_v4  ;;  %v3750_v50 = vld [vmem:[%s2296_s6 + $0xb8] sm:$0xff]  ;;  %v3755_v42 = vld [vmem:[%s2296_s6 + $0xb0] sm:$0xff]  ;;  %v3763_v7 = vsel %vm551_vm2, %v3043_v41, %v3374_v26 }
 0x17e   : > { %5575 = vst [vmem:[#allocation22_spill] sm:$0xff] %v3724_v57  ;;  %5576 = vst [vmem:[#allocation23_spill] sm:$0xff] %v3726_v32  ;;  %1591 = vperm.xlu1 %2108, %v1527_v2   ;;  %1588 = vperm.xlu0 %2107, %v1526_v23   ;;  %v3745_v57 = vstv %s3614_s7  ;;  %v5577_v32 = vld [vmem:[#allocation24_spill] sm:$0xff]  ;;  %vm1504_vm5 = vcmp.gt.f32.partialorder %v3750_v50, %v3009_v16  ;;  %vm1503_vm6 = vcmp.gt.f32.partialorder %v3755_v42, %v3009_v16  ;;  %v5580_v33 = vld [vmem:[#allocation25_spill] sm:$0xff] }
 0x17f   : > { %vm553_vm4 = vcmp.eq.s32.totalorder %v5577_v32, 1  ;;  %5578 = vst [vmem:[#allocation24_spill] sm:$0xff] %v3763_v7  ;;  %v3769_v2 = vsel %vm551_vm2, %v3052_v37, %v3380_v62  ;;  %v3775_v23 = vsel %vm550_vm3, %v3043_v41, %v3320_v25  ;;  %vm552_vm7 = vcmp.eq.s32.totalorder %v5580_v33, 1  ;;  %v5581_v7 = vld [vmem:[#allocation26_spill] sm:$0xff]  ;;  %v5585_v25 = vld [vmem:[#allocation27_spill] sm:$0xff] }
 0x180   : > { %5579 = vst [vmem:[#allocation111_spill] sm:$0xff] %v3769_v2  ;;  %v3782_v26 = vsel %vm550_vm3, %v3052_v37, %v3326_v19  ;;  %vm555_vm8 = vcmp.eq.s32.totalorder %v5581_v7, 1  ;;  %vm1696_vm9 = vcmp.gt.f32.partialorder %v3037_v45, %v3745_v57  ;;  %vm1505_vm10 = vcmp.gt.f32.partialorder %v3792_v3, %v3009_v16  ;;  %v5589_v16 = vld [vmem:[#allocation78_spill] sm:$0xff]  ;;  %v5612_v2 = vld [vmem:[#allocation92_spill] sm:$0xff] }
 0x181   : > { %v3785_v40 = vpop.permute.xlu1 %1125  ;;  %v3787_v62 = vpop.permute.xlu0 %1122  ;;  %v3800_v19 = vsel %vm553_vm4, %v3043_v41, %v3404_v59  ;;  %vm554_vm11 = vcmp.eq.s32.totalorder %v5585_v25, 1  ;;  %v1531_v45 = vsel %vm1504_vm5, 1, %v5509_v4  ;;  %v1530_v49 = vsel %vm1503_vm6, 1, %v5509_v4  ;;  %v5604_v25 = vld [vmem:[#allocation81_spill] sm:$0xff] }
 0x182   : > { %5582 = vst [vmem:[#allocation25_spill] sm:$0xff] %v3785_v40  ;;  %5583 = vst [vmem:[#allocation26_spill] sm:$0xff] %v3787_v62  ;;  %1597 = vperm.xlu1 %2108, %v1529_v39   ;;  %1594 = vperm.xlu0 %2107, %v1528_v18   ;;  %v3815_v59 = vsel %vm553_vm4, %v3052_v37, %v3419_v52  ;;  %v5587_v40 = vld [vmem:[#allocation97_spill] sm:$0xff]  ;;  %v5588_v18 = vld [vmem:[#allocation98_spill] sm:$0xff]  ;;  %vm1698_vm12 = vcmp.gt.f32.partialorder %v5589_v16, %v3745_v57  ;;  %v1723_v32 = vsel %vm1696_vm9, 1, %v5509_v4 }
 0x183   : > { %5584 = vst [vmem:[#allocation112_spill] sm:$0xff] %v3800_v19  ;;  %5586 = vst [vmem:[#allocation27_spill] sm:$0xff] %v3815_v59  ;;  %v3821_v39 = vsel %vm552_vm7, %v3043_v41, %v5587_v40  ;;  %v3827_v62 = vsel %vm552_vm7, %v3052_v37, %v5588_v18  ;;  %v3835_v52 = vsel %vm555_vm8, %v3043_v41, %v3444_v47  ;;  %v1532_v40 = vsel %vm1505_vm10, 1, %v5509_v4  ;;  %v5591_v59 = vld [vmem:[#allocation70_spill] sm:$0xff]  ;;  %v5594_v47 = vld [vmem:[#allocation28_spill] sm:$0xff] }
 0x184   : > { %5590 = vst [vmem:[#allocation97_spill] sm:$0xff] %v3835_v52  ;;  %vm1697_vm13 = vcmp.gt.f32.partialorder %v5591_v59, %v3745_v57  ;;  %v3845_v33 = vsel %vm555_vm8, %v3052_v37, %v3455_v12  ;;  %v3851_v18 = vsel %vm554_vm11, %v3043_v41, %v3390_v53  ;;  %vm557_vm14 = vcmp.eq.s32.totalorder %v5594_v47, 1  ;;  %v5595_v16 = vld [vmem:[#allocation29_spill] sm:$0xff]  ;;  %v5600_v53 = vld [vmem:[#allocation82_spill] sm:$0xff] }
 0x185   : > { %5592 = vst [vmem:[#allocation98_spill] sm:$0xff] %v3845_v33  ;;  %5593 = vst [vmem:[#allocation78_spill] sm:$0xff] %v3851_v18  ;;  %vm556_vm15 = vcmp.eq.s32.totalorder %v5595_v16, 1  ;;  %v3855_v52 = vpop.permute.xlu1 %1131  ;;  %v3857_v19 = vpop.permute.xlu0 %1128  ;;  %v5598_v59 = vld [vmem:[#allocation101_spill] sm:$0xff]  ;;  %v1725_v7 = vsel %vm1698_vm12, 1, %v5509_v4  ;;  %vm1700_vm0 = vcmp.gt.f32.partialorder %v5600_v53, %v3745_v57  ;;  %v5602_v33 = vld [vmem:[#allocation32_spill] sm:$0xff]  ;;  %vm1701_vm4 = vcmp.gt.f32.partialorder %v5604_v25, %v3745_v57 }
 0x186   : > { %5596 = vst [vmem:[#allocation70_spill] sm:$0xff] %v3855_v52  ;;  %5597 = vst [vmem:[#allocation28_spill] sm:$0xff] %v3857_v19  ;;  %v3863_v12 = vsel %vm554_vm11, %v3052_v37, %v5598_v59  ;;  %1603 = vperm.xlu1 %2108, %v1531_v45   ;;  %1600 = vperm.xlu0 %2107, %v1530_v49   ;;  %v5601_v47 = vld [vmem:[#allocation77_spill] sm:$0xff]  ;;  %vm751_vm2 = vcmp.eq.s32.totalorder %v5602_v33, 1  ;;  %v1724_v52 = vsel %vm1697_vm13, 1, %v5509_v4  ;;  %v5603_v19 = vld [vmem:[#allocation88_spill] sm:$0xff] }
 0x187   : > { %5599 = vst [vmem:[#allocation29_spill] sm:$0xff] %v3863_v12  ;;  %vm1699_vm1 = vcmp.gt.f32.partialorder %v5601_v47, %v3745_v57  ;;  %vm1702_vm3 = vcmp.gt.f32.partialorder %v5603_v19, %v3745_v57  ;;  %v3878_v45 = vsel %vm557_vm14, %v3043_v41, %v3461_v10  ;;  %v3882_v49 = vsel %vm557_vm14, %v3052_v37, %v3467_v14  ;;  %v5607_v59 = vld [vmem:[#allocation102_spill] sm:$0xff]  ;;  %v5608_v47 = vld [vmem:[#allocation33_spill] sm:$0xff]  ;;  %v5609_v12 = vld [vmem:[#allocation103_spill] sm:$0xff] }
 0x188   : > { %5605 = vst [vmem:[#allocation101_spill] sm:$0xff] %v3878_v45  ;;  %5606 = vst [vmem:[#allocation82_spill] sm:$0xff] %v3882_v49  ;;  %v3888_v53 = vsel %vm556_vm15, %v3043_v41, %v5607_v59  ;;  %vm750_vm5 = vcmp.eq.s32.totalorder %v5608_v47, 1  ;;  %v3895_v18 = vsel %vm556_vm15, %v3052_v37, %v5609_v12  ;;  %v1727_v14 = vsel %vm1700_vm0, 1, %v5509_v4  ;;  %v5613_v59 = vld [vmem:[#allocation75_spill] sm:$0xff]  ;;  %v5614_v16 = vld [vmem:[#allocation34_spill] sm:$0xff] }
 0x189   : > { %v3897_v10 = vpop.permute.xlu1 %1137  ;;  %v3899_v45 = vpop.permute.xlu0 %1134  ;;  %v1726_v49 = vsel %vm1699_vm1, 1, %v5509_v4  ;;  %vm1704_vm6 = vcmp.gt.f32.partialorder %v5612_v2, %v3745_v57  ;;  %v3909_v41 = vsel %vm751_vm2, %v5613_v59, %v3515_v17  ;;  %vm753_vm7 = vcmp.eq.s32.totalorder %v5614_v16, 1  ;;  %v5615_v37 = vld [vmem:[#allocation76_spill] sm:$0xff]  ;;  %v5618_v19 = vld [vmem:[#allocation87_spill] sm:$0xff] }
 0x18a   : > { %5610 = vst [vmem:[#allocation77_spill] sm:$0xff] %v3897_v10  ;;  %5611 = vst [vmem:[#allocation32_spill] sm:$0xff] %v3899_v45  ;;  %1749 = vperm.xlu1 %2108, %v1723_v32   ;;  %1606 = vperm.xlu0 %2107, %v1532_v40   ;;  %v1729_v12 = vsel %vm1702_vm3, 1, %v5509_v4  ;;  %v1728_v2 = vsel %vm1701_vm4, 1, %v5509_v4  ;;  %v3924_v17 = vsel %vm751_vm2, %v5615_v37, %v3519_v0  ;;  %v5617_v40 = vld [vmem:[#allocation35_spill] sm:$0xff]  ;;  %v3942_v0 = vsel %vm1704_vm6, 1, %v5509_v4 }
 0x18b   : > { %5616 = vst [vmem:[#allocation88_spill] sm:$0xff] %v3924_v17  ;;  %v3930_v32 = vsel %vm750_vm5, %v5613_v59, %v3474_v30  ;;  %vm752_vm8 = vcmp.eq.s32.totalorder %v5617_v40, 1  ;;  %vm1703_vm9 = vcmp.gt.f32.partialorder %v5618_v19, %v3745_v57  ;;  %v3939_v25 = vsel %vm750_vm5, %v5615_v37, %v3489_v11  ;;  %v5619_v33 = vld [vmem:[#allocation96_spill] sm:$0xff]  ;;  %v5620_v30 = vld [vmem:[#allocation91_spill] sm:$0xff]  ;;  %v5622_v11 = vld [vmem:[#allocation37_spill] sm:$0xff] }
 0x18c   : > { %vm1706_vm10 = vcmp.gt.f32.partialorder %v5619_v33, %v3745_v57  ;;  %vm1705_vm11 = vcmp.gt.f32.partialorder %v5620_v30, %v3745_v57  ;;  %v3950_v16 = vsel %vm753_vm7, %v5613_v59, %v3552_v54  ;;  %v3954_v19 = vsel %vm753_vm7, %v5615_v37, %v3556_v36  ;;  %v5621_v47 = vld [vmem:[#allocation36_spill] sm:$0xff]  ;;  %v5624_v36 = vld [vmem:[#allocation95_spill] sm:$0xff] }
 0x18d   : > { %vm755_vm12 = vcmp.eq.s32.totalorder %v5621_v47, 1  ;;  %vm754_vm13 = vcmp.eq.s32.totalorder %v5622_v11, 1  ;;  %v3958_v10 = vpop.permute.xlu1 %1143  ;;  %v3960_v45 = vpop.permute.xlu0 %1140  ;;  %v3966_v17 = vsel %vm752_vm8, %v5613_v59, %v3495_v5  ;;  %v1730_v54 = vsel %vm1703_vm9, 1, %v5509_v4  ;;  %v2051_v40 = vld [vmem:[%s5327_s2 + $0x6] ss:$8 sm:$0x3] }
 0x18e   : > { %5623 = vst [vmem:[#allocation81_spill] sm:$0xff] %v3958_v10  ;;  %1755 = vperm.xlu1 %2108, %v1725_v7   ;;  %1752 = vperm.xlu0 %2107, %v1724_v52   ;;  %vm1708_vm14 = vcmp.gt.f32.partialorder %v3428_v8, %v3745_v57  ;;  %vm1707_vm15 = vcmp.gt.f32.partialorder %v5624_v36, %v3745_v57  ;;  %v5625_v10 = vld [vmem:[#allocation38_spill] sm:$0xff]  ;;  %v3984_v5 = vsel %vm1706_vm10, 1, %v5509_v4  ;;  %v3990_v8 = vsel %vm1705_vm11, 1, %v5509_v4  ;;  %v5629_v11 = vld [vmem:[#allocation40_spill] sm:$0xff] }
 0x18f   : > { %v3977_v47 = vsel %vm752_vm8, %v5615_v37, %v3511_v51  ;;  %vm757_vm0 = vcmp.eq.s32.totalorder %v5625_v10, 1  ;;  %v3994_v52 = vsel %vm755_vm12, %v5613_v59, %v3580_v61  ;;  %v3998_v51 = vsel %vm755_vm12, %v5615_v37, %v3586_v28  ;;  %v5626_v10 = vld [vmem:[#allocation39_spill] sm:$0xff] }
 0x190   : > { %v4004_v7 = vsel %vm754_vm13, %v5613_v59, %v3530_v63  ;;  %vm756_vm1 = vcmp.eq.s32.totalorder %v5626_v10, 1  ;;  %v4014_v61 = vsel %vm754_vm13, %v5615_v37, %v3536_v24  ;;  %v4021_v30 = vsel %vm1708_vm14, 1, %v5509_v4 }
 0x191   : > { %v4016_v28 = vpop.permute.xlu1 %1149  ;;  %v4018_v33 = vpop.permute.xlu0 %1146  ;;  %v4024_v63 = vsel %vm1707_vm15, 1, %v5509_v4  ;;  %vm1710_vm2 = vcmp.gt.f32.partialorder %v3503_v22, %v3745_v57  ;;  %v4030_v36 = vsel %vm757_vm0, %v5613_v59, %v3611_v46  ;;  %v4034_v24 = vsel %vm757_vm0, %v5615_v37, %v3630_v21  ;;  %v5630_v46 = vld [vmem:[#allocation41_spill] sm:$0xff] }
 0x192   : > { %5627 = vst [vmem:[#allocation102_spill] sm:$0xff] %v4016_v28  ;;  %5628 = vst [vmem:[#allocation33_spill] sm:$0xff] %v4018_v33  ;;  %vm759_vm3 = vcmp.eq.s32.totalorder %v5629_v11, 1  ;;  %1761 = vperm.xlu1 %2108, %v1727_v14   ;;  %1758 = vperm.xlu0 %2107, %v1726_v49   ;;  %vm1709_vm4 = vcmp.gt.f32.partialorder %v3423_v56, %v3745_v57  ;;  %v4041_v10 = vsel %vm756_vm1, %v5613_v59, %v3570_v44  ;;  %v5643_v28 = vld [vmem:[#allocation46_spill] sm:$0xff] }
 0x193   : > { %v4045_v22 = vsel %vm756_vm1, %v5615_v37, %v3574_v38  ;;  %vm758_vm5 = vcmp.eq.s32.totalorder %v5630_v46, 1  ;;  %v4049_v21 = vrot.slane %v2051_v40, %v2989_v29  ;;  %v4052_v11 = vrot.slane %v2051_v40, %v2991_v20  ;;  %v5631_v38 = vld [vmem:[#allocation42_spill] sm:$0xff]  ;;  %v5635_v20 = vld [vmem:[#allocation108_spill] sm:$0xff]  ;;  %v5636_v29 = vld [vmem:[#allocation43_spill] sm:$0xff] }
 0x194   : > { %v4055_v49 = vsel %vm1710_vm2, 1, %v5509_v4  ;;  %vm1712_vm6 = vcmp.gt.f32.partialorder %v3564_v60, %v3745_v57  ;;  %vm1711_vm7 = vcmp.gt.f32.partialorder %v3498_v1, %v3745_v57  ;;  %v4063_v44 = vsel %vm759_vm3, %v5613_v59, %v3665_v35  ;;  %v5634_v60 = vld [vmem:[#allocation15_spill] sm:$0xff] }
 0x195   : > { %v4067_v56 = vsel %vm759_vm3, %v5615_v37, %v3671_v58  ;;  %vm761_vm8 = vcmp.eq.s32.totalorder %v5631_v38, 1  ;;  %v4070_v14 = vpop.permute.xlu1 %1155  ;;  %v4072_v40 = vpop.permute.xlu0 %1152  ;;  %v4075_v46 = vsel %vm1709_vm4, 1, %v5509_v4  ;;  %v4079_v1 = vsel %vm758_vm5, %v5613_v59, %v5634_v60  ;;  %v5637_v58 = vld [vmem:[#allocation44_spill] sm:$0xff] }
 0x196   : > { %5632 = vst [vmem:[#allocation103_spill] sm:$0xff] %v4070_v14  ;;  %5633 = vst [vmem:[#allocation92_spill] sm:$0xff] %v4072_v40  ;;  %v4083_v35 = vsel %vm758_vm5, %v5615_v37, %v5635_v20  ;;  %vm760_vm9 = vcmp.eq.s32.totalorder %v5636_v29, 1  ;;  %1767 = vperm.xlu1 %2108, %v1729_v12   ;;  %1764 = vperm.xlu0 %2107, %v1728_v2   ;;  %vm1714_vm10 = vcmp.gt.f32.partialorder %v3641_v27, %v3745_v57  ;;  %v5638_v60 = vld [vmem:[#allocation12_spill] sm:$0xff]  ;;  %v5639_v27 = vld [vmem:[#allocation45_spill] sm:$0xff] }
 0x197   : > { %vm763_vm11 = vcmp.eq.s32.totalorder %v5637_v58, 1  ;;  %v4090_v38 = vsel %vm1712_vm6, 1, %v5509_v4  ;;  %v4093_v14 = vsel %vm1711_vm7, 1, %v5509_v4  ;;  %vm1713_vm12 = vcmp.gt.f32.partialorder %v5638_v60, %v3745_v57 }
 0x198   : > { %v4099_v20 = vsel %vm761_vm8, %v5613_v59, %v3701_v34  ;;  %v4103_v29 = vsel %vm761_vm8, %v5615_v37, %v3707_v9  ;;  %vm762_vm13 = vcmp.eq.s32.totalorder %v5639_v27, 1  ;;  %vm1716_vm14 = vcmp.gt.f32.partialorder %v3710_v6, %v3745_v57  ;;  %v5649_v27 = vld [vmem:[#allocation109_spill] sm:$0xff] }
 0x199   : > { %v4110_v12 = vsel %vm760_vm9, %v5613_v59, %v3647_v43  ;;  %v4114_v2 = vsel %vm760_vm9, %v5615_v37, %v3651_v31  ;;  %v4116_v40 = vpop.permute.xlu1 %1161  ;;  %v4118_v34 = vpop.permute.xlu0 %1158  ;;  %v4121_v9 = vsel %vm1714_vm10, 1, %v5509_v4  ;;  %vm1715_vm15 = vcmp.gt.f32.partialorder %v3636_v13, %v3745_v57  ;;  %v5644_v31 = vld [vmem:[#allocation47_spill] sm:$0xff] }
 0x19a   : > { %5640 = vst [vmem:[#allocation34_spill] sm:$0xff] %v4116_v40  ;;  %5641 = vst [vmem:[#allocation35_spill] sm:$0xff] %v4118_v34  ;;  %v4129_v43 = vsel %vm763_vm11, %v5613_v59, %v3732_v55  ;;  %vm765_vm0 = vcmp.eq.s32.totalorder %v5643_v28, 1  ;;  %vm764_vm1 = vcmp.eq.s32.totalorder %v5644_v31, 1  ;;  %1773 = vperm.xlu1 %2108, %v3942_v0   ;;  %1770 = vperm.xlu0 %2107, %v1730_v54   ;;  %v4138_v40 = vsel %vm1713_vm12, 1, %v5509_v4  ;;  %v5646_v0 = vld [vmem:[#allocation21_spill] sm:$0xff] }
 0x19b   : > { %5642 = vst [vmem:[#allocation87_spill] sm:$0xff] %v4129_v43  ;;  %v4144_v13 = vsel %vm763_vm11, %v5615_v37, %v3738_v48  ;;  %v4150_v55 = vsel %vm762_vm13, %v5613_v59, %v3677_v15  ;;  %v4156_v54 = vsel %vm762_vm13, %v5615_v37, %v5646_v0  ;;  %v4162_v28 = vsel %vm1716_vm14, 1, %v5509_v4  ;;  %v5647_v48 = vld [vmem:[#allocation48_spill] sm:$0xff]  ;;  %v5650_v34 = vld [vmem:[#allocation49_spill] sm:$0xff]  ;;  %v5652_v43 = vld [vmem:[#allocation110_spill] sm:$0xff] }
 0x19c   : > { %5645 = vst [vmem:[#allocation96_spill] sm:$0xff] %v4144_v13  ;;  %vm767_vm2 = vcmp.eq.s32.totalorder %v5647_v48, 1  ;;  %v4166_v58 = vsel %vm1715_vm15, 1, %v5509_v4  ;;  %vm1718_vm3 = vcmp.gt.f32.partialorder %v3755_v42, %v3745_v57  ;;  %v5648_v15 = vld [vmem:[#allocation20_spill] sm:$0xff]  ;;  %v4174_v60 = vsel %vm765_vm0, %v5613_v59, %v3775_v23  ;;  %v5657_v31 = vld [vmem:[#allocation111_spill] sm:$0xff] }
 0x19d   : > { %vm1717_vm4 = vcmp.gt.f32.partialorder %v5648_v15, %v3745_v57  ;;  %v4178_v6 = vsel %vm765_vm0, %v5615_v37, %v3782_v26  ;;  %v4184_v0 = vsel %vm764_vm1, %v5613_v59, %v5649_v27  ;;  %vm766_vm5 = vcmp.eq.s32.totalorder %v5650_v34, 1  ;;  %v4187_v13 = vpop.permute.xlu1 %1167  ;;  %v4189_v33 = vpop.permute.xlu0 %1164  ;;  %v5653_v26 = vld [vmem:[#allocation50_spill] sm:$0xff]  ;;  %v5658_v27 = vld [vmem:[#allocation52_spill] sm:$0xff]  ;;  %v5661_v15 = vld [vmem:[#allocation53_spill] sm:$0xff] }
 0x19e   : > { %5651 = vst [vmem:[#allocation91_spill] sm:$0xff] %v4187_v13  ;;  %v4195_v23 = vsel %vm764_vm1, %v5615_v37, %v5652_v43  ;;  %vm769_vm6 = vcmp.eq.s32.totalorder %v5653_v26, 1  ;;  %1779 = vperm.xlu1 %2108, %v3984_v5   ;;  %1776 = vperm.xlu0 %2107, %v3990_v8   ;;  %vm1720_vm7 = vcmp.gt.f32.partialorder %v3792_v3, %v3745_v57  ;;  %v5654_v43 = vld [vmem:[#allocation51_spill] sm:$0xff]  ;;  %v4215_v5 = vsel %vm1718_vm3, 1, %v5509_v4  ;;  %v5659_v13 = vld [vmem:[#allocation78_spill] sm:$0xff] }
 0x19f   : > { %vm1719_vm8 = vcmp.gt.f32.partialorder %v3750_v50, %v3745_v57  ;;  %v4208_v34 = vsel %vm767_vm2, %v5613_v59, %v3821_v39  ;;  %vm768_vm9 = vcmp.eq.s32.totalorder %v5654_v43, 1  ;;  %v4221_v3 = vsel %vm1717_vm4, 1, %v5509_v4  ;;  %v5656_v39 = vld [vmem:[#allocation24_spill] sm:$0xff] }
 0x1a0   : > { %v4227_v50 = vsel %vm767_vm2, %v5615_v37, %v3827_v62  ;;  %v4231_v8 = vsel %vm766_vm5, %v5613_v59, %v5656_v39  ;;  %v4235_v42 = vsel %vm766_vm5, %v5615_v37, %v5657_v31  ;;  %vm771_vm10 = vcmp.eq.s32.totalorder %v5658_v27, 1 }
 0x1a1   : > { %5655 = vst [vmem:[#allocation36_spill] sm:$0xff] %v4227_v50  ;;  %v4242_v57 = vsel %vm769_vm6, %v5613_v59, %v5659_v13  ;;  %vm770_vm11 = vcmp.eq.s32.totalorder %v5661_v15, 1  ;;  %v4245_v62 = vpop.permute.xlu1 %1173  ;;  %v4247_v48 = vpop.permute.xlu0 %1170  ;;  %v4250_v39 = vsel %vm1720_vm7, 1, %v5509_v4  ;;  %v4253_v31 = vsel %vm1719_vm8, 1, %v5509_v4  ;;  %v5664_v50 = vld [vmem:[#allocation29_spill] sm:$0xff]  ;;  %v5666_v13 = vld [vmem:[#allocation112_spill] sm:$0xff] }
 0x1a2   : > { %5660 = vst [vmem:[#allocation37_spill] sm:$0xff] %v4242_v57  ;;  %5662 = vst [vmem:[#allocation95_spill] sm:$0xff] %v4245_v62  ;;  %v4259_v27 = vsel %vm769_vm6, %v5615_v37, %v5664_v50  ;;  %v4265_v57 = vsel %vm768_vm9, %v5613_v59, %v5666_v13  ;;  %v5667_v62 = vld [vmem:[#allocation56_spill] sm:$0xff]  ;;  %1785 = vperm.xlu1 %2108, %v4021_v30   ;;  %1782 = vperm.xlu0 %2107, %v4024_v63   ;;  %v5669_v4 = vld [vmem:[#allocation27_spill] sm:$0xff] }
 0x1a3   : > { %5663 = vst [vmem:[#allocation38_spill] sm:$0xff] %v4247_v48  ;;  %5665 = vst [vmem:[#allocation39_spill] sm:$0xff] %v4259_v27  ;;  %vm965_vm12 = vcmp.eq.s32.totalorder %v5667_v62, 1  ;;  %v5668_v48 = vld [vmem:[#allocation58_spill] sm:$0xff]  ;;  %v4275_v26 = vsel %vm768_vm9, %v5615_v37, %v5669_v4  ;;  %v4279_v50 = vsel %vm771_vm10, %v5613_v59, %v3888_v53  ;;  %v4283_v13 = vsel %vm771_vm10, %v5615_v37, %v3895_v18  ;;  %v5672_v62 = vld [vmem:[#allocation59_spill] sm:$0xff] }
 0x1a4   : > { %vm967_vm13 = vcmp.eq.s32.totalorder %v5668_v48, 1  ;;  %5670 = vst [vmem:[#allocation40_spill] sm:$0xff] %v4279_v50  ;;  %5671 = vst [vmem:[#allocation41_spill] sm:$0xff] %v4283_v13  ;;  %vm966_vm14 = vcmp.eq.s32.totalorder %v5672_v62, 1  ;;  %v5673_v27 = vld [vmem:[#allocation97_spill] sm:$0xff]  ;;  %v5674_v63 = vld [vmem:[#allocation98_spill] sm:$0xff] }
 0x1a5   : > { %v4290_v30 = vsel %vm770_vm11, %v5613_v59, %v5673_v27  ;;  %v4296_v43 = vsel %vm770_vm11, %v5615_v37, %v5674_v63  ;;  %v5676_v53 = vld [vmem:[#allocation60_spill] sm:$0xff]  ;;  %v5677_v4 = vld [vmem:[#allocation61_spill] sm:$0xff]  ;;  %v5679_v62 = vld [vmem:[#allocation86_spill] sm:$0xff]  ;;  %v4309_v15 = vpop.permute.xlu1 %1319  ;;  %v4311_v63 = vpop.permute.xlu0 %1176 }
 0x1a6   : > { %5675 = vst [vmem:[#allocation42_spill] sm:$0xff] %v4296_v43  ;;  %vm969_vm15 = vcmp.eq.s32.totalorder %v5676_v53, 1  ;;  %vm968_vm0 = vcmp.eq.s32.totalorder %v5677_v4, 1  ;;  %v5678_v18 = vld [vmem:[#allocation85_spill] sm:$0xff]  ;;  %v1004_v50 = vsel %vm965_vm12, %v5679_v62, %v3939_v25  ;;  %v5680_v59 = vld [vmem:[#allocation64_spill] sm:$0xff]  ;;  %5681 = vst [vmem:[#allocation15_spill] sm:$0xff] %v4309_v15  ;;  %v1008_v53 = vsel %vm967_vm13, %v5679_v62, %v3977_v47  ;;  %1791 = vperm.xlu1 %2108, %v4055_v49  }
 0x1a7   : > { %v1003_v13 = vsel %vm965_vm12, %v5678_v18, %v3930_v32  ;;  %v1007_v27 = vsel %vm967_vm13, %v5678_v18, %v3966_v17  ;;  %vm971_vm1 = vcmp.eq.s32.totalorder %v5680_v59, 1  ;;  %5682 = vst [vmem:[#allocation108_spill] sm:$0xff] %v4311_v63  ;;  %v1005_v32 = vsel %vm966_vm14, %v5678_v18, %v3909_v41  ;;  %v5683_v25 = vld [vmem:[#allocation88_spill] sm:$0xff]  ;;  %v5684_v43 = vld [vmem:[#allocation65_spill] sm:$0xff]  ;;  %1788 = vperm.xlu0 %2107, %v4075_v46   ;;  %v5685_v47 = vld [vmem:[#allocation19_spill] sm:$0xff] }
 0x1a8   : > { %v1006_v37 = vsel %vm966_vm14, %v5679_v62, %v5683_v25  ;;  %vm970_vm2 = vcmp.eq.s32.totalorder %v5684_v43, 1  ;;  %v1011_v59 = vsel %vm969_vm15, %v5678_v18, %v4004_v7  ;;  %v1012_v17 = vsel %vm969_vm15, %v5679_v62, %v4014_v61  ;;  %v5686_v61 = vld [vmem:[#allocation72_spill] sm:$0xff]  ;;  %v5687_v43 = vld [vmem:[#allocation73_spill] sm:$0xff]  ;;  %v5688_v4 = vld [vmem:[#allocation18_spill] sm:$0xff] }
 0x1a9   : > { %v1009_v41 = vsel %vm968_vm0, %v5678_v18, %v3950_v16  ;;  %vm1180_vm3 = vcmp.eq.s32.totalorder %v5685_v47, 1  ;;  %v1010_v49 = vsel %vm968_vm0, %v5679_v62, %v3954_v19  ;;  %v4339_v46 = vsel %vm971_vm1, %v5678_v18, %v4041_v10  ;;  %v1326_v19 = vpop.permute.xlu1 %1325  ;;  %v4352_v25 = vpop.permute.xlu0 %1322  ;;  %v5689_v10 = vld [vmem:[#allocation16_spill] sm:$0xff]  ;;  %v5690_v15 = vld [vmem:[#allocation17_spill] sm:$0xff]  ;;  %v5691_v63 = vld [vmem:[#allocation23_spill] sm:$0xff] }
 0x1aa   : > { %v4343_v7 = vsel %vm971_vm1, %v5679_v62, %v4045_v22  ;;  %vm973_vm4 = vcmp.eq.s32.totalorder %v5686_v61, 1  ;;  %v1013_v16 = vsel %vm970_vm2, %v5678_v18, %v3994_v52  ;;  %v1014_v48 = vsel %vm970_vm2, %v5679_v62, %v3998_v51  ;;  %1797 = vperm.xlu1 %2108, %v4090_v38   ;;  %v5694_v38 = vld [vmem:[#allocation80_spill] sm:$0xff] }
 0x1ab   : > { %vm972_vm5 = vcmp.eq.s32.totalorder %v5687_v43, 1  ;;  %vm1181_vm6 = vcmp.eq.s32.totalorder %v5688_v4, 1  ;;  %v1218_v47 = vsel %vm1180_vm3, %v5689_v10, %v1003_v13  ;;  %v1219_v22 = vsel %vm1180_vm3, %v5690_v15, %v1004_v50  ;;  %1794 = vperm.xlu0 %2107, %v4093_v14   ;;  %v5697_v4 = vld [vmem:[#allocation83_spill] sm:$0xff] }
 0x1ac   : > { %vm1182_vm7 = vcmp.eq.s32.totalorder %v5691_v63, 1  ;;  %vm1395_vm8 = vcmp.eq.s32.totalorder %v1326_v19, 1  ;;  %v4361_v52 = vsel %vm973_vm4, %v5678_v18, %v4079_v1  ;;  %v4365_v51 = vsel %vm973_vm4, %v5679_v62, %v4083_v35  ;;  %v5693_v1 = vld [vmem:[#allocation79_spill] sm:$0xff]  ;;  %v5695_v19 = vld [vmem:[#allocation22_spill] sm:$0xff] }
 0x1ad   : > { %v4368_v61 = vsel %vm1395_vm8, %v4049_v21, %v1218_v47  ;;  %v4371_v50 = vsel %vm1395_vm8, %v4052_v11, %v1219_v22  ;;  %v4375_v13 = vsel %vm972_vm5, %v5678_v18, %v4030_v36  ;;  %v4379_v14 = vsel %vm972_vm5, %v5679_v62, %v4034_v24  ;;  %v1332_v24 = vpop.permute.xlu1 %1331  ;;  %v1329_v47 = vpop.permute.xlu0 %1328 }
 0x1ae   : > { %5692 = vst [vmem:[#allocation43_spill] sm:$0xff] %v4371_v50  ;;  %vm975_vm9 = vcmp.eq.s32.totalorder %v5693_v1, 1  ;;  %vm974_vm10 = vcmp.eq.s32.totalorder %v5694_v38, 1  ;;  %v1220_v35 = vsel %vm1181_vm6, %v5689_v10, %v1005_v32  ;;  %v1221_v43 = vsel %vm1181_vm6, %v5690_v15, %v1006_v37  ;;  %v5696_v50 = vld [vmem:[#allocation26_spill] sm:$0xff]  ;;  %1803 = vperm.xlu1 %2108, %v4121_v9  }
 0x1af   : > { %vm1183_vm11 = vcmp.eq.s32.totalorder %v5695_v19, 1  ;;  %v1222_v36 = vsel %vm1182_vm7, %v5689_v10, %v1007_v27  ;;  %v1223_v22 = vsel %vm1182_vm7, %v5690_v15, %v1008_v53  ;;  %vm1184_vm12 = vcmp.eq.s32.totalorder %v5696_v50, 1  ;;  %1800 = vperm.xlu0 %2107, %v4138_v40   ;;  %v5700_v19 = vld [vmem:[#allocation84_spill] sm:$0xff]  ;;  %v5701_v38 = vld [vmem:[#allocation70_spill] sm:$0xff] }
 0x1b0   : > { %vm1397_vm13 = vcmp.eq.s32.totalorder %v1332_v24, 1  ;;  %vm1396_vm14 = vcmp.eq.s32.totalorder %v1329_v47, 1  ;;  %v4415_v53 = vsel %vm975_vm9, %v5678_v18, %v4110_v12  ;;  %v4421_v40 = vsel %vm975_vm9, %v5679_v62, %v4114_v2  ;;  %v5699_v24 = vld [vmem:[#allocation28_spill] sm:$0xff] }
 0x1b1   : > { %v4400_v37 = vsel %vm1397_vm13, %v4049_v21, %v1222_v36  ;;  %v4403_v32 = vsel %vm1397_vm13, %v4052_v11, %v1223_v22  ;;  %v4406_v27 = vsel %vm1396_vm14, %v4049_v21, %v1220_v35  ;;  %v4409_v63 = vsel %vm1396_vm14, %v4052_v11, %v1221_v43  ;;  %v5698_v43 = vld [vmem:[#allocation25_spill] sm:$0xff]  ;;  %v1338_v1 = vpop.permute.xlu1 %1337  ;;  %v1335_v36 = vpop.permute.xlu0 %1334 }
 0x1b2   : > { %v4427_v9 = vsel %vm974_vm10, %v5678_v18, %v4063_v44  ;;  %vm977_vm15 = vcmp.eq.s32.totalorder %v5697_v4, 1  ;;  %v1224_v35 = vsel %vm1183_vm11, %v5689_v10, %v1009_v41  ;;  %v1225_v12 = vsel %vm1183_vm11, %v5690_v15, %v1010_v49  ;;  %1809 = vperm.xlu1 %2108, %v4162_v28  }
 0x1b3   : > { %vm1185_vm0 = vcmp.eq.s32.totalorder %v5698_v43, 1  ;;  %v1226_v2 = vsel %vm1184_vm12, %v5689_v10, %v1011_v59  ;;  %v1227_v44 = vsel %vm1184_vm12, %v5690_v15, %v1012_v17  ;;  %vm1186_vm1 = vcmp.eq.s32.totalorder %v5699_v24, 1  ;;  %1806 = vperm.xlu0 %2107, %v4166_v58   ;;  %v5704_v43 = vld [vmem:[#allocation90_spill] sm:$0xff] }
 0x1b4   : > { %vm1399_vm2 = vcmp.eq.s32.totalorder %v1338_v1, 1  ;;  %vm1398_vm3 = vcmp.eq.s32.totalorder %v1335_v36, 1  ;;  %v1022_v17 = vsel %vm974_vm10, %v5679_v62, %v4067_v56  ;;  %v4466_v28 = vsel %vm977_vm15, %v5678_v18, %v4150_v55 }
 0x1b5   : > { %v4447_v41 = vsel %vm1399_vm2, %v4049_v21, %v1226_v2  ;;  %v4450_v49 = vsel %vm1399_vm2, %v4052_v11, %v1227_v44  ;;  %v4453_v59 = vsel %vm1398_vm3, %v4049_v21, %v1224_v35  ;;  %v4456_v50 = vsel %vm1398_vm3, %v4052_v11, %v1225_v12  ;;  %v1344_v22 = vpop.permute.xlu1 %1343  ;;  %v5702_v35 = vld [vmem:[#allocation32_spill] sm:$0xff] }
 0x1b6   : > { %v4472_v58 = vsel %vm977_vm15, %v5679_v62, %v4156_v54  ;;  %vm976_vm4 = vcmp.eq.s32.totalorder %v5700_v19, 1  ;;  %v1228_v47 = vsel %vm1185_vm0, %v5689_v10, %v1013_v16  ;;  %v1229_v56 = vsel %vm1185_vm0, %v5690_v15, %v1014_v48  ;;  %v1341_v54 = vpop.permute.xlu0 %1340  ;;  %1815 = vperm.xlu1 %2108, %v4215_v5  }
 0x1b7   : > { %vm1187_vm5 = vcmp.eq.s32.totalorder %v5701_v38, 1  ;;  %v1230_v55 = vsel %vm1186_vm1, %v5689_v10, %v4339_v46  ;;  %v1231_v4 = vsel %vm1186_vm1, %v5690_v15, %v4343_v7  ;;  %vm1188_vm6 = vcmp.eq.s32.totalorder %v5702_v35, 1  ;;  %1812 = vperm.xlu0 %2107, %v4221_v3   ;;  %v5703_v3 = vld [vmem:[#allocation89_spill] sm:$0xff] }
 0x1b8   : > { %vm1401_vm7 = vcmp.eq.s32.totalorder %v1344_v22, 1  ;;  %vm1400_vm8 = vcmp.eq.s32.totalorder %v1341_v54, 1  ;;  %v1025_v7 = vsel %vm976_vm4, %v5678_v18, %v4099_v20  ;;  %v1026_v5 = vsel %vm976_vm4, %v5679_v62, %v4103_v29  ;;  %v5705_v20 = vld [vmem:[#allocation77_spill] sm:$0xff] }
 0x1b9   : > { %v4494_v16 = vsel %vm1401_vm7, %v4049_v21, %v1230_v55  ;;  %v4497_v46 = vsel %vm1401_vm7, %v4052_v11, %v1231_v4  ;;  %v4500_v48 = vsel %vm1400_vm8, %v4049_v21, %v1228_v47  ;;  %v4503_v12 = vsel %vm1400_vm8, %v4052_v11, %v1229_v56  ;;  %v1350_v36 = vpop.permute.xlu1 %1349  ;;  %v5707_v56 = vld [vmem:[#allocation93_spill] sm:$0xff] }
 0x1ba   : > { %vm979_vm9 = vcmp.eq.s32.totalorder %v5703_v3, 1  ;;  %vm978_vm10 = vcmp.eq.s32.totalorder %v5704_v43, 1  ;;  %v1232_v2 = vsel %vm1187_vm5, %v5689_v10, %v4375_v13  ;;  %v1233_v1 = vsel %vm1187_vm5, %v5690_v15, %v4379_v14  ;;  %v1347_v44 = vpop.permute.xlu0 %1346  ;;  %1821 = vperm.xlu1 %2108, %v4250_v39   ;;  %v5708_v55 = vld [vmem:[#allocation81_spill] sm:$0xff] }
 0x1bb   : > { %vm1189_vm11 = vcmp.eq.s32.totalorder %v5705_v20, 1  ;;  %v1234_v29 = vsel %vm1188_vm6, %v5689_v10, %v4361_v52  ;;  %v1235_v24 = vsel %vm1188_vm6, %v5690_v15, %v4365_v51  ;;  %vm1190_vm12 = vcmp.eq.s32.totalorder %v3960_v45, 1  ;;  %1818 = vperm.xlu0 %2107, %v4253_v31   ;;  %v5706_v31 = vld [vmem:[#allocation87_spill] sm:$0xff]  ;;  %v5709_v35 = vld [vmem:[#allocation33_spill] sm:$0xff]  ;;  %v5711_v20 = vld [vmem:[#allocation94_spill] sm:$0xff] }
 0x1bc   : > { %vm1403_vm13 = vcmp.eq.s32.totalorder %v1350_v36, 1  ;;  %vm1402_vm14 = vcmp.eq.s32.totalorder %v1347_v44, 1  ;;  %v1031_v51 = vsel %vm979_vm9, %v5678_v18, %v4184_v0  ;;  %v1032_v39 = vsel %vm979_vm9, %v5679_v62, %v4195_v23  ;;  %v5712_v36 = vld [vmem:[#allocation102_spill] sm:$0xff] }
 0x1bd   : > { %v4536_v13 = vsel %vm1403_vm13, %v4049_v21, %v1234_v29  ;;  %v4539_v52 = vsel %vm1403_vm13, %v4052_v11, %v1235_v24  ;;  %v4542_v14 = vsel %vm1402_vm14, %v4049_v21, %v1232_v2  ;;  %v4545_v19 = vsel %vm1402_vm14, %v4052_v11, %v1233_v1  ;;  %v1356_v22 = vpop.permute.xlu1 %1355  ;;  %v5710_v2 = vld [vmem:[#allocation96_spill] sm:$0xff] }
 0x1be   : > { %v1029_v47 = vsel %vm978_vm10, %v5678_v18, %v5706_v31  ;;  %vm981_vm15 = vcmp.eq.s32.totalorder %v5707_v56, 1  ;;  %v1236_v38 = vsel %vm1189_vm11, %v5689_v10, %v4427_v9  ;;  %v1237_v0 = vsel %vm1189_vm11, %v5690_v15, %v1022_v17  ;;  %v1353_v54 = vpop.permute.xlu0 %1352  ;;  %v5713_v31 = vld [vmem:[#allocation92_spill] sm:$0xff] }
 0x1bf   : > { %vm1191_vm0 = vcmp.eq.s32.totalorder %v5708_v55, 1  ;;  %v1238_v23 = vsel %vm1190_vm12, %v5689_v10, %v4415_v53  ;;  %v1239_v4 = vsel %vm1190_vm12, %v5690_v15, %v4421_v40  ;;  %vm1192_vm1 = vcmp.eq.s32.totalorder %v5709_v35, 1  ;;  %v5718_v55 = vld [vmem:[#allocation100_spill] sm:$0xff] }
 0x1c0   : > { %vm1405_vm2 = vcmp.eq.s32.totalorder %v1356_v22, 1  ;;  %vm1404_vm3 = vcmp.eq.s32.totalorder %v1353_v54, 1  ;;  %v1030_v45 = vsel %vm978_vm10, %v5679_v62, %v5710_v2  ;;  %v1035_v40 = vsel %vm981_vm15, %v5678_v18, %v4231_v8  ;;  %v5719_v54 = vld [vmem:[#allocation103_spill] sm:$0xff] }
 0x1c1   : > { %v4578_v9 = vsel %vm1405_vm2, %v4049_v21, %v1238_v23  ;;  %v4581_v17 = vsel %vm1405_vm2, %v4052_v11, %v1239_v4  ;;  %v4584_v3 = vsel %vm1404_vm3, %v4049_v21, %v1236_v38  ;;  %v4587_v53 = vsel %vm1404_vm3, %v4052_v11, %v1237_v0  ;;  %v1362_v44 = vpop.permute.xlu1 %1361  ;;  %v5717_v0 = vld [vmem:[#allocation99_spill] sm:$0xff] }
 0x1c2   : > { %v1036_v1 = vsel %vm981_vm15, %v5679_v62, %v4235_v42  ;;  %vm980_vm4 = vcmp.eq.s32.totalorder %v5711_v20, 1  ;;  %v1240_v29 = vsel %vm1191_vm0, %v5689_v10, %v1025_v7  ;;  %v1241_v43 = vsel %vm1191_vm0, %v5690_v15, %v1026_v5  ;;  %v1359_v24 = vpop.permute.xlu0 %1358  ;;  %v5720_v2 = vld [vmem:[#allocation35_spill] sm:$0xff] }
 0x1c3   : > { %vm1193_vm5 = vcmp.eq.s32.totalorder %v5712_v36, 1  ;;  %v1242_v8 = vsel %vm1192_vm1, %v5689_v10, %v4466_v28  ;;  %v1243_v42 = vsel %vm1192_vm1, %v5690_v15, %v4472_v58  ;;  %vm1194_vm6 = vcmp.eq.s32.totalorder %v5713_v31, 1  ;;  %v5725_v36 = vld [vmem:[#allocation104_spill] sm:$0xff] }
 0x1c4   : > { %vm1407_vm7 = vcmp.eq.s32.totalorder %v1362_v44, 1  ;;  %vm1406_vm8 = vcmp.eq.s32.totalorder %v1359_v24, 1  ;;  %v1033_v58 = vsel %vm980_vm4, %v5678_v18, %v4174_v60  ;;  %v1034_v38 = vsel %vm980_vm4, %v5679_v62, %v4178_v6  ;;  %v5727_v24 = vld [vmem:[#allocation34_spill] sm:$0xff] }
 0x1c5   : > { %v4619_v7 = vsel %vm1407_vm7, %v4049_v21, %v1242_v8  ;;  %v4622_v5 = vsel %vm1407_vm7, %v4052_v11, %v1243_v42  ;;  %v4625_v56 = vsel %vm1406_vm8, %v4049_v21, %v1240_v29  ;;  %v4628_v28 = vsel %vm1406_vm8, %v4052_v11, %v1241_v43  ;;  %v1368_v4 = vpop.permute.xlu1 %1367  ;;  %v5726_v8 = vld [vmem:[#allocation55_spill] sm:$0xff] }
 0x1c6   : > { %5714 = vst [vmem:[#allocation44_spill] sm:$0xff] %v4619_v7  ;;  %5715 = vst [vmem:[#allocation12_spill] sm:$0xff] %v4622_v5  ;;  %vm983_vm9 = vcmp.eq.s32.totalorder %v5717_v0, 1  ;;  %vm982_vm10 = vcmp.eq.s32.totalorder %v5718_v55, 1  ;;  %v1244_v23 = vsel %vm1193_vm5, %v5689_v10, %v1029_v47  ;;  %v1245_v22 = vsel %vm1193_vm5, %v5690_v15, %v1030_v45  ;;  %v1365_v6 = vpop.permute.xlu0 %1364  ;;  %v5780_v5 = vld [vmem:[#allocation74_spill] sm:$0xff] }
 0x1c7   : > { %5716 = vst [vmem:[#allocation45_spill] sm:$0xff] %v4628_v28  ;;  %vm1195_vm11 = vcmp.eq.s32.totalorder %v5719_v54, 1  ;;  %v1246_v60 = vsel %vm1194_vm6, %v5689_v10, %v1031_v51  ;;  %v1247_v35 = vsel %vm1194_vm6, %v5690_v15, %v1032_v39  ;;  %vm1196_vm12 = vcmp.eq.s32.totalorder %v5720_v2, 1  ;;  %v5733_v54 = vld [vmem:[#allocation42_spill] sm:$0xff] }
 0x1c8   : > { %vm1409_vm13 = vcmp.eq.s32.totalorder %v1368_v4, 1  ;;  %vm1408_vm14 = vcmp.eq.s32.totalorder %v1365_v6, 1  ;;  %v1039_v39 = vsel %vm983_vm9, %v5678_v18, %v4265_v57  ;;  %v1040_v29 = vsel %vm983_vm9, %v5679_v62, %v4275_v26  ;;  %v5734_v4 = vld [vmem:[#allocation105_spill] sm:$0xff] }
 0x1c9   : > { %v4655_v47 = vsel %vm1409_vm13, %v4049_v21, %v1246_v60  ;;  %v4658_v45 = vsel %vm1409_vm13, %v4052_v11, %v1247_v35  ;;  %v4661_v20 = vsel %vm1408_vm14, %v4049_v21, %v1244_v23  ;;  %v4664_v51 = vsel %vm1408_vm14, %v4052_v11, %v1245_v22  ;;  %v1374_v42 = vpop.permute.xlu1 %1373  ;;  %v5732_v23 = vld [vmem:[#allocation36_spill] sm:$0xff]  ;;  %v5735_v35 = vld [vmem:[#allocation91_spill] sm:$0xff] }
 0x1ca   : > { %5721 = vst [vmem:[#allocation46_spill] sm:$0xff] %v4655_v47  ;;  %5722 = vst [vmem:[#allocation47_spill] sm:$0xff] %v4658_v45  ;;  %v1037_v43 = vsel %vm982_vm10, %v5678_v18, %v4208_v34  ;;  %vm985_vm15 = vcmp.eq.s32.totalorder %v5725_v36, 1  ;;  %vm772_vm0 = vcmp.eq.s32.totalorder %v5726_v8, 1  ;;  %v1248_v44 = vsel %vm1195_vm11, %v5689_v10, %v1033_v58  ;;  %v1371_v34 = vpop.permute.xlu0 %1370 }
 0x1cb   : > { %5723 = vst [vmem:[#allocation21_spill] sm:$0xff] %v4661_v20  ;;  %5724 = vst [vmem:[#allocation48_spill] sm:$0xff] %v4664_v51  ;;  %v1249_v57 = vsel %vm1195_vm11, %v5690_v15, %v1034_v38  ;;  %vm1197_vm1 = vcmp.eq.s32.totalorder %v5727_v24, 1  ;;  %v1250_v26 = vsel %vm1196_vm12, %v5689_v10, %v1035_v40  ;;  %v1251_v31 = vsel %vm1196_vm12, %v5690_v15, %v1036_v1  ;;  %v5777_v20 = vld [vmem:[#allocation69_spill] sm:$0xff] }
 0x1cc   : > { %vm1198_vm2 = vcmp.eq.s32.totalorder %v4189_v33, 1  ;;  %vm1411_vm3 = vcmp.eq.s32.totalorder %v1374_v42, 1  ;;  %vm1410_vm4 = vcmp.eq.s32.totalorder %v1371_v34, 1  ;;  %v1038_v1 = vsel %vm982_vm10, %v5679_v62, %v5732_v23  ;;  %v5741_v42 = vld [vmem:[#allocation37_spill] sm:$0xff]  ;;  %v5744_v23 = vld [vmem:[#allocation107_spill] sm:$0xff] }
 0x1cd   : > { %v4695_v58 = vsel %vm1411_vm3, %v4049_v21, %v1250_v26  ;;  %v4698_v38 = vsel %vm1411_vm3, %v4052_v11, %v1251_v31  ;;  %v4701_v0 = vsel %vm1410_vm4, %v4049_v21, %v1248_v44  ;;  %v4704_v40 = vsel %vm1410_vm4, %v4052_v11, %v1249_v57  ;;  %v1380_v2 = vpop.permute.xlu1 %1379  ;;  %v5736_v57 = vld [vmem:[#allocation38_spill] sm:$0xff] }
 0x1ce   : > { %5728 = vst [vmem:[#allocation20_spill] sm:$0xff] %v4695_v58  ;;  %5729 = vst [vmem:[#allocation109_spill] sm:$0xff] %v4698_v38  ;;  %v1043_v22 = vsel %vm985_vm15, %v5678_v18, %v4290_v30  ;;  %v1044_v60 = vsel %vm985_vm15, %v5679_v62, %v5733_v54  ;;  %vm984_vm5 = vcmp.eq.s32.totalorder %v5734_v4, 1  ;;  %v1252_v6 = vsel %vm1197_vm1, %v5689_v10, %v1037_v43  ;;  %v1377_v44 = vpop.permute.xlu0 %1376  ;;  %v5743_v31 = vld [vmem:[#allocation106_spill] sm:$0xff]  ;;  %v5769_v58 = vld [vmem:[#allocation11_spill] sm:$0xff] }
 0x1cf   : > { %5730 = vst [vmem:[#allocation49_spill] sm:$0xff] %v4701_v0  ;;  %5731 = vst [vmem:[#allocation110_spill] sm:$0xff] %v4704_v40  ;;  %v1253_v55 = vsel %vm1197_vm1, %v5690_v15, %v1038_v1  ;;  %vm1199_vm6 = vcmp.eq.s32.totalorder %v5735_v35, 1  ;;  %v1254_v30 = vsel %vm1198_vm2, %v5689_v10, %v1039_v39  ;;  %v1255_v36 = vsel %vm1198_vm2, %v5690_v15, %v1040_v29  ;;  %v5742_v29 = vld [vmem:[#allocation39_spill] sm:$0xff]  ;;  %v5768_v38 = vld [vmem:[#allocation10_spill] sm:$0xff] }
 0x1d0   : > { %vm1200_vm7 = vcmp.eq.s32.totalorder %v5736_v57, 1  ;;  %vm1413_vm8 = vcmp.eq.s32.totalorder %v1380_v2, 1  ;;  %vm1412_vm9 = vcmp.eq.s32.totalorder %v1377_v44, 1  ;;  %v1041_v33 = vsel %vm984_vm5, %v5678_v18, %v5741_v42  ;;  %v5746_v44 = vld [vmem:[#allocation108_spill] sm:$0xff]  ;;  %v5753_v57 = vld [vmem:[#allocation82_spill] sm:$0xff]  ;;  %v5771_v0 = vld [vmem:[#allocation31_spill] sm:$0xff] }
 0x1d1   : > { %v4734_v43 = vsel %vm1413_vm8, %v4049_v21, %v1254_v30  ;;  %v4737_v24 = vsel %vm1413_vm8, %v4052_v11, %v1255_v36  ;;  %v4740_v26 = vsel %vm1412_vm9, %v4049_v21, %v1252_v6  ;;  %v4743_v39 = vsel %vm1412_vm9, %v4052_v11, %v1253_v55  ;;  %v5745_v6 = vld [vmem:[#allocation95_spill] sm:$0xff]  ;;  %v1386_v4 = vpop.permute.xlu1 %1385  ;;  %v5770_v40 = vld [vmem:[#allocation30_spill] sm:$0xff] }
 0x1d2   : > { %5737 = vst [vmem:[#allocation50_spill] sm:$0xff] %v4734_v43  ;;  %5738 = vst [vmem:[#allocation51_spill] sm:$0xff] %v4737_v24  ;;  %v1042_v34 = vsel %vm984_vm5, %v5679_v62, %v5742_v29  ;;  %vm987_vm10 = vcmp.eq.s32.totalorder %v5743_v31, 1  ;;  %vm986_vm11 = vcmp.eq.s32.totalorder %v5744_v23, 1  ;;  %v1256_v1 = vsel %vm1199_vm6, %v5689_v10, %v1041_v33  ;;  %v1383_v30 = vpop.permute.xlu0 %1382  ;;  %v5751_v33 = vld [vmem:[#allocation101_spill] sm:$0xff]  ;;  %v5752_v29 = vld [vmem:[#allocation75_spill] sm:$0xff] }
 0x1d3   : > { %5739 = vst [vmem:[#allocation24_spill] sm:$0xff] %v4740_v26  ;;  %5740 = vst [vmem:[#allocation111_spill] sm:$0xff] %v4743_v39  ;;  %v1257_v54 = vsel %vm1199_vm6, %v5690_v15, %v1042_v34  ;;  %vm1201_vm12 = vcmp.eq.s32.totalorder %v5745_v6, 1  ;;  %v1258_v55 = vsel %vm1200_vm7, %v5689_v10, %v1043_v22  ;;  %v1259_v2 = vsel %vm1200_vm7, %v5690_v15, %v1044_v60  ;;  %v5754_v34 = vld [vmem:[#allocation76_spill] sm:$0xff]  ;;  %v5767_v26 = vld [vmem:[#allocation9_spill] sm:$0xff] }
 0x1d4   : > { %vm1202_vm13 = vcmp.eq.s32.totalorder %v5746_v44, 1  ;;  %vm1415_vm14 = vcmp.eq.s32.totalorder %v1386_v4, 1  ;;  %vm1414_vm15 = vcmp.eq.s32.totalorder %v1383_v30, 1  ;;  %v832_v60 = vsel %vm772_vm0, %v5752_v29, %v5751_v33  ;;  %v5755_v4 = vld [vmem:[#allocation40_spill] sm:$0xff] }
 0x1d5   : > { %v4770_v36 = vsel %vm1415_vm14, %v4049_v21, %v1258_v55  ;;  %v4773_v35 = vsel %vm1415_vm14, %v4052_v11, %v1259_v2  ;;  %v4776_v42 = vsel %vm1414_vm15, %v4049_v21, %v1256_v1  ;;  %v4779_v22 = vsel %vm1414_vm15, %v4052_v11, %v1257_v54  ;;  %v5756_v1 = vld [vmem:[#allocation41_spill] sm:$0xff]  ;;  %v5766_v39 = vld [vmem:[#allocation8_spill] sm:$0xff] }
 0x1d6   : > { %5747 = vst [vmem:[#allocation52_spill] sm:$0xff] %v4770_v36  ;;  %5748 = vst [vmem:[#allocation78_spill] sm:$0xff] %v4773_v35  ;;  %v833_v55 = vsel %vm772_vm0, %v5754_v34, %v5753_v57  ;;  %v1045_v30 = vsel %vm986_vm11, %v5678_v18, %v5755_v4  ;;  %v1046_v54 = vsel %vm986_vm11, %v5679_v62, %v5756_v1  ;;  %v1392_v4 = vpop.permute.xlu1 %1391  ;;  %v1389_v35 = vpop.permute.xlu0 %1388  ;;  %vm318_vm2 = vcmp.eq.s32.totalorder %v5766_v39, 1 }
 0x1d7   : > { %5749 = vst [vmem:[#allocation53_spill] sm:$0xff] %v4776_v42  ;;  %5750 = vst [vmem:[#allocation29_spill] sm:$0xff] %v4779_v22  ;;  %v1047_v2 = vsel %vm987_vm10, %v5678_v18, %v832_v60  ;;  %v1048_v33 = vsel %vm987_vm10, %v5679_v62, %v833_v55  ;;  %v1260_v8 = vsel %vm1201_vm12, %v5689_v10, %v1045_v30  ;;  %vm1417_vm0 = vcmp.eq.s32.totalorder %v1392_v4, 1 }
 0x1d8   : > { %v1261_v57 = vsel %vm1201_vm12, %v5690_v15, %v1046_v54  ;;  %v1262_v23 = vsel %vm1202_vm13, %v5689_v10, %v1047_v2  ;;  %v1263_v60 = vsel %vm1202_vm13, %v5690_v15, %v1048_v33  ;;  %vm1416_vm1 = vcmp.eq.s32.totalorder %v1389_v35, 1 }
 0x1d9   : > { %v4816_v31 = vsel %vm1417_vm0, %v4049_v21, %v1262_v23  ;;  %v4819_v55 = vsel %vm1417_vm0, %v4052_v11, %v1263_v60  ;;  %v4822_v6 = vsel %vm1416_vm1, %v4049_v21, %v1260_v8  ;;  %v4825_v30 = vsel %vm1416_vm1, %v4052_v11, %v1261_v57 }
 0x1da   : > { %5757 = vst [vmem:[#allocation112_spill] sm:$0xff] %v4816_v31  ;;  %5758 = vst [vmem:[#allocation56_spill] sm:$0xff] %v4819_v55  ;;  %v4827_v1 = vpop.permute.xlu1 %1537  ;;  %v4829_v54 = vpop.permute.xlu0 %1534  ;;  %vm319_vm3 = vcmp.eq.s32.totalorder %v5767_v26, 1  ;;  %vm533_vm4 = vcmp.eq.s32.totalorder %v5768_v38, 1  ;;  %vm534_vm5 = vcmp.eq.s32.totalorder %v5769_v58, 1  ;;  %vm749_vm6 = vcmp.eq.s32.totalorder %v5770_v40, 1 }
 0x1db   : > { %5759 = vst [vmem:[#allocation58_spill] sm:$0xff] %v4822_v6  ;;  %5760 = vst [vmem:[#allocation27_spill] sm:$0xff] %v4825_v30  ;;  %vm748_vm7 = vcmp.eq.s32.totalorder %v5771_v0, 1  ;;  %v5778_v38 = vld [vmem:[#allocation54_spill] sm:$0xff]  ;;  %v5783_v40 = vld [vmem:[#allocation15_spill] sm:$0xff]  ;;  %vm1608_vm12 = vcmp.eq.s32.totalorder %v4829_v54, 1 }
 0x1dc   : > { %vm963_vm8 = vcmp.eq.s32.totalorder %v5778_v38, 1  ;;  %vm1393_vm11 = vcmp.eq.s32.totalorder %v5783_v40, 1  ;;  %v5784_v0 = vld [vmem:[#allocation62_spill] sm:$0xff]  ;;  %vm1394_vm14 = vcmp.eq.s32.totalorder %v4352_v25, 1  ;;  %vm1609_vm15 = vcmp.eq.s32.totalorder %v4827_v1, 1 }
 0x1de   : > { %v4831_v44 = vpop.permute.xlu1 %1543  ;;  %v4833_v2 = vpop.permute.xlu0 %1540 }
 0x1df   : > { %vm1610_vm0 = vcmp.eq.s32.totalorder %v4833_v2, 1 }
 0x1e2   : > { %v4835_v35 = vpop.permute.xlu1 %1549  ;;  %v4837_v33 = vpop.permute.xlu0 %1546 }
 0x1e6   : > { %v4839_v4 = vpop.permute.xlu1 %1555  ;;  %v4841_v23 = vpop.permute.xlu0 %1552 }
 0x1ea   : > { %v4843_v8 = vpop.permute.xlu1 %1561  ;;  %v4845_v57 = vpop.permute.xlu0 %1558 }
 0x1ee   : > { %v4847_v60 = vpop.permute.xlu1 %1567  ;;  %v4849_v55 = vpop.permute.xlu0 %1564 }
 0x1f2   : > { %v4851_v31 = vpop.permute.xlu1 %1573  ;;  %v4853_v30 = vpop.permute.xlu0 %1570 }
 0x1f6   : > { %v4855_v6 = vpop.permute.xlu1 %1579  ;;  %v4857_v36 = vpop.permute.xlu0 %1576 }
 0x1f7   : > { %5761 = vst [vmem:[#allocation59_spill] sm:$0xff] %v4855_v6  ;;  %v2053_v6 = vld [vmem:[%s5327_s2 + $0x7] ss:$8 sm:$0x3] }
 0x1fa   : > { %v4859_v22 = vpop.permute.xlu1 %1585  ;;  %v4861_v42 = vpop.permute.xlu0 %1582 }
 0x1fb   : > { %5762 = vst [vmem:[#allocation97_spill] sm:$0xff] %v4859_v22  ;;  %5763 = vst [vmem:[#allocation98_spill] sm:$0xff] %v4861_v42  ;;  %v5774_v22 = vld [vmem:[#allocation66_spill] sm:$0xff]  ;;  %v5779_v42 = vld [vmem:[#allocation71_spill] sm:$0xff] }
 0x1fe   : > { %v4863_v24 = vpop.permute.xlu1 %1591  ;;  %v4865_v43 = vpop.permute.xlu0 %1588 }
 0x1ff   : > { %5764 = vst [vmem:[#allocation60_spill] sm:$0xff] %v4863_v24  ;;  %5765 = vst [vmem:[#allocation61_spill] sm:$0xff] %v4865_v43  ;;  %v5775_v24 = vld [vmem:[#allocation68_spill] sm:$0xff]  ;;  %v5776_v43 = vld [vmem:[#allocation67_spill] sm:$0xff] }
 0x200   : > { %v354_v51 = vsel %vm318_vm2, %v5775_v24, %v5774_v22  ;;  %v355_v39 = vsel %vm318_vm2, %v5777_v20, %v5776_v43  ;;  %v356_v26 = vsel %vm319_vm3, %v5775_v24, %v5774_v22  ;;  %v357_v58 = vsel %vm319_vm3, %v5777_v20, %v5776_v43  ;;  %v5781_v43 = vld [vmem:[#allocation57_spill] sm:$0xff]  ;;  %v5782_v22 = vld [vmem:[#allocation14_spill] sm:$0xff] }
 0x201   : > { %v571_v7 = vsel %vm534_vm5, %v5779_v42, %v356_v26  ;;  %v572_v28 = vsel %vm534_vm5, %v5780_v5, %v357_v58  ;;  %vm964_vm9 = vcmp.eq.s32.totalorder %v5781_v43, 1  ;;  %vm1178_vm10 = vcmp.eq.s32.totalorder %v5782_v22, 1 }
 0x202   : > { %v4873_v45 = vpop.permute.xlu1 %1597  ;;  %v4875_v47 = vpop.permute.xlu0 %1594  ;;  %v786_v24 = vsel %vm749_vm6, %v5752_v29, %v571_v7  ;;  %vm1611_vm2 = vcmp.eq.s32.totalorder %v4831_v44, 1  ;;  %vm1612_vm3 = vcmp.eq.s32.totalorder %v4837_v33, 1 }
 0x203   : > { %5772 = vst [vmem:[#allocation85_spill] sm:$0xff] %v4873_v45  ;;  %5773 = vst [vmem:[#allocation86_spill] sm:$0xff] %v4875_v47  ;;  %v569_v45 = vsel %vm533_vm4, %v5779_v42, %v354_v51  ;;  %v570_v47 = vsel %vm533_vm4, %v5780_v5, %v355_v39  ;;  %v2055_v51 = vld [vmem:[%s5327_s2 + $0x10] ss:$8 sm:$0x3]  ;;  %v787_v42 = vsel %vm749_vm6, %v5754_v34, %v572_v28  ;;  %vm1613_vm6 = vcmp.eq.s32.totalorder %v4835_v35, 1 }
 0x204   : > { %v784_v20 = vsel %vm748_vm7, %v5752_v29, %v569_v45  ;;  %v785_v5 = vsel %vm748_vm7, %v5754_v34, %v570_v47  ;;  %v4925_v47 = vrot.slane %v2053_v6, %v5784_v0  ;;  %v5785_v34 = vld [vmem:[#allocation63_spill] sm:$0xff]  ;;  %v1001_v26 = vsel %vm964_vm9, %v5678_v18, %v786_v24 }
 0x205   : > { %v999_v7 = vsel %vm963_vm8, %v5678_v18, %v784_v20  ;;  %v1000_v28 = vsel %vm963_vm8, %v5679_v62, %v785_v5  ;;  %v4928_v39 = vrot.slane %v2053_v6, %v5785_v34  ;;  %v4935_v58 = vrot.slane %v2055_v51, %v5784_v0  ;;  %v5786_v5 = vld [vmem:[#allocation13_spill] sm:$0xff] }
 0x206   : > { %v4914_v45 = vpop.permute.xlu1 %1603  ;;  %v4916_v29 = vpop.permute.xlu0 %1600  ;;  %v4938_v38 = vrot.slane %v2055_v51, %v5785_v34  ;;  %v1002_v20 = vsel %vm964_vm9, %v5679_v62, %v787_v42  ;;  %vm1179_vm13 = vcmp.eq.s32.totalorder %v5786_v5, 1  ;;  %v1214_v6 = vsel %vm1178_vm10, %v5689_v10, %v999_v7 }
 0x207   : > { %v1215_v22 = vsel %vm1178_vm10, %v5690_v15, %v1000_v28  ;;  %v1429_v18 = vsel %vm1393_vm11, %v4049_v21, %v1214_v6  ;;  %v1216_v42 = vsel %vm1179_vm13, %v5689_v10, %v1001_v26  ;;  %v1217_v7 = vsel %vm1179_vm13, %v5690_v15, %v1002_v20  ;;  %v5787_v26 = vld [vmem:[#allocation43_spill] sm:$0xff] }
 0x208   : > { %v1430_v54 = vsel %vm1393_vm11, %v4052_v11, %v1215_v22  ;;  %v1644_v43 = vsel %vm1608_vm12, %v4925_v47, %v1429_v18  ;;  %v1431_v40 = vsel %vm1394_vm14, %v4049_v21, %v1216_v42  ;;  %v1432_v0 = vsel %vm1394_vm14, %v4052_v11, %v1217_v7 }
 0x209   : > { %v1645_v62 = vsel %vm1608_vm12, %v4928_v39, %v1430_v54  ;;  %v1646_v15 = vsel %vm1609_vm15, %v4925_v47, %v1431_v40  ;;  %v1647_v10 = vsel %vm1609_vm15, %v4928_v39, %v1432_v0  ;;  %v1648_v21 = vsel %vm1610_vm0, %v4925_v47, %v4368_v61 }
 0x20a   : > { %v1750_v24 = vpop.permute.xlu1 %1749  ;;  %v4950_v51 = vpop.permute.xlu0 %1606  ;;  %v1649_v20 = vsel %vm1610_vm0, %v4928_v39, %v5787_v26  ;;  %v1650_v61 = vsel %vm1611_vm2, %v4925_v47, %v4406_v27  ;;  %v1651_v2 = vsel %vm1611_vm2, %v4928_v39, %v4409_v63  ;;  %v1652_v18 = vsel %vm1612_vm3, %v4925_v47, %v4400_v37 }
 0x20b   : > { %vm1823_vm1 = vcmp.eq.s32.totalorder %v1750_v24, 1  ;;  %v1653_v27 = vsel %vm1612_vm3, %v4928_v39, %v4403_v32  ;;  %vm1614_vm7 = vcmp.eq.s32.totalorder %v4841_v23, 1  ;;  %v1654_v37 = vsel %vm1613_vm6, %v4925_v47, %v4453_v59 }
 0x20c   : > { %v1859_v28 = vsel %vm1823_vm1, %v4935_v58, %v1644_v43  ;;  %v1860_v25 = vsel %vm1823_vm1, %v4938_v38, %v1645_v62  ;;  %v1655_v32 = vsel %vm1613_vm6, %v4928_v39, %v4456_v50  ;;  %vm1615_vm10 = vcmp.eq.s32.totalorder %v4839_v4, 1 }
 0x20d   : > { %1909 = vst [vmem:[%s4961_s15] sm:$0xff] %v1859_v28  ;;  %1910 = vst [vmem:[%s4961_s15 + $0x8] sm:$0xff] %v1860_v25  ;;  %v1656_v33 = vsel %vm1614_vm7, %v4925_v47, %v4447_v41  ;;  %v1657_v59 = vsel %vm1614_vm7, %v4928_v39, %v4450_v49  ;;  %vm1616_vm11 = vcmp.eq.s32.totalorder %v4845_v57, 1  ;;  %v1658_v41 = vsel %vm1615_vm10, %v4925_v47, %v4500_v48 }
 0x20e   : > { %v1756_v11 = vpop.permute.xlu1 %1755  ;;  %v1753_v34 = vpop.permute.xlu0 %1752  ;;  %v1659_v49 = vsel %vm1615_vm10, %v4928_v39, %v4503_v12  ;;  %vm1617_vm14 = vcmp.eq.s32.totalorder %v4843_v8, 1  ;;  %v1660_v23 = vsel %vm1616_vm11, %v4925_v47, %v4494_v16  ;;  %v1661_v48 = vsel %vm1616_vm11, %v4928_v39, %v4497_v46 }
 0x20f   : > { %vm1825_vm4 = vcmp.eq.s32.totalorder %v1756_v11, 1  ;;  %vm1824_vm5 = vcmp.eq.s32.totalorder %v1753_v34, 1  ;;  %vm1618_vm15 = vcmp.eq.s32.totalorder %v4849_v55, 1  ;;  %v1662_v16 = vsel %vm1617_vm14, %v4925_v47, %v4542_v14 }
 0x210   : > { %v1863_v1 = vsel %vm1825_vm4, %v4935_v58, %v1648_v21  ;;  %v1864_v5 = vsel %vm1825_vm4, %v4938_v38, %v1649_v20  ;;  %v1861_v6 = vsel %vm1824_vm5, %v4935_v58, %v1646_v15  ;;  %v1862_v22 = vsel %vm1824_vm5, %v4938_v38, %v1647_v10 }
 0x211   : > { %1913 = vst [vmem:[%s4961_s15 + $0x20] sm:$0xff] %v1863_v1  ;;  %1914 = vst [vmem:[%s4961_s15 + $0x28] sm:$0xff] %v1864_v5  ;;  %v1663_v46 = vsel %vm1617_vm14, %v4928_v39, %v4545_v19  ;;  %vm1619_vm2 = vcmp.eq.s32.totalorder %v4847_v60, 1  ;;  %v1664_v57 = vsel %vm1618_vm15, %v4925_v47, %v4536_v13  ;;  %v1665_v14 = vsel %vm1618_vm15, %v4928_v39, %v4539_v52 }
 0x212   : > { %1911 = vst [vmem:[%s4961_s15 + $0x10] sm:$0xff] %v1861_v6  ;;  %1912 = vst [vmem:[%s4961_s15 + $0x18] sm:$0xff] %v1862_v22  ;;  %v1762_v54 = vpop.permute.xlu1 %1761  ;;  %v1759_v24 = vpop.permute.xlu0 %1758  ;;  %vm1620_vm3 = vcmp.eq.s32.totalorder %v4853_v30, 1  ;;  %v1666_v13 = vsel %vm1619_vm2, %v4925_v47, %v4584_v3  ;;  %v1667_v52 = vsel %vm1619_vm2, %v4928_v39, %v4587_v53  ;;  %vm1621_vm6 = vcmp.eq.s32.totalorder %v4851_v31, 1  ;;  %v5789_v22 = vld [vmem:[#allocation59_spill] sm:$0xff] }
 0x213   : > { %vm1827_vm8 = vcmp.eq.s32.totalorder %v1762_v54, 1  ;;  %vm1826_vm9 = vcmp.eq.s32.totalorder %v1759_v24, 1  ;;  %v1668_v55 = vsel %vm1620_vm3, %v4925_v47, %v4578_v9  ;;  %v1669_v3 = vsel %vm1620_vm3, %v4928_v39, %v4581_v17  ;;  %v5788_v17 = vld [vmem:[#allocation45_spill] sm:$0xff]  ;;  %v5791_v24 = vld [vmem:[#allocation12_spill] sm:$0xff] }
 0x214   : > { %v1867_v63 = vsel %vm1827_vm8, %v4935_v58, %v1652_v18  ;;  %v1868_v44 = vsel %vm1827_vm8, %v4938_v38, %v1653_v27  ;;  %v1865_v43 = vsel %vm1826_vm9, %v4935_v58, %v1650_v61  ;;  %v1866_v62 = vsel %vm1826_vm9, %v4938_v38, %v1651_v2  ;;  %v5790_v61 = vld [vmem:[#allocation44_spill] sm:$0xff]  ;;  %v5792_v27 = vld [vmem:[#allocation98_spill] sm:$0xff] }
 0x215   : > { %1917 = vst [vmem:[%s4961_s15 + $0x40] sm:$0xff] %v1867_v63  ;;  %1918 = vst [vmem:[%s4961_s15 + $0x48] sm:$0xff] %v1868_v44  ;;  %vm1622_vm7 = vcmp.eq.s32.totalorder %v4857_v36, 1  ;;  %v1670_v9 = vsel %vm1621_vm6, %v4925_v47, %v4625_v56  ;;  %v1671_v30 = vsel %vm1621_vm6, %v4928_v39, %v5788_v17  ;;  %vm1623_vm10 = vcmp.eq.s32.totalorder %v5789_v22, 1 }
 0x216   : > { %1915 = vst [vmem:[%s4961_s15 + $0x30] sm:$0xff] %v1865_v43  ;;  %1916 = vst [vmem:[%s4961_s15 + $0x38] sm:$0xff] %v1866_v62  ;;  %v1768_v42 = vpop.permute.xlu1 %1767  ;;  %v1765_v7 = vpop.permute.xlu0 %1764  ;;  %v1672_v2 = vsel %vm1622_vm7, %v4925_v47, %v5790_v61  ;;  %v1673_v56 = vsel %vm1622_vm7, %v4928_v39, %v5791_v24  ;;  %vm1624_vm11 = vcmp.eq.s32.totalorder %v5792_v27, 1  ;;  %v5793_v62 = vld [vmem:[#allocation21_spill] sm:$0xff]  ;;  %vm1630_vm7 = vcmp.eq.s32.totalorder %v4916_v29, 1  ;;  %v5814_v29 = vld [vmem:[#allocation58_spill] sm:$0xff] }
 0x217   : > { %vm1829_vm12 = vcmp.eq.s32.totalorder %v1768_v42, 1  ;;  %vm1828_vm13 = vcmp.eq.s32.totalorder %v1765_v7, 1  ;;  %v1674_v36 = vsel %vm1623_vm10, %v4925_v47, %v5793_v62  ;;  %v5796_v42 = vld [vmem:[#allocation46_spill] sm:$0xff] }
 0x218   : > { %v1871_v50 = vsel %vm1829_vm12, %v4935_v58, %v1656_v33  ;;  %v1872_v35 = vsel %vm1829_vm12, %v4938_v38, %v1657_v59  ;;  %v1869_v28 = vsel %vm1828_vm13, %v4935_v58, %v1654_v37  ;;  %v1870_v25 = vsel %vm1828_vm13, %v4938_v38, %v1655_v32  ;;  %v5794_v37 = vld [vmem:[#allocation48_spill] sm:$0xff]  ;;  %v5795_v33 = vld [vmem:[#allocation97_spill] sm:$0xff] }
 0x219   : > { %1921 = vst [vmem:[%s4961_s15 + $0x60] sm:$0xff] %v1871_v50  ;;  %1922 = vst [vmem:[%s4961_s15 + $0x68] sm:$0xff] %v1872_v35  ;;  %v1675_v32 = vsel %vm1623_vm10, %v4928_v39, %v5794_v37  ;;  %vm1625_vm14 = vcmp.eq.s32.totalorder %v5795_v33, 1  ;;  %v1676_v7 = vsel %vm1624_vm11, %v4925_v47, %v5796_v42  ;;  %v5797_v35 = vld [vmem:[#allocation47_spill] sm:$0xff]  ;;  %vm1631_vm10 = vcmp.eq.s32.totalorder %v4914_v45, 1 }
 0x21a   : > { %1919 = vst [vmem:[%s4961_s15 + $0x50] sm:$0xff] %v1869_v28  ;;  %1920 = vst [vmem:[%s4961_s15 + $0x58] sm:$0xff] %v1870_v25  ;;  %v1774_v40 = vpop.permute.xlu1 %1773  ;;  %v1771_v0 = vpop.permute.xlu0 %1770  ;;  %v1677_v28 = vsel %vm1624_vm11, %v4928_v39, %v5797_v35  ;;  %v5798_v25 = vld [vmem:[#allocation61_spill] sm:$0xff]  ;;  %vm1632_vm11 = vcmp.eq.s32.totalorder %v4950_v51, 1  ;;  %v1690_v33 = vsel %vm1631_vm10, %v4925_v47, %v5814_v29  ;;  %v5815_v42 = vld [vmem:[#allocation27_spill] sm:$0xff] }
 0x21b   : > { %vm1831_vm0 = vcmp.eq.s32.totalorder %v1774_v40, 1  ;;  %vm1830_vm1 = vcmp.eq.s32.totalorder %v1771_v0, 1  ;;  %vm1626_vm15 = vcmp.eq.s32.totalorder %v5798_v25, 1  ;;  %v5799_v0 = vld [vmem:[#allocation49_spill] sm:$0xff]  ;;  %v5816_v35 = vld [vmem:[#allocation112_spill] sm:$0xff] }
 0x21c   : > { %v1875_v12 = vsel %vm1831_vm0, %v4935_v58, %v1660_v23  ;;  %v1876_v4 = vsel %vm1831_vm0, %v4938_v38, %v1661_v48  ;;  %v1873_v15 = vsel %vm1830_vm1, %v4935_v58, %v1658_v41  ;;  %v1874_v10 = vsel %vm1830_vm1, %v4938_v38, %v1659_v49 }
 0x21d   : > { %1925 = vst [vmem:[%s4961_s15 + $0x80] sm:$0xff] %v1875_v12  ;;  %1926 = vst [vmem:[%s4961_s15 + $0x88] sm:$0xff] %v1876_v4  ;;  %v1678_v48 = vsel %vm1625_vm14, %v4925_v47, %v5799_v0  ;;  %v5800_v12 = vld [vmem:[#allocation110_spill] sm:$0xff]  ;;  %v1692_v45 = vsel %vm1632_vm11, %v4925_v47, %v5816_v35 }
 0x21e   : > { %1923 = vst [vmem:[%s4961_s15 + $0x70] sm:$0xff] %v1873_v15  ;;  %1924 = vst [vmem:[%s4961_s15 + $0x78] sm:$0xff] %v1874_v10  ;;  %v1780_v21 = vpop.permute.xlu1 %1779  ;;  %v1777_v11 = vpop.permute.xlu0 %1776  ;;  %v1679_v4 = vsel %vm1625_vm14, %v4928_v39, %v5800_v12  ;;  %v5801_v15 = vld [vmem:[#allocation60_spill] sm:$0xff] }
 0x21f   : > { %vm1833_vm4 = vcmp.eq.s32.totalorder %v1780_v21, 1  ;;  %vm1832_vm5 = vcmp.eq.s32.totalorder %v1777_v11, 1  ;;  %vm1627_vm2 = vcmp.eq.s32.totalorder %v5801_v15, 1  ;;  %v5802_v10 = vld [vmem:[#allocation20_spill] sm:$0xff]  ;;  %v5803_v21 = vld [vmem:[#allocation109_spill] sm:$0xff] }
 0x220   : > { %v1879_v19 = vsel %vm1833_vm4, %v4935_v58, %v1664_v57  ;;  %v1880_v8 = vsel %vm1833_vm4, %v4938_v38, %v1665_v14  ;;  %v1877_v34 = vsel %vm1832_vm5, %v4935_v58, %v1662_v16  ;;  %v1878_v26 = vsel %vm1832_vm5, %v4938_v38, %v1663_v46  ;;  %v5804_v14 = vld [vmem:[#allocation86_spill] sm:$0xff] }
 0x221   : > { %1929 = vst [vmem:[%s4961_s15 + $0xa0] sm:$0xff] %v1879_v19  ;;  %1930 = vst [vmem:[%s4961_s15 + $0xa8] sm:$0xff] %v1880_v8  ;;  %v1680_v16 = vsel %vm1626_vm15, %v4925_v47, %v5802_v10  ;;  %v1681_v11 = vsel %vm1626_vm15, %v4928_v39, %v5803_v21  ;;  %vm1628_vm3 = vcmp.eq.s32.totalorder %v5804_v14, 1 }
 0x222   : > { %1927 = vst [vmem:[%s4961_s15 + $0x90] sm:$0xff] %v1877_v34  ;;  %1928 = vst [vmem:[%s4961_s15 + $0x98] sm:$0xff] %v1878_v26  ;;  %v1786_v20 = vpop.permute.xlu1 %1785  ;;  %v1783_v1 = vpop.permute.xlu0 %1782 }
 0x223   : > { %vm1835_vm8 = vcmp.eq.s32.totalorder %v1786_v20, 1  ;;  %vm1834_vm9 = vcmp.eq.s32.totalorder %v1783_v1, 1  ;;  %v5807_v1 = vld [vmem:[#allocation85_spill] sm:$0xff] }
 0x224   : > { %v1883_v53 = vsel %vm1835_vm8, %v4935_v58, %v1668_v55  ;;  %v1884_v60 = vsel %vm1835_vm8, %v4938_v38, %v1669_v3  ;;  %v1881_v5 = vsel %vm1834_vm9, %v4935_v58, %v1666_v13  ;;  %v1882_v6 = vsel %vm1834_vm9, %v4938_v38, %v1667_v52  ;;  %v5805_v13 = vld [vmem:[#allocation24_spill] sm:$0xff]  ;;  %v5806_v55 = vld [vmem:[#allocation111_spill] sm:$0xff]  ;;  %v5808_v3 = vld [vmem:[#allocation50_spill] sm:$0xff] }
 0x225   : > { %1933 = vst [vmem:[%s4961_s15 + $0xc0] sm:$0xff] %v1883_v53  ;;  %1934 = vst [vmem:[%s4961_s15 + $0xc8] sm:$0xff] %v1884_v60  ;;  %v1682_v52 = vsel %vm1627_vm2, %v4925_v47, %v5805_v13  ;;  %v1683_v20 = vsel %vm1627_vm2, %v4928_v39, %v5806_v55  ;;  %vm1629_vm6 = vcmp.eq.s32.totalorder %v5807_v1, 1  ;;  %v1684_v53 = vsel %vm1628_vm3, %v4925_v47, %v5808_v3 }
 0x226   : > { %1931 = vst [vmem:[%s4961_s15 + $0xb0] sm:$0xff] %v1881_v5  ;;  %1932 = vst [vmem:[%s4961_s15 + $0xb8] sm:$0xff] %v1882_v6  ;;  %v1792_v18 = vpop.permute.xlu1 %1791  ;;  %v1789_v54 = vpop.permute.xlu0 %1788  ;;  %v5809_v6 = vld [vmem:[#allocation51_spill] sm:$0xff] }
 0x227   : > { %vm1837_vm12 = vcmp.eq.s32.totalorder %v1792_v18, 1  ;;  %vm1836_vm13 = vcmp.eq.s32.totalorder %v1789_v54, 1  ;;  %v5811_v54 = vld [vmem:[#allocation29_spill] sm:$0xff] }
 0x228   : > { %v1887_v31 = vsel %vm1837_vm12, %v4935_v58, %v1672_v2  ;;  %v1888_v63 = vsel %vm1837_vm12, %v4938_v38, %v1673_v56  ;;  %v1885_v44 = vsel %vm1836_vm13, %v4935_v58, %v1670_v9  ;;  %v1886_v43 = vsel %vm1836_vm13, %v4938_v38, %v1671_v30  ;;  %v5810_v2 = vld [vmem:[#allocation53_spill] sm:$0xff]  ;;  %v5812_v56 = vld [vmem:[#allocation52_spill] sm:$0xff] }
 0x229   : > { %1937 = vst [vmem:[%s4961_s15 + $0xe0] sm:$0xff] %v1887_v31  ;;  %1938 = vst [vmem:[%s4961_s15 + $0xe8] sm:$0xff] %v1888_v63  ;;  %v1685_v9 = vsel %vm1628_vm3, %v4928_v39, %v5809_v6  ;;  %v1686_v18 = vsel %vm1629_vm6, %v4925_v47, %v5810_v2  ;;  %v1687_v24 = vsel %vm1629_vm6, %v4928_v39, %v5811_v54 }
 0x22a   : > { %1935 = vst [vmem:[%s4961_s15 + $0xd0] sm:$0xff] %v1885_v44  ;;  %1936 = vst [vmem:[%s4961_s15 + $0xd8] sm:$0xff] %v1886_v43  ;;  %v1798_v59 = vpop.permute.xlu1 %1797  ;;  %v1795_v50 = vpop.permute.xlu0 %1794  ;;  %v1688_v27 = vsel %vm1630_vm7, %v4925_v47, %v5812_v56  ;;  %v5813_v44 = vld [vmem:[#allocation78_spill] sm:$0xff] }
 0x22b   : > { %vm1839_vm0 = vcmp.eq.s32.totalorder %v1798_v59, 1  ;;  %vm1838_vm1 = vcmp.eq.s32.totalorder %v1795_v50, 1  ;;  %v1689_v43 = vsel %vm1630_vm7, %v4928_v39, %v5813_v44 }
 0x22c   : > { %v1891_v41 = vsel %vm1839_vm0, %v4935_v58, %v1676_v7  ;;  %v1892_v49 = vsel %vm1839_vm0, %v4938_v38, %v1677_v28  ;;  %v1889_v23 = vsel %vm1838_vm1, %v4935_v58, %v1674_v36  ;;  %v1890_v40 = vsel %vm1838_vm1, %v4938_v38, %v1675_v32  ;;  %v5817_v28 = vld [vmem:[#allocation56_spill] sm:$0xff] }
 0x22d   : > { %1941 = vst [vmem:[%s4961_s15 + $0x100] sm:$0xff] %v1891_v41  ;;  %1942 = vst [vmem:[%s4961_s15 + $0x108] sm:$0xff] %v1892_v49  ;;  %v1691_v7 = vsel %vm1631_vm10, %v4928_v39, %v5815_v42  ;;  %v1693_v25 = vsel %vm1632_vm11, %v4928_v39, %v5817_v28 }
 0x22e   : > { %1939 = vst [vmem:[%s4961_s15 + $0xf0] sm:$0xff] %v1889_v23  ;;  %1940 = vst [vmem:[%s4961_s15 + $0xf8] sm:$0xff] %v1890_v40  ;;  %v1804_v46 = vpop.permute.xlu1 %1803  ;;  %v1801_v57 = vpop.permute.xlu0 %1800 }
 0x22f   : > { %vm1841_vm4 = vcmp.eq.s32.totalorder %v1804_v46, 1  ;;  %vm1840_vm5 = vcmp.eq.s32.totalorder %v1801_v57, 1 }
 0x230   : > { %v1895_v19 = vsel %vm1841_vm4, %v4935_v58, %v1680_v16  ;;  %v1896_v8 = vsel %vm1841_vm4, %v4938_v38, %v1681_v11  ;;  %v1893_v34 = vsel %vm1840_vm5, %v4935_v58, %v1678_v48  ;;  %v1894_v26 = vsel %vm1840_vm5, %v4938_v38, %v1679_v4 }
 0x231   : > { %1945 = vst [vmem:[%s4961_s15 + $0x120] sm:$0xff] %v1895_v19  ;;  %1946 = vst [vmem:[%s4961_s15 + $0x128] sm:$0xff] %v1896_v8 }
 0x232   : > { %1943 = vst [vmem:[%s4961_s15 + $0x110] sm:$0xff] %v1893_v34  ;;  %1944 = vst [vmem:[%s4961_s15 + $0x118] sm:$0xff] %v1894_v26  ;;  %v1810_v60 = vpop.permute.xlu1 %1809  ;;  %v1807_v5 = vpop.permute.xlu0 %1806 }
 0x233   : > { %vm1843_vm8 = vcmp.eq.s32.totalorder %v1810_v60, 1  ;;  %vm1842_vm9 = vcmp.eq.s32.totalorder %v1807_v5, 1 }
 0x234   : > { %v1899_v17 = vsel %vm1843_vm8, %v4935_v58, %v1684_v53  ;;  %v1900_v30 = vsel %vm1843_vm8, %v4938_v38, %v1685_v9  ;;  %v1897_v22 = vsel %vm1842_vm9, %v4935_v58, %v1682_v52  ;;  %v1898_v61 = vsel %vm1842_vm9, %v4938_v38, %v1683_v20 }
 0x235   : > { %1949 = vst [vmem:[%s4961_s15 + $0x140] sm:$0xff] %v1899_v17  ;;  %1950 = vst [vmem:[%s4961_s15 + $0x148] sm:$0xff] %v1900_v30 }
 0x236   : > { %1947 = vst [vmem:[%s4961_s15 + $0x130] sm:$0xff] %v1897_v22  ;;  %1948 = vst [vmem:[%s4961_s15 + $0x138] sm:$0xff] %v1898_v61  ;;  %v1816_v31 = vpop.permute.xlu1 %1815  ;;  %v1813_v63 = vpop.permute.xlu0 %1812 }
 0x237   : > { %vm1845_vm12 = vcmp.eq.s32.totalorder %v1816_v31, 1  ;;  %vm1844_vm13 = vcmp.eq.s32.totalorder %v1813_v63, 1 }
 0x238   : > { %v1903_v62 = vsel %vm1845_vm12, %v4935_v58, %v1688_v27  ;;  %v1904_v36 = vsel %vm1845_vm12, %v4938_v38, %v1689_v43  ;;  %v1901_v37 = vsel %vm1844_vm13, %v4935_v58, %v1686_v18  ;;  %v1902_v32 = vsel %vm1844_vm13, %v4938_v38, %v1687_v24 }
 0x239   : > { %1953 = vst [vmem:[%s4961_s15 + $0x160] sm:$0xff] %v1903_v62  ;;  %1954 = vst [vmem:[%s4961_s15 + $0x168] sm:$0xff] %v1904_v36 }
 0x23a   : > { %1951 = vst [vmem:[%s4961_s15 + $0x150] sm:$0xff] %v1901_v37  ;;  %1952 = vst [vmem:[%s4961_s15 + $0x158] sm:$0xff] %v1902_v32  ;;  %v1822_v59 = vpop.permute.xlu1 %1821  ;;  %v1819_v50 = vpop.permute.xlu0 %1818 }
 0x23b   : > { %vm1847_vm14 = vcmp.eq.s32.totalorder %v1822_v59, 1  ;;  %vm1846_vm15 = vcmp.eq.s32.totalorder %v1819_v50, 1 }
 0x23c   : > { %v1907_v41 = vsel %vm1847_vm14, %v4935_v58, %v1692_v45  ;;  %v1908_v49 = vsel %vm1847_vm14, %v4938_v38, %v1693_v25  ;;  %v1905_v23 = vsel %vm1846_vm15, %v4935_v58, %v1690_v33  ;;  %v1906_v40 = vsel %vm1846_vm15, %v4938_v38, %v1691_v7 }
 0x23d   : > { %1957 = vst [vmem:[%s4961_s15 + $0x180] sm:$0xff] %v1907_v41  ;;  %1958 = vst [vmem:[%s4961_s15 + $0x188] sm:$0xff] %v1908_v49 }
 0x23e   : > { %1955 = vst [vmem:[%s4961_s15 + $0x170] sm:$0xff] %v1905_v23  ;;  %1956 = vst [vmem:[%s4961_s15 + $0x178] sm:$0xff] %v1906_v40 }
 0x23f   : > { %2159 = shalt.err (!%p2156_p8)
}
 0x240   : > { %s2160_s7 = scalar_lea.hbm %s5262_s24, 6400  ;;  %s2164_s9 = scalar_lea.hbm %s5328_s3, 12800 }
 0x241   : > { %p2161_p9 = scmp.ne.s32.totalorder %s5262_s24, %s2160_s7  ;;  %p2165_p0 = scmp.lt.u32.totalorder %s5262_s24, %s5328_s3 }
 0x242   : > { %p2166_p1 = scmp.lt.u32.totalorder %s2164_s9, %s2160_s7  ;;  %p2168_p3 = scmp.lt.u32.totalorder %s2160_s7, %s5262_s24 }
 0x243   : > { %p2162_p12 = pnand %p2161_p9, %p2278_p10 }
 0x244   : > { %p2167_p2 = por %p2166_p1, %p2165_p0 }
 0x245   : > { %p2163_p13 = pneg %p2162_p12 }
 0x246   : > { %p2169_p4 = por %p2168_p3, %p2167_p2 }
 0x248   : > { %p2170_p5 = pnand %p2169_p4, %p2163_p13 }
 0x24a   : > { %2173 = shalt.err (!%p2170_p5)
}
 0x24b   : > { %s2215_s12 = smov 256   ;;  %s2216_s13 = smov 16  }
 0x24c   : > { %2064 = dma.vmem_to_hbm [thread:$0]  (%p2278_p10), %s5264_s21, 6400, %s5262_s24, %s5284_s28, %s2215_s12, %s2215_s12, %s2216_s13  }
 0x24d PF: > { %p2070_p6 = scmp.ge.s32.totalorder %s2210_s19, 2  ;;  %s1989_s14 = sand.u32 1, %s2198_s17  }
 0x24e   : > { %s1990_s15 = scalar_lea.sflag [#allocation5], %s1989_s14 }
 0x24f   : > { %p2067_p7 = pnand %p2070_p6, %p2282_p11 }
 0x251   : > { %2193 = dma.done.wait (!%p2067_p7), %s1990_s15, 6400  }
 0x252   : > { %2195 = vsyncadd (!%p2067_p7), %s1990_s15, 4294960896  ;;  %p19_p8 = scmp.ge.s32.totalorder %s2265_s22, 4   ;;  %s5818_s17 = smov %s2202_s18 }
 0x253   : > { %s5819_s18 = smov %s2206_s0  ;;  %s5820_s0 = smov %s2276_s25 }
 0x254   : > { %s5821_s19 = smov %s2265_s22  ;;  %21 = sbr.rel (!%p19_p8) target bundleno = 18 (0x12), region = 71 }
 0x25b   :  { %1995 = vsyncpa [#allocation5], 1 }
 0x25c   :  { %1997 = vsyncpa [#allocation5 + $0x1], 1 }

</bundles_post_ra>
